<compile_context>
chip_gen: v5e
topology: v5e:2x2
jax: 0.10.0
libtpu: 0.0.40
codegen_flags: <defaults>
</compile_context>

<pallas_src>
import jax
import jax.numpy as jnp
from jax.experimental import pallas as pl
from jax.experimental.pallas import tpu as pltpu


# ------------------------------ configuration ------------------------------

VOCAB = 32
INPUT_DIM = 256               # embedding / encoder width (module default)
SPECT_DIM = 80                # mel dim (module default)
R = 5                         # reduction factor (module default)
POST_OUT = 1025               # PostProcessing nn.Linear(256, 1025)

FRAME_PAD = 128               # 80 -> 128 (lane-dense per decoder frame)
DEC_OUT_PAD = R * FRAME_PAD   # 640  (5 frames x 128 lanes)
POST_OUT_PAD = 1152           # 1025 -> 9*128
WAV_OUT_PAD = R * POST_OUT_PAD  # 5760

TM_MAX = 512                  # rows per M tile (multiple of 16, bf16 friendly)
VMEM_LIMIT = 32 * 1024 * 1024  # safe on v5e/v6e/v7x; ~15 MiB of buffers @ tm=512


def _round_up(x, m):
    return ((x + m - 1) // m) * m


# ------------------------------ fused kernel -------------------------------

def _fused_dec_cbhg_post_kernel(mem_ref, wdec_ref, bdec_ref, wcbhg_ref,
                                bcbhg_ref, wpost_ref, bpost_ref,
                                dec_ref, wav_ref):
    # mem:   (tm, 256) bf16
    # wdec:  (256, 640) bf16   frame f in cols [f*128, f*128+80), rest zero
    # wcbhg: (128, 256) bf16   rows 80..127 zero
    # wpost: (256, 1152) bf16  cols 1025..1151 zero
    # dec_ref: (tm, 640) bf16 out ; wav_ref: (tm, 5760) bf16 out
    dec = jnp.dot(mem_ref[...], wdec_ref[...],
                  preferred_element_type=jnp.float32) + bdec_ref[...]
    dec_ref[...] = dec.astype(dec_ref.dtype)          # lane-dense bf16 store

    wcbhg = wcbhg_ref[...]
    bcbhg = bcbhg_ref[...]
    wpost = wpost_ref[...]
    bpost = bpost_ref[...]
    for f in range(R):                                 # static unroll (r = 5)
        # 128-aligned lane slice; padded lanes are exact zeros.
        frame = dec_ref[:, f * FRAME_PAD:(f + 1) * FRAME_PAD]      # (tm,128) bf16
        h = jnp.dot(frame, wcbhg,
                    preferred_element_type=jnp.float32) + bcbhg    # (tm,256) f32
        wav = jnp.dot(h.astype(jnp.bfloat16), wpost,
                      preferred_element_type=jnp.float32) + bpost  # (tm,1152) f32
        wav_ref[:, f * POST_OUT_PAD:(f + 1) * POST_OUT_PAD] = (
            wav.astype(wav_ref.dtype))


def fused_dec_cbhg_post(mem, wdec, bdec, wcbhg, bcbhg, wpost, bpost,
                        tm_max=TM_MAX):
    """mem (m, 256) bf16 -> (dec (m_pad, 640) bf16, wav (m_pad, 5760) bf16)."""
    m, k = mem.shape
    assert k == INPUT_DIM

    tm = min(tm_max, _round_up(m, 16))
    m_pad = _round_up(m, tm)
    # v7x has 2 TensorCores: make sure the parallel grid has >= 2 steps when
    # the row count allows it.
    if m_pad // tm < 2 and tm >= 32:
        tm = _round_up(tm // 2, 16)
        m_pad = _round_up(m, tm)
    if m_pad != m:
        mem = jnp.pad(mem, ((0, m_pad - m), (0, 0)))
    grid = (m_pad // tm,)

    flops = 2 * m_pad * (INPUT_DIM * DEC_OUT_PAD
                         + R * (FRAME_PAD * INPUT_DIM + INPUT_DIM * POST_OUT_PAD))
    bytes_accessed = (m_pad * INPUT_DIM * 2
                      + (wdec.size + wcbhg.size + wpost.size) * 2
                      + (bdec.size + bcbhg.size + bpost.size) * 4
                      + m_pad * (DEC_OUT_PAD + WAV_OUT_PAD) * 2)

    dec_out, wav_out = pl.pallas_call(
        _fused_dec_cbhg_post_kernel,
        out_shape=(jax.ShapeDtypeStruct((m_pad, DEC_OUT_PAD), jnp.bfloat16),
                   jax.ShapeDtypeStruct((m_pad, WAV_OUT_PAD), jnp.bfloat16)),
        grid=grid,
        in_specs=[
            pl.BlockSpec((tm, INPUT_DIM), lambda i: (i, 0)),
            pl.BlockSpec((INPUT_DIM, DEC_OUT_PAD), lambda i: (0, 0)),   # resident
            pl.BlockSpec((1, DEC_OUT_PAD), lambda i: (0, 0)),           # resident
            pl.BlockSpec((FRAME_PAD, INPUT_DIM), lambda i: (0, 0)),     # resident
            pl.BlockSpec((1, INPUT_DIM), lambda i: (0, 0)),             # resident
            pl.BlockSpec((INPUT_DIM, POST_OUT_PAD), lambda i: (0, 0)),  # resident
            pl.BlockSpec((1, POST_OUT_PAD), lambda i: (0, 0)),          # resident
        ],
        out_specs=(pl.BlockSpec((tm, DEC_OUT_PAD), lambda i: (i, 0)),
                   pl.BlockSpec((tm, WAV_OUT_PAD), lambda i: (i, 0))),
        compiler_params=pltpu.CompilerParams(
            dimension_semantics=("parallel",),
            vmem_limit_bytes=VMEM_LIMIT),
        cost_estimate=pl.CostEstimate(flops=flops, transcendentals=0,
                                      bytes_accessed=bytes_accessed),
    )(mem, wdec, bdec, wcbhg, bcbhg, wpost, bpost)
    return dec_out, wav_out


# ----------------------------- parameter setup -----------------------------

def init_params(key):
    ks = jax.random.split(key, 6)
    p = {}
    # nn.Embedding(vocab_num, 256), weight ~ N(0, 0.3).  Stored bf16: the
    # gathered rows feed bf16 matmuls anyway (identical to gather-then-cast).
    p["embedding"] = (0.3 * jax.random.normal(
        ks[0], (VOCAB, INPUT_DIM), dtype=jnp.float32)).astype(jnp.bfloat16)

    # TODO(synk): Decoder definition not provided in the source snippet;
    # deterministic linear stand-in mapping memory (256) -> r*spect_dim frames.
    dec_w = 0.05 * jax.random.normal(ks[1], (INPUT_DIM, R * SPECT_DIM),
                                     dtype=jnp.float32)
    dec_w_fr = jnp.pad(dec_w.reshape(INPUT_DIM, R, SPECT_DIM),
                       ((0, 0), (0, 0), (0, FRAME_PAD - SPECT_DIM)))
    p["dec_w_t"] = dec_w_fr.reshape(INPUT_DIM, DEC_OUT_PAD).astype(jnp.bfloat16)
    p["dec_b"] = jnp.zeros((1, DEC_OUT_PAD), jnp.float32)

    # TODO(synk): DecoderCBHG(80, K=8) definition not provided; linear stand-in
    # 80 -> 256 so the real post Linear(256, 1025) applies.  Rows padded 80->128.
    cbhg_w = 0.05 * jax.random.normal(ks[2], (SPECT_DIM, INPUT_DIM),
                                      dtype=jnp.float32)
    p["cbhg_w_t"] = jnp.pad(cbhg_w, ((0, FRAME_PAD - SPECT_DIM), (0, 0))
                            ).astype(jnp.bfloat16)
    p["cbhg_b"] = jnp.zeros((1, INPUT_DIM), jnp.float32)

    # PostProcessing.linear = nn.Linear(256, 1025): U(-1/sqrt(256), 1/sqrt(256))
    bound = 1.0 / (float(INPUT_DIM) ** 0.5)
    post_w = jax.random.uniform(ks[3], (INPUT_DIM, POST_OUT),
                                minval=-bound, maxval=bound, dtype=jnp.float32)
    p["post_w_t"] = jnp.pad(post_w, ((0, 0), (0, POST_OUT_PAD - POST_OUT))
                            ).astype(jnp.bfloat16)
    post_b = jax.random.uniform(ks[4], (POST_OUT,),
                                minval=-bound, maxval=bound, dtype=jnp.float32)
    p["post_b"] = jnp.pad(post_b, (0, POST_OUT_PAD - POST_OUT)
                          ).reshape(1, POST_OUT_PAD)
    return p


# ------------------------------- forward pass ------------------------------

def tacotron_forward(params, token_ids):
    B, T = token_ids.shape
    m = B * T

    # --- Embedding: exact row gather (bf16 table -> bf16 rows), no MXU waste.
    memory = jnp.take(params["embedding"], token_ids.reshape(-1), axis=0)

    # TODO(synk): Encoder body not provided in the source snippet; pass-through.

    # TODO(synk): Decoder body not provided; stand-in linear producing r frames
    # per encoder step (attention is not computable without the Decoder).
    dec_pad, wav_pad = fused_dec_cbhg_post(
        memory, params["dec_w_t"], params["dec_b"],
        params["cbhg_w_t"], params["cbhg_b"],
        params["post_w_t"], params["post_b"])

    # Single end-of-graph depad + f32 upcast (the only place padded lanes and
    # padded rows are dropped; everything upstream consumed padded bf16).
    decoder_output = (dec_pad[:m].reshape(B, T * R, FRAME_PAD)[..., :SPECT_DIM]
                      .astype(jnp.float32))                    # (B, T*r, 80)
    wav_output = (wav_pad[:m].reshape(B, T * R, POST_OUT_PAD)[..., :POST_OUT]
                  .astype(jnp.float32))                        # (B, T*r, 1025)

    # TODO(synk): attention weights need the (unprovided) Decoder; placeholder.
    attention_weights = jnp.full((B, T, T), 1.0 / T, dtype=jnp.float32)

    return decoder_output, wav_output, attention_weights


# ----------------------------------- main -----------------------------------

if __name__ == "__main__":
    key = jax.random.PRNGKey(0)
    k_param, k_data = jax.random.split(key)

    params = init_params(k_param)

    B, T = 2, 8
    token_ids = jax.random.randint(k_data, (B, T), 0, VOCAB, dtype=jnp.int32)

    fwd = jax.jit(tacotron_forward)
    dec_out, wav_out, attn = fwd(params, token_ids)
    jax.block_until_ready((dec_out, wav_out, attn))

    assert dec_out.shape == (B, T * R, SPECT_DIM)
    assert wav_out.shape == (B, T * R, POST_OUT)
    assert attn.shape == (B, T, T)

    # Pure-JAX f32 reference (same bf16 weights, upcast) — validates the fused
    # padding / frame-splitting / ordering; bf16 compute => tolerance check.
    mem_f32 = jnp.take(params["embedding"].astype(jnp.float32),
                       token_ids.reshape(-1), axis=0)
    wdec = (params["dec_w_t"].astype(jnp.float32)
            .reshape(INPUT_DIM, R, FRAME_PAD)[:, :, :SPECT_DIM]
            .reshape(INPUT_DIM, R * SPECT_DIM))
    dec_ref = mem_f32 @ wdec                                   # (m, 400)
    wcb = params["cbhg_w_t"].astype(jnp.float32)[:SPECT_DIM]
    h_ref = dec_ref.reshape(-1, SPECT_DIM) @ wcb               # (m*r, 256)
    wpost = params["post_w_t"].astype(jnp.float32)[:, :POST_OUT]
    bpost = params["post_b"][0, :POST_OUT]
    wav_ref = (h_ref @ wpost + bpost).reshape(B, T * R, POST_OUT)
    dec_ref3 = dec_ref.reshape(B, T * R, SPECT_DIM)
    assert jnp.allclose(dec_out, dec_ref3, atol=2e-2, rtol=2e-2)
    assert jnp.allclose(wav_out, wav_ref, atol=2e-2, rtol=2e-2)

    print("KERNEL_OK")
</pallas_src>

<mosaic_0001>
module attributes {stable_mosaic.version = 11 : i64} {
  func.func @_fused_dec_cbhg_post_kernel(%arg0: i32, %arg1: memref<16x256xbf16, #tpu.memory_space<vmem>>, %arg2: memref<256x640xbf16, #tpu.memory_space<vmem>>, %arg3: memref<1x640xf32, #tpu.memory_space<vmem>>, %arg4: memref<128x256xbf16, #tpu.memory_space<vmem>>, %arg5: memref<1x256xf32, #tpu.memory_space<vmem>>, %arg6: memref<256x1152xbf16, #tpu.memory_space<vmem>>, %arg7: memref<1x1152xf32, #tpu.memory_space<vmem>>, %arg8: memref<16x640xbf16, #tpu.memory_space<vmem>>, %arg9: memref<16x5760xbf16, #tpu.memory_space<vmem>>) attributes {dimension_semantics = [#tpu.dimension_semantics<parallel>], iteration_bounds = array<i64: 1>, scalar_prefetch = 0 : i64, scratch_operands = 0 : i64, tpu.core_type = #tpu.core_type<tc>, window_params = [{transform_indices = @transform_0, window_bounds = array<i64: 16, 256>}, {pipeline_mode = #tpu.pipeline_mode<synchronous>, transform_indices = @transform_1, window_bounds = array<i64: 256, 640>}, {pipeline_mode = #tpu.pipeline_mode<synchronous>, transform_indices = @transform_2, window_bounds = array<i64: 1, 640>}, {pipeline_mode = #tpu.pipeline_mode<synchronous>, transform_indices = @transform_3, window_bounds = array<i64: 128, 256>}, {pipeline_mode = #tpu.pipeline_mode<synchronous>, transform_indices = @transform_4, window_bounds = array<i64: 1, 256>}, {pipeline_mode = #tpu.pipeline_mode<synchronous>, transform_indices = @transform_5, window_bounds = array<i64: 256, 1152>}, {pipeline_mode = #tpu.pipeline_mode<synchronous>, transform_indices = @transform_6, window_bounds = array<i64: 1, 1152>}, {transform_indices = @transform_7, window_bounds = array<i64: 16, 640>}, {transform_indices = @transform_8, window_bounds = array<i64: 16, 5760>}]} {
    %c0 = arith.constant 0 : index
    %c0_0 = arith.constant 0 : index
    %0 = vector.load %arg1[%c0, %c0_0] : memref<16x256xbf16, #tpu.memory_space<vmem>>, vector<16x256xbf16>
    %c0_1 = arith.constant 0 : index
    %c0_2 = arith.constant 0 : index
    %1 = vector.load %arg2[%c0_1, %c0_2] : memref<256x640xbf16, #tpu.memory_space<vmem>>, vector<256x640xbf16>
    %cst = arith.constant dense<0.000000e+00> : vector<16x640xf32>
    %2 = tpu.matmul %0, %1, %cst {dimension_numbers = #tpu.dot_dimension_numbers<[1], [0], [0], [1], [0, 0, 1, 1], [], []>} : vector<16x256xbf16>, vector<256x640xbf16>, vector<16x640xf32> -> vector<16x640xf32>
    %c0_3 = arith.constant 0 : index
    %c0_4 = arith.constant 0 : index
    %3 = vector.load %arg3[%c0_3, %c0_4] : memref<1x640xf32, #tpu.memory_space<vmem>>, vector<1x640xf32>
    %4 = vector.broadcast %3 : vector<1x640xf32> to vector<16x640xf32>
    %5 = arith.addf %2, %4 : vector<16x640xf32>
    %6 = arith.truncf %5 : vector<16x640xf32> to vector<16x640xbf16>
    %c0_5 = arith.constant 0 : index
    %c0_6 = arith.constant 0 : index
    %7 = vector.load %arg8[%c0_5, %c0_6] : memref<16x640xbf16, #tpu.memory_space<vmem>>, vector<16x640xbf16>
    tpu.vector_store %arg8[%c0_5, %c0_6], %6 {strides = array<i32>} : memref<16x640xbf16, #tpu.memory_space<vmem>>, vector<16x640xbf16>,
    %c0_7 = arith.constant 0 : index
    %c0_8 = arith.constant 0 : index
    %8 = vector.load %arg4[%c0_7, %c0_8] : memref<128x256xbf16, #tpu.memory_space<vmem>>, vector<128x256xbf16>
    %c0_9 = arith.constant 0 : index
    %c0_10 = arith.constant 0 : index
    %9 = vector.load %arg5[%c0_9, %c0_10] : memref<1x256xf32, #tpu.memory_space<vmem>>, vector<1x256xf32>
    %c0_11 = arith.constant 0 : index
    %c0_12 = arith.constant 0 : index
    %10 = vector.load %arg6[%c0_11, %c0_12] : memref<256x1152xbf16, #tpu.memory_space<vmem>>, vector<256x1152xbf16>
    %c0_13 = arith.constant 0 : index
    %c0_14 = arith.constant 0 : index
    %11 = vector.load %arg7[%c0_13, %c0_14] : memref<1x1152xf32, #tpu.memory_space<vmem>>, vector<1x1152xf32>
    %c0_15 = arith.constant 0 : index
    %c0_16 = arith.constant 0 : index
    %12 = vector.load %arg8[%c0_15, %c0_16] : memref<16x640xbf16, #tpu.memory_space<vmem>>, vector<16x128xbf16>
    %cst_17 = arith.constant dense<0.000000e+00> : vector<16x256xf32>
    %13 = tpu.matmul %12, %8, %cst_17 {dimension_numbers = #tpu.dot_dimension_numbers<[1], [0], [0], [1], [0, 0, 1, 1], [], []>} : vector<16x128xbf16>, vector<128x256xbf16>, vector<16x256xf32> -> vector<16x256xf32>
    %14 = vector.broadcast %9 : vector<1x256xf32> to vector<16x256xf32>
    %15 = arith.addf %13, %14 : vector<16x256xf32>
    %16 = arith.truncf %15 : vector<16x256xf32> to vector<16x256xbf16>
    %cst_18 = arith.constant dense<0.000000e+00> : vector<16x1152xf32>
    %17 = tpu.matmul %16, %10, %cst_18 {dimension_numbers = #tpu.dot_dimension_numbers<[1], [0], [0], [1], [0, 0, 1, 1], [], []>} : vector<16x256xbf16>, vector<256x1152xbf16>, vector<16x1152xf32> -> vector<16x1152xf32>
    %18 = vector.broadcast %11 : vector<1x1152xf32> to vector<16x1152xf32>
    %19 = arith.addf %17, %18 : vector<16x1152xf32>
    %20 = arith.truncf %19 : vector<16x1152xf32> to vector<16x1152xbf16>
    %c0_19 = arith.constant 0 : index
    %c0_20 = arith.constant 0 : index
    %21 = vector.load %arg9[%c0_19, %c0_20] : memref<16x5760xbf16, #tpu.memory_space<vmem>>, vector<16x1152xbf16>
    tpu.vector_store %arg9[%c0_19, %c0_20], %20 {strides = array<i32>} : memref<16x5760xbf16, #tpu.memory_space<vmem>>, vector<16x1152xbf16>,
    %c0_21 = arith.constant 0 : index
    %c128 = arith.constant 128 : index
    %22 = vector.load %arg8[%c0_21, %c128] : memref<16x640xbf16, #tpu.memory_space<vmem>>, vector<16x128xbf16>
    %cst_22 = arith.constant dense<0.000000e+00> : vector<16x256xf32>
    %23 = tpu.matmul %22, %8, %cst_22 {dimension_numbers = #tpu.dot_dimension_numbers<[1], [0], [0], [1], [0, 0, 1, 1], [], []>} : vector<16x128xbf16>, vector<128x256xbf16>, vector<16x256xf32> -> vector<16x256xf32>
    %24 = vector.broadcast %9 : vector<1x256xf32> to vector<16x256xf32>
    %25 = arith.addf %23, %24 : vector<16x256xf32>
    %26 = arith.truncf %25 : vector<16x256xf32> to vector<16x256xbf16>
    %cst_23 = arith.constant dense<0.000000e+00> : vector<16x1152xf32>
    %27 = tpu.matmul %26, %10, %cst_23 {dimension_numbers = #tpu.dot_dimension_numbers<[1], [0], [0], [1], [0, 0, 1, 1], [], []>} : vector<16x256xbf16>, vector<256x1152xbf16>, vector<16x1152xf32> -> vector<16x1152xf32>
    %28 = vector.broadcast %11 : vector<1x1152xf32> to vector<16x1152xf32>
    %29 = arith.addf %27, %28 : vector<16x1152xf32>
    %30 = arith.truncf %29 : vector<16x1152xf32> to vector<16x1152xbf16>
    %c0_24 = arith.constant 0 : index
    %c1152 = arith.constant 1152 : index
    %31 = vector.load %arg9[%c0_24, %c1152] : memref<16x5760xbf16, #tpu.memory_space<vmem>>, vector<16x1152xbf16>
    tpu.vector_store %arg9[%c0_24, %c1152], %30 {strides = array<i32>} : memref<16x5760xbf16, #tpu.memory_space<vmem>>, vector<16x1152xbf16>,
    %c0_25 = arith.constant 0 : index
    %c256 = arith.constant 256 : index
    %32 = vector.load %arg8[%c0_25, %c256] : memref<16x640xbf16, #tpu.memory_space<vmem>>, vector<16x128xbf16>
    %cst_26 = arith.constant dense<0.000000e+00> : vector<16x256xf32>
    %33 = tpu.matmul %32, %8, %cst_26 {dimension_numbers = #tpu.dot_dimension_numbers<[1], [0], [0], [1], [0, 0, 1, 1], [], []>} : vector<16x128xbf16>, vector<128x256xbf16>, vector<16x256xf32> -> vector<16x256xf32>
    %34 = vector.broadcast %9 : vector<1x256xf32> to vector<16x256xf32>
    %35 = arith.addf %33, %34 : vector<16x256xf32>
    %36 = arith.truncf %35 : vector<16x256xf32> to vector<16x256xbf16>
    %cst_27 = arith.constant dense<0.000000e+00> : vector<16x1152xf32>
    %37 = tpu.matmul %36, %10, %cst_27 {dimension_numbers = #tpu.dot_dimension_numbers<[1], [0], [0], [1], [0, 0, 1, 1], [], []>} : vector<16x256xbf16>, vector<256x1152xbf16>, vector<16x1152xf32> -> vector<16x1152xf32>
    %38 = vector.broadcast %11 : vector<1x1152xf32> to vector<16x1152xf32>
    %39 = arith.addf %37, %38 : vector<16x1152xf32>
    %40 = arith.truncf %39 : vector<16x1152xf32> to vector<16x1152xbf16>
    %c0_28 = arith.constant 0 : index
    %c2304 = arith.constant 2304 : index
    %41 = vector.load %arg9[%c0_28, %c2304] : memref<16x5760xbf16, #tpu.memory_space<vmem>>, vector<16x1152xbf16>
    tpu.vector_store %arg9[%c0_28, %c2304], %40 {strides = array<i32>} : memref<16x5760xbf16, #tpu.memory_space<vmem>>, vector<16x1152xbf16>,
    %c0_29 = arith.constant 0 : index
    %c384 = arith.constant 384 : index
    %42 = vector.load %arg8[%c0_29, %c384] : memref<16x640xbf16, #tpu.memory_space<vmem>>, vector<16x128xbf16>
    %cst_30 = arith.constant dense<0.000000e+00> : vector<16x256xf32>
    %43 = tpu.matmul %42, %8, %cst_30 {dimension_numbers = #tpu.dot_dimension_numbers<[1], [0], [0], [1], [0, 0, 1, 1], [], []>} : vector<16x128xbf16>, vector<128x256xbf16>, vector<16x256xf32> -> vector<16x256xf32>
    %44 = vector.broadcast %9 : vector<1x256xf32> to vector<16x256xf32>
    %45 = arith.addf %43, %44 : vector<16x256xf32>
    %46 = arith.truncf %45 : vector<16x256xf32> to vector<16x256xbf16>
    %cst_31 = arith.constant dense<0.000000e+00> : vector<16x1152xf32>
    %47 = tpu.matmul %46, %10, %cst_31 {dimension_numbers = #tpu.dot_dimension_numbers<[1], [0], [0], [1], [0, 0, 1, 1], [], []>} : vector<16x256xbf16>, vector<256x1152xbf16>, vector<16x1152xf32> -> vector<16x1152xf32>
    %48 = vector.broadcast %11 : vector<1x1152xf32> to vector<16x1152xf32>
    %49 = arith.addf %47, %48 : vector<16x1152xf32>
    %50 = arith.truncf %49 : vector<16x1152xf32> to vector<16x1152xbf16>
    %c0_32 = arith.constant 0 : index
    %c3456 = arith.constant 3456 : index
    %51 = vector.load %arg9[%c0_32, %c3456] : memref<16x5760xbf16, #tpu.memory_space<vmem>>, vector<16x1152xbf16>
    tpu.vector_store %arg9[%c0_32, %c3456], %50 {strides = array<i32>} : memref<16x5760xbf16, #tpu.memory_space<vmem>>, vector<16x1152xbf16>,
    %c0_33 = arith.constant 0 : index
    %c512 = arith.constant 512 : index
    %52 = vector.load %arg8[%c0_33, %c512] : memref<16x640xbf16, #tpu.memory_space<vmem>>, vector<16x128xbf16>
    %cst_34 = arith.constant dense<0.000000e+00> : vector<16x256xf32>
    %53 = tpu.matmul %52, %8, %cst_34 {dimension_numbers = #tpu.dot_dimension_numbers<[1], [0], [0], [1], [0, 0, 1, 1], [], []>} : vector<16x128xbf16>, vector<128x256xbf16>, vector<16x256xf32> -> vector<16x256xf32>
    %54 = vector.broadcast %9 : vector<1x256xf32> to vector<16x256xf32>
    %55 = arith.addf %53, %54 : vector<16x256xf32>
    %56 = arith.truncf %55 : vector<16x256xf32> to vector<16x256xbf16>
    %cst_35 = arith.constant dense<0.000000e+00> : vector<16x1152xf32>
    %57 = tpu.matmul %56, %10, %cst_35 {dimension_numbers = #tpu.dot_dimension_numbers<[1], [0], [0], [1], [0, 0, 1, 1], [], []>} : vector<16x256xbf16>, vector<256x1152xbf16>, vector<16x1152xf32> -> vector<16x1152xf32>
    %58 = vector.broadcast %11 : vector<1x1152xf32> to vector<16x1152xf32>
    %59 = arith.addf %57, %58 : vector<16x1152xf32>
    %60 = arith.truncf %59 : vector<16x1152xf32> to vector<16x1152xbf16>
    %c0_36 = arith.constant 0 : index
    %c4608 = arith.constant 4608 : index
    %61 = vector.load %arg9[%c0_36, %c4608] : memref<16x5760xbf16, #tpu.memory_space<vmem>>, vector<16x1152xbf16>
    tpu.vector_store %arg9[%c0_36, %c4608], %60 {strides = array<i32>} : memref<16x5760xbf16, #tpu.memory_space<vmem>>, vector<16x1152xbf16>,
    return
  }
  func.func @transform_0(%arg0: i32) -> (i32, i32) {
    %c0_i32 = arith.constant 0 : i32
    %c0_i32_0 = arith.constant 0 : i32
    return %arg0, %c0_i32 : i32, i32
  }
  func.func @transform_1(%arg0: i32) -> (i32, i32) {
    %c0_i32 = arith.constant 0 : i32
    %c0_i32_0 = arith.constant 0 : i32
    %c0_i32_1 = arith.constant 0 : i32
    return %c0_i32, %c0_i32_0 : i32, i32
  }
  func.func @transform_2(%arg0: i32) -> (i32, i32) {
    %c0_i32 = arith.constant 0 : i32
    %c0_i32_0 = arith.constant 0 : i32
    %c0_i32_1 = arith.constant 0 : i32
    return %c0_i32, %c0_i32_0 : i32, i32
  }
  func.func @transform_3(%arg0: i32) -> (i32, i32) {
    %c0_i32 = arith.constant 0 : i32
    %c0_i32_0 = arith.constant 0 : i32
    %c0_i32_1 = arith.constant 0 : i32
    return %c0_i32, %c0_i32_0 : i32, i32
  }
  func.func @transform_4(%arg0: i32) -> (i32, i32) {
    %c0_i32 = arith.constant 0 : i32
    %c0_i32_0 = arith.constant 0 : i32
    %c0_i32_1 = arith.constant 0 : i32
    return %c0_i32, %c0_i32_0 : i32, i32
  }
  func.func @transform_5(%arg0: i32) -> (i32, i32) {
    %c0_i32 = arith.constant 0 : i32
    %c0_i32_0 = arith.constant 0 : i32
    %c0_i32_1 = arith.constant 0 : i32
    return %c0_i32, %c0_i32_0 : i32, i32
  }
  func.func @transform_6(%arg0: i32) -> (i32, i32) {
    %c0_i32 = arith.constant 0 : i32
    %c0_i32_0 = arith.constant 0 : i32
    %c0_i32_1 = arith.constant 0 : i32
    return %c0_i32, %c0_i32_0 : i32, i32
  }
  func.func @transform_7(%arg0: i32) -> (i32, i32) {
    %c0_i32 = arith.constant 0 : i32
    %c0_i32_0 = arith.constant 0 : i32
    return %arg0, %c0_i32 : i32, i32
  }
  func.func @transform_8(%arg0: i32) -> (i32, i32) {
    %c0_i32 = arith.constant 0 : i32
    %c0_i32_0 = arith.constant 0 : i32
    return %arg0, %c0_i32 : i32, i32
  }
}

</mosaic_0001>

<bundles_post_ra>
// kernel: tacotron_forward.1
= control target key start
LH: loop header
LB: loop body
LE: loop exit
PB: predicated region body
PF: predicated region fallthrough
CT: control target
= control target key end

     0   :  { %14 = vsyncpa [#allocation3], 0  ;;  %s6399_s0 = inlined_call_operand.vmem [shape: bf16[16,256], index: 0, kind: input, shape index: {}]   ;;  %s6400_s1 = inlined_call_operand.hbm [shape: bf16[256,640], index: 1, kind: input, shape index: {}]   ;;  %s6401_s2 = inlined_call_operand.vmem [shape: f32[1,640], index: 2, kind: input, shape index: {}]   ;;  %s6402_s3 = inlined_call_operand.vmem [shape: bf16[128,256], index: 3, kind: input, shape index: {}]   ;;  %s6403_s4 = inlined_call_operand.vmem [shape: f32[1,256], index: 4, kind: input, shape index: {}]   ;;  %s6404_s5 = inlined_call_operand.hbm [shape: bf16[256,1152], index: 5, kind: input, shape index: {}]   ;;  %s6405_s6 = inlined_call_operand.vmem [shape: f32[1,1152], index: 6, kind: input, shape index: {}]   ;;  %s6406_s7 = inlined_call_operand.vmem [shape: bf16[16,640], index: 7, kind: output, shape index: {0}]   ;;  %s6407_s8 = inlined_call_operand.vmem [shape: bf16[16,5760], index: 8, kind: output, shape index: {1}]  }
   0x1   :  { %s22_s29 = sshll.u32 %s6400_s1, 4  ;;  %s23_s29 = int_to_ptr.hbm [resolvable:$true] %s22_s29 }
   0x2   :  { %15 = vsyncpa [#allocation5], 0  ;;  %s4624_s30 = smov [#allocation2]   ;;  %s41_s12 = sshll.u32 %s6404_s5, 4  ;;  %s42_s12 = int_to_ptr.hbm [resolvable:$true] %s41_s12 }
   0x3   :  { %s24_s9 = sshll.u32 %s4624_s30, 4  ;;  %s4625_s13 = smov 320   ;;  %s25_s9 = int_to_ptr.vmem [resolvable:$true] %s24_s9 }
   0x4   :  { %s4626_s14 = smov 20   ;;  %s4627_s15 = smov [#allocation4]  }
   0x5   :  { %30 = dma.hbm_to_vmem [thread:$0]  %s23_s29, 10240, %s25_s9, [#allocation3], %s4625_s13, %s4625_s13, %s4626_s14  }
   0x6   :  { %s43_s16 = sshll.u32 %s4627_s15, 4  ;;  %s4628_s17 = smov 576   ;;  %s44_s16 = int_to_ptr.vmem [resolvable:$true] %s43_s16 }
   0x7   :  { %s4629_s18 = smov 36  }
   0x8   :  { %49 = dma.hbm_to_vmem [thread:$0]  %s42_s12, 18432, %s44_s16, [#allocation5], %s4628_s17, %s4628_s17, %s4629_s18  }
   0x9   :  { %4620 = dma.done.wait [#allocation3], 10240  }
   0xa   :  { %4621 = vsyncadd [#allocation3], 4294957056 }
   0xb   :  { %4622 = dma.done.wait [#allocation5], 18432  }
   0xc   :  { %4623 = vsyncadd [#allocation5], 4294948864  ;;  %v3478_v0 = vld [vmem:[#allocation2 + $0x118] sm:$0xf]  ;;  %v4355_v1 = vld [vmem:[#allocation2 + $0x128] sm:$0xf0] }
   0xd   :  { %v3638_v2 = vld [vmem:[#allocation2 + $0x258] sm:$0xf]  ;;  %v3479_v3 = vor.u32 %v4355_v1, %v3478_v0  ;;  %v4395_v4 = vld [vmem:[#allocation2 + $0x268] sm:$0xf0]  ;;  %v4353_v5 = vld [vmem:[#allocation2 + $0x11c] sm:$0xf] }
   0xe   :  { %v3480_v6 = vld [vmem:[#allocation2 + $0x12c] sm:$0xf0]  ;;  %v3639_v7 = vor.u32 %v4395_v4, %v3638_v2  ;;  %v4393_v9 = vld [vmem:[#allocation2 + $0x25c] sm:$0xf]  ;;  %v4350_v13 = vld [vmem:[#allocation2 + $0x100] sm:$0xf0] }
   0xf   :  { %v3483_v8 = vor.u32 %v4353_v5, %v3480_v6  ;;  %v3640_v10 = vld [vmem:[#allocation2 + $0x26c] sm:$0xf0]  ;;  %596 = vmatpush.bf16.msra.mxu0 %v3479_v3  ;;  %v4390_v15 = vld [vmem:[#allocation2 + $0x240] sm:$0xf0]  ;;  %v4348_v18 = vld [vmem:[#allocation2 + $0xf4] sm:$0xf] }
  0x10   :  { %v3458_v11 = vld [vmem:[#allocation2 + $0xf0] sm:$0xf]  ;;  %v3643_v12 = vor.u32 %v4393_v9, %v3640_v10  ;;  %610 = vmatpush.bf16.msra.mxu1 %v3639_v7  ;;  %v3460_v19 = vld [vmem:[#allocation2 + $0x104] sm:$0xf0]  ;;  %v4388_v20 = vld [vmem:[#allocation2 + $0x234] sm:$0xf] }
  0x11   :  { %v3618_v14 = vld [vmem:[#allocation2 + $0x230] sm:$0xf]  ;;  %624 = vmatpush.bf16.msra.mxu2 %v3483_v8  ;;  %v3459_v16 = vor.u32 %v4350_v13, %v3458_v11  ;;  %v3463_v21 = vor.u32 %v4348_v18, %v3460_v19  ;;  %v3620_v22 = vld [vmem:[#allocation2 + $0x244] sm:$0xf0]  ;;  %v4345_v24 = vld [vmem:[#allocation2 + $0xd8] sm:$0xf0] }
  0x12   :  { %v3619_v17 = vor.u32 %v4390_v15, %v3618_v14  ;;  %638 = vmatpush.bf16.msra.mxu3 %v3643_v12  ;;  %v3438_v23 = vld [vmem:[#allocation2 + $0xc8] sm:$0xf]  ;;  %v3623_v25 = vor.u32 %v4388_v20, %v3620_v22  ;;  %v4385_v27 = vld [vmem:[#allocation2 + $0x218] sm:$0xf0]  ;;  %v4343_v28 = vld [vmem:[#allocation2 + $0xcc] sm:$0xf] }
  0x13   :  { %v3598_v26 = vld [vmem:[#allocation2 + $0x208] sm:$0xf]  ;;  %597 = vmatpush.bf16.msra.mxu0 %v3459_v16  ;;  %v3439_v29 = vor.u32 %v4345_v24, %v3438_v23  ;;  %v3440_v30 = vld [vmem:[#allocation2 + $0xdc] sm:$0xf0]  ;;  %v4383_v31 = vld [vmem:[#allocation2 + $0x20c] sm:$0xf] }
  0x14   :  { %v3600_v32 = vld [vmem:[#allocation2 + $0x21c] sm:$0xf0]  ;;  %611 = vmatpush.bf16.msra.mxu1 %v3619_v17  ;;  %v3599_v33 = vor.u32 %v4385_v27, %v3598_v26  ;;  %v3443_v34 = vor.u32 %v4343_v28, %v3440_v30  ;;  %v4340_v36 = vld [vmem:[#allocation2 + $0xb0] sm:$0xf0]  ;;  %v4338_v40 = vld [vmem:[#allocation2 + $0xa4] sm:$0xf] }
  0x15   :  { %625 = vmatpush.bf16.msra.mxu2 %v3463_v21  ;;  %v3418_v35 = vld [vmem:[#allocation2 + $0xa0] sm:$0xf]  ;;  %v3603_v38 = vor.u32 %v4383_v31, %v3600_v32  ;;  %v4380_v39 = vld [vmem:[#allocation2 + $0x1f0] sm:$0xf0]  ;;  %v3420_v41 = vld [vmem:[#allocation2 + $0xb4] sm:$0xf0] }
  0x16   :  { %v3578_v37 = vld [vmem:[#allocation2 + $0x1e0] sm:$0xf]  ;;  %639 = vmatpush.bf16.msra.mxu3 %v3623_v25  ;;  %v4378_v42 = vld [vmem:[#allocation2 + $0x1e4] sm:$0xf]  ;;  %v3580_v43 = vld [vmem:[#allocation2 + $0x1f4] sm:$0xf0]  ;;  %v3419_v44 = vor.u32 %v4340_v36, %v3418_v35  ;;  %v3423_v46 = vor.u32 %v4338_v40, %v3420_v41 }
  0x17   :  { %598 = vmatpush.bf16.msra.mxu0 %v3439_v29  ;;  %v3579_v45 = vor.u32 %v4380_v39, %v3578_v37  ;;  %v3398_v47 = vld [vmem:[#allocation2 + $0x78] sm:$0xf]  ;;  %v4335_v48 = vld [vmem:[#allocation2 + $0x88] sm:$0xf0]  ;;  %v3583_v50 = vor.u32 %v4378_v42, %v3580_v43  ;;  %v4333_v52 = vld [vmem:[#allocation2 + $0x7c] sm:$0xf] }
  0x18   :  { %612 = vmatpush.bf16.msra.mxu1 %v3599_v33  ;;  %v3558_v49 = vld [vmem:[#allocation2 + $0x1b8] sm:$0xf]  ;;  %v4375_v51 = vld [vmem:[#allocation2 + $0x1c8] sm:$0xf0]  ;;  %v3400_v53 = vld [vmem:[#allocation2 + $0x8c] sm:$0xf0]  ;;  %v3399_v56 = vor.u32 %v4335_v48, %v3398_v47 }
  0x19   :  { %626 = vmatpush.bf16.msra.mxu2 %v3443_v34  ;;  %v4373_v54 = vld [vmem:[#allocation2 + $0x1bc] sm:$0xf]  ;;  %v3560_v55 = vld [vmem:[#allocation2 + $0x1cc] sm:$0xf0]  ;;  %v3559_v57 = vor.u32 %v4375_v51, %v3558_v49  ;;  %v3403_v58 = vor.u32 %v4333_v52, %v3400_v53  ;;  %v4330_v60 = vld [vmem:[#allocation2 + $0x60] sm:$0xf0] }
  0x1a   :  { %640 = vmatpush.bf16.msra.mxu3 %v3603_v38  ;;  %v3378_v59 = vld [vmem:[#allocation2 + $0x50] sm:$0xf]  ;;  %v3563_v62 = vor.u32 %v4373_v54, %v3560_v55  ;;  %v4370_v63 = vld [vmem:[#allocation2 + $0x1a0] sm:$0xf0]  ;;  %v4328_v0 = vld [vmem:[#allocation2 + $0x54] sm:$0xf] }
  0x1b   :  { %599 = vmatpush.bf16.msra.mxu0 %v3419_v44  ;;  %v3538_v61 = vld [vmem:[#allocation2 + $0x190] sm:$0xf]  ;;  %v3380_v1 = vld [vmem:[#allocation2 + $0x64] sm:$0xf0]  ;;  %v4368_v2 = vld [vmem:[#allocation2 + $0x194] sm:$0xf]  ;;  %v3379_v4 = vor.u32 %v4330_v60, %v3378_v59 }
  0x1c   :  { %613 = vmatpush.bf16.msra.mxu1 %v3579_v45  ;;  %v3540_v3 = vld [vmem:[#allocation2 + $0x1a4] sm:$0xf0]  ;;  %v3539_v5 = vor.u32 %v4370_v63, %v3538_v61  ;;  %v3383_v6 = vor.u32 %v4328_v0, %v3380_v1  ;;  %v4325_v8 = vld [vmem:[#allocation2 + $0x38] sm:$0xf0]  ;;  %v4323_v12 = vld [vmem:[#allocation2 + $0x2c] sm:$0xf] }
  0x1d   :  { %627 = vmatpush.bf16.msra.mxu2 %v3423_v46  ;;  %v3358_v7 = vld [vmem:[#allocation2 + $0x28] sm:$0xf]  ;;  %v3543_v10 = vor.u32 %v4368_v2, %v3540_v3  ;;  %v4365_v11 = vld [vmem:[#allocation2 + $0x178] sm:$0xf0]  ;;  %v3360_v13 = vld [vmem:[#allocation2 + $0x3c] sm:$0xf0] }
  0x1e   :  { %641 = vmatpush.bf16.msra.mxu3 %v3583_v50  ;;  %v3518_v9 = vld [vmem:[#allocation2 + $0x168] sm:$0xf]  ;;  %v4363_v14 = vld [vmem:[#allocation2 + $0x16c] sm:$0xf]  ;;  %v3520_v15 = vld [vmem:[#allocation2 + $0x17c] sm:$0xf0]  ;;  %v3359_v16 = vor.u32 %v4325_v8, %v3358_v7  ;;  %v3363_v20 = vor.u32 %v4323_v12, %v3360_v13 }
  0x1f   :  { %600 = vmatpush.bf16.msra.mxu0 %v3399_v56  ;;  %v3338_v17 = vld [vmem:[#allocation2] sm:$0xf]  ;;  %v4320_v18 = vld [vmem:[#allocation2 + $0x10] sm:$0xf0]  ;;  %v3519_v19 = vor.u32 %v4365_v11, %v3518_v9  ;;  %v4318_v23 = vld [vmem:[#allocation2 + $0x4] sm:$0xf]  ;;  %v3523_v24 = vor.u32 %v4363_v14, %v3520_v15 }
  0x20   :  { %614 = vmatpush.bf16.msra.mxu1 %v3559_v57  ;;  %v3498_v21 = vld [vmem:[#allocation2 + $0x140] sm:$0xf]  ;;  %v4360_v22 = vld [vmem:[#allocation2 + $0x150] sm:$0xf0]  ;;  %v3340_v25 = vld [vmem:[#allocation2 + $0x14] sm:$0xf0]  ;;  %v3339_v31 = vor.u32 %v4320_v18, %v3338_v17 }
  0x21   :  { %628 = vmatpush.bf16.msra.mxu2 %v3403_v58  ;;  %v4358_v26 = vld [vmem:[#allocation2 + $0x144] sm:$0xf]  ;;  %v3500_v27 = vld [vmem:[#allocation2 + $0x154] sm:$0xf0]  ;;  %v3330_v28 = vld [vmem:[%s6399_s0] sm:$0xf]  ;;  %v3499_v35 = vor.u32 %v4360_v22, %v3498_v21  ;;  %v3343_v36 = vor.u32 %v4318_v23, %v3340_v25 }
  0x22   :  { %642 = vmatpush.bf16.msra.mxu3 %v3563_v62  ;;  %v4354_v29 = vld [vmem:[#allocation2 + $0x124] sm:$0xf]  ;;  %v3488_v30 = vld [vmem:[#allocation2 + $0x134] sm:$0xf0]  ;;  %v4317_v32 = vld [vmem:[%s6399_s0 + $0x4] sm:$0xf0]  ;;  %v3503_v39 = vor.u32 %v4358_v26, %v3500_v27 }
  0x23   :  { %601 = vmatpush.bf16.msra.mxu0 %v3379_v4  ;;  %v4394_v33 = vld [vmem:[#allocation2 + $0x264] sm:$0xf]  ;;  %v3648_v34 = vld [vmem:[#allocation2 + $0x274] sm:$0xf0]  ;;  %v3332_v38 = vld [vmem:[%s6399_s0 + $0x8] sm:$0xf0]  ;;  %v3491_v40 = vor.u32 %v4354_v29, %v3488_v30  ;;  %v4693_v44 = vor.u32 %v4317_v32, %v3330_v28 }
  0x24   :  { %615 = vmatpush.bf16.msra.mxu1 %v3539_v5  ;;  %v4316_v37 = vld [vmem:[%s6399_s0 + $0x4] sm:$0xf]  ;;  %v4349_v41 = vld [vmem:[#allocation2 + $0xfc] sm:$0xf]  ;;  %v3486_v42 = vld [vmem:[#allocation2 + $0x120] sm:$0xf]  ;;  %v3651_v45 = vor.u32 %v4394_v33, %v3648_v34 }
  0x25   :  { %629 = vmatpush.bf16.msra.mxu2 %v3383_v6  ;;  %v4356_v43 = vld [vmem:[#allocation2 + $0x130] sm:$0xf0]  ;;  %v3468_v46 = vld [vmem:[#allocation2 + $0x10c] sm:$0xf0]  ;;  %v3646_v47 = vld [vmem:[#allocation2 + $0x260] sm:$0xf]  ;;  %v4695_v49 = vor.u32 %v4316_v37, %v3332_v38 }
  0x26   :  { %643 = vmatpush.bf16.msra.mxu3 %v3543_v10  ;;  %v4396_v48 = vld [vmem:[#allocation2 + $0x270] sm:$0xf0]  ;;  %v4389_v50 = vld [vmem:[#allocation2 + $0x23c] sm:$0xf]  ;;  %v3628_v51 = vld [vmem:[#allocation2 + $0x24c] sm:$0xf0]  ;;  %v3487_v52 = vor.u32 %v4356_v43, %v3486_v42  ;;  %v3471_v53 = vor.u32 %v4349_v41, %v3468_v46 }
  0x27   :  { %602 = vmatpush.bf16.msra.mxu0 %v3359_v16  ;;  %v4344_v54 = vld [vmem:[#allocation2 + $0xd4] sm:$0xf]  ;;  %v3647_v55 = vor.u32 %v4396_v48, %v3646_v47  ;;  %v3466_v56 = vld [vmem:[#allocation2 + $0xf8] sm:$0xf]  ;;  %v4351_v57 = vld [vmem:[#allocation2 + $0x108] sm:$0xf0]  ;;  %v3631_v58 = vor.u32 %v4389_v50, %v3628_v51 }
  0x28   :  { %616 = vmatpush.bf16.msra.mxu1 %v3519_v19  ;;  %v3448_v59 = vld [vmem:[#allocation2 + $0xe4] sm:$0xf0]  ;;  %v3626_v60 = vld [vmem:[#allocation2 + $0x238] sm:$0xf]  ;;  %v4391_v61 = vld [vmem:[#allocation2 + $0x248] sm:$0xf0]  ;;  %v3467_v0 = vor.u32 %v4351_v57, %v3466_v56 }
  0x29   :  { %630 = vmatpush.bf16.msra.mxu2 %v3363_v20  ;;  %v4384_v62 = vld [vmem:[#allocation2 + $0x214] sm:$0xf]  ;;  %v3608_v63 = vld [vmem:[#allocation2 + $0x224] sm:$0xf0]  ;;  %v3451_v1 = vor.u32 %v4344_v54, %v3448_v59  ;;  %v4339_v2 = vld [vmem:[#allocation2 + $0xac] sm:$0xf]  ;;  %v3627_v3 = vor.u32 %v4391_v61, %v3626_v60 }
  0x2a   :  { %644 = vmatpush.bf16.msra.mxu3 %v3523_v24  ;;  %v3446_v4 = vld [vmem:[#allocation2 + $0xd0] sm:$0xf]  ;;  %v4346_v5 = vld [vmem:[#allocation2 + $0xe0] sm:$0xf0]  ;;  %v3611_v6 = vor.u32 %v4384_v62, %v3608_v63  ;;  %v3428_v7 = vld [vmem:[#allocation2 + $0xbc] sm:$0xf0] }
  0x2b   :  { %603 = vmatpush.bf16.msra.mxu0 %v3339_v31  ;;  %v3606_v8 = vld [vmem:[#allocation2 + $0x210] sm:$0xf]  ;;  %v4386_v9 = vld [vmem:[#allocation2 + $0x220] sm:$0xf0]  ;;  %v4379_v10 = vld [vmem:[#allocation2 + $0x1ec] sm:$0xf]  ;;  %v3447_v12 = vor.u32 %v4346_v5, %v3446_v4  ;;  %v3431_v13 = vor.u32 %v4339_v2, %v3428_v7 }
  0x2c   :  { %617 = vmatpush.bf16.msra.mxu1 %v3499_v35  ;;  %v3588_v11 = vld [vmem:[#allocation2 + $0x1fc] sm:$0xf0]  ;;  %v4334_v14 = vld [vmem:[#allocation2 + $0x84] sm:$0xf]  ;;  %v3607_v15 = vor.u32 %v4386_v9, %v3606_v8  ;;  %v3426_v16 = vld [vmem:[#allocation2 + $0xa8] sm:$0xf] }
  0x2d   :  { %631 = vmatpush.bf16.msra.mxu2 %v3343_v36  ;;  %v4341_v17 = vld [vmem:[#allocation2 + $0xb8] sm:$0xf0]  ;;  %v3591_v18 = vor.u32 %v4379_v10, %v3588_v11  ;;  %v3408_v19 = vld [vmem:[#allocation2 + $0x94] sm:$0xf0]  ;;  %v3586_v20 = vld [vmem:[#allocation2 + $0x1e8] sm:$0xf] }
  0x2e   :  { %645 = vmatpush.bf16.msra.mxu3 %v3503_v39  ;;  %604 = vmatmul.bf16.vlgmr.msra.gmra.mxu0 %v4693_v44  ;;  %v4381_v21 = vld [vmem:[#allocation2 + $0x1f8] sm:$0xf0]  ;;  %v4374_v22 = vld [vmem:[#allocation2 + $0x1c4] sm:$0xf]  ;;  %v3568_v23 = vld [vmem:[#allocation2 + $0x1d4] sm:$0xf0]  ;;  %v3427_v24 = vor.u32 %v4341_v17, %v3426_v16  ;;  %v3411_v25 = vor.u32 %v4334_v14, %v3408_v19 }
  0x2f   :  { %618 = vmatmul.bf16.vlgmr.msra.gmra.mxu1 %v4695_v49  ;;  %652 = vmatpush.bf16.msrb.mxu0 %v3487_v52  ;;  %v3587_v26 = vor.u32 %v4381_v21, %v3586_v20  ;;  %v3406_v27 = vld [vmem:[#allocation2 + $0x80] sm:$0xf]  ;;  %v4336_v28 = vld [vmem:[#allocation2 + $0x90] sm:$0xf0]  ;;  %v3571_v29 = vor.u32 %v4374_v22, %v3568_v23  ;;  %v4329_v30 = vld [vmem:[#allocation2 + $0x5c] sm:$0xf] }
  0x30   :  { %632 = vmatmul.bf16.vlgmr.msra.gmra.mxu2 %v4693_v44  ;;  %666 = vmatpush.bf16.msrb.mxu1 %v3647_v55  ;;  %v3388_v31 = vld [vmem:[#allocation2 + $0x6c] sm:$0xf0]  ;;  %v4369_v32 = vld [vmem:[#allocation2 + $0x19c] sm:$0xf]  ;;  %v3407_v34 = vor.u32 %v4336_v28, %v3406_v27  ;;  %v4324_v37 = vld [vmem:[#allocation2 + $0x34] sm:$0xf] }
  0x31   :  { %680 = vmatpush.bf16.msrb.mxu2 %v3491_v40  ;;  %646 = vmatmul.bf16.vlgmr.msra.gmra.mxu3 %v4695_v49  ;;  %v3548_v33 = vld [vmem:[#allocation2 + $0x1ac] sm:$0xf0]  ;;  %v3391_v35 = vor.u32 %v4329_v30, %v3388_v31  ;;  %v3368_v38 = vld [vmem:[#allocation2 + $0x44] sm:$0xf0]  ;;  %v4364_v39 = vld [vmem:[#allocation2 + $0x174] sm:$0xf] }
  0x32   :  { %694 = vmatpush.bf16.msrb.mxu3 %v3651_v45  ;;  %v3551_v36 = vor.u32 %v4369_v32, %v3548_v33  ;;  %v3528_v40 = vld [vmem:[#allocation2 + $0x184] sm:$0xf0]  ;;  %v3371_v41 = vor.u32 %v4324_v37, %v3368_v38  ;;  %v4319_v43 = vld [vmem:[#allocation2 + $0xc] sm:$0xf]  ;;  %v3348_v45 = vld [vmem:[#allocation2 + $0x1c] sm:$0xf0] }
  0x33   :  { %653 = vmatpush.bf16.msrb.mxu0 %v3467_v0  ;;  %v3531_v42 = vor.u32 %v4364_v39, %v3528_v40  ;;  %v4359_v46 = vld [vmem:[#allocation2 + $0x14c] sm:$0xf]  ;;  %v3508_v47 = vld [vmem:[#allocation2 + $0x15c] sm:$0xf0]  ;;  %v3351_v48 = vor.u32 %v4319_v43, %v3348_v45  ;;  %v4376_v52 = vld [vmem:[#allocation2 + $0x1d0] sm:$0xf0] }
  0x34   :  { %667 = vmatpush.bf16.msrb.mxu1 %v3627_v3  ;;  %v3511_v50 = vor.u32 %v4359_v46, %v3508_v47  ;;  %v3566_v51 = vld [vmem:[#allocation2 + $0x1c0] sm:$0xf]  ;;  %v4413_v55 = vld [vmem:[%s6402_s3 + $0x74] sm:$0xf0]  ;;  %v4412_v56 = vld [vmem:[%s6402_s3 + $0x74] sm:$0xf] }
  0x35   :  { %681 = vmatpush.bf16.msrb.mxu2 %v3471_v53  ;;  %v3718_v53 = vld [vmem:[%s6402_s3 + $0x70] sm:$0xf]  ;;  %v3567_v54 = vor.u32 %v4376_v52, %v3566_v51  ;;  %v3720_v57 = vld [vmem:[%s6402_s3 + $0x78] sm:$0xf0]  ;;  %v3386_v60 = vld [vmem:[#allocation2 + $0x58] sm:$0xf] }
  0x36   :  { %695 = vmatpush.bf16.msrb.mxu3 %v3631_v58  ;;  %v4715_v58 = vor.u32 %v4413_v55, %v3718_v53  ;;  %v4717_v59 = vor.u32 %v4412_v56, %v3720_v57  ;;  %v4331_v61 = vld [vmem:[#allocation2 + $0x68] sm:$0xf0]  ;;  %v3546_v63 = vld [vmem:[#allocation2 + $0x198] sm:$0xf]  ;;  %v4411_v3 = vld [vmem:[%s6402_s3 + $0x64] sm:$0xf0] }
  0x37   :  { %654 = vmatpush.bf16.msrb.mxu0 %v3447_v12  ;;  %v3387_v62 = vor.u32 %v4331_v61, %v3386_v60  ;;  %v4371_v0 = vld [vmem:[#allocation2 + $0x1a8] sm:$0xf0]  ;;  %v4410_v4 = vld [vmem:[%s6402_s3 + $0x64] sm:$0xf]  ;;  %v3366_v8 = vld [vmem:[#allocation2 + $0x30] sm:$0xf] }
  0x38   :  { %668 = vmatpush.bf16.msrb.mxu1 %v3607_v15  ;;  %6755 = vst [vmem:[#allocation8_spill] sm:$0xff] %v4715_v58  ;;  %v3547_v2 = vor.u32 %v4371_v0, %v3546_v63  ;;  %v3712_v5 = vld [vmem:[%s6402_s3 + $0x68] sm:$0xf0]  ;;  %v4326_v9 = vld [vmem:[#allocation2 + $0x40] sm:$0xf0] }
  0x39   :  { %682 = vmatpush.bf16.msrb.mxu2 %v3451_v1  ;;  %6756 = vst [vmem:[#allocation9_spill] sm:$0xff] %v4717_v59  ;;  %v3710_v1 = vld [vmem:[%s6402_s3 + $0x60] sm:$0xf]  ;;  %v4735_v7 = vor.u32 %v4410_v4, %v3712_v5  ;;  %v3367_v10 = vor.u32 %v4326_v9, %v3366_v8  ;;  %v3526_v11 = vld [vmem:[#allocation2 + $0x170] sm:$0xf] }
  0x3a   :  { %696 = vmatpush.bf16.msrb.mxu3 %v3611_v6  ;;  %v4733_v6 = vor.u32 %v4411_v3, %v3710_v1  ;;  %v4366_v12 = vld [vmem:[#allocation2 + $0x180] sm:$0xf0]  ;;  %v4409_v15 = vld [vmem:[%s6402_s3 + $0x54] sm:$0xf0]  ;;  %v4408_v16 = vld [vmem:[%s6402_s3 + $0x54] sm:$0xf] }
  0x3b   :  { %655 = vmatpush.bf16.msrb.mxu0 %v3427_v24  ;;  %6758 = vst [vmem:[#allocation11_spill] sm:$0xff] %v4735_v7  ;;  %v3527_v14 = vor.u32 %v4366_v12, %v3526_v11  ;;  %v3704_v17 = vld [vmem:[%s6402_s3 + $0x58] sm:$0xf0]  ;;  %v3346_v20 = vld [vmem:[#allocation2 + $0x8] sm:$0xf] }
  0x3c   :  { %669 = vmatpush.bf16.msrb.mxu1 %v3587_v26  ;;  %6757 = vst [vmem:[#allocation10_spill] sm:$0xff] %v4733_v6  ;;  %v4753_v19 = vor.u32 %v4408_v16, %v3704_v17  ;;  %v4321_v21 = vld [vmem:[#allocation2 + $0x18] sm:$0xf0]  ;;  %v3506_v23 = vld [vmem:[#allocation2 + $0x148] sm:$0xf] }
  0x3d   :  { %683 = vmatpush.bf16.msrb.mxu2 %v3431_v13  ;;  %v3702_v13 = vld [vmem:[%s6402_s3 + $0x50] sm:$0xf]  ;;  %v3347_v22 = vor.u32 %v4321_v21, %v3346_v20  ;;  %v4361_v24 = vld [vmem:[#allocation2 + $0x158] sm:$0xf0]  ;;  %v4407_v27 = vld [vmem:[%s6402_s3 + $0x44] sm:$0xf0] }
  0x3e   :  { %697 = vmatpush.bf16.msrb.mxu3 %v3591_v18  ;;  %v4751_v18 = vor.u32 %v4409_v15, %v3702_v13  ;;  %6760 = vst [vmem:[#allocation13_spill] sm:$0xff] %v4753_v19  ;;  %v3507_v26 = vor.u32 %v4361_v24, %v3506_v23  ;;  %v4406_v28 = vld [vmem:[%s6402_s3 + $0x44] sm:$0xf]  ;;  %v3686_v32 = vld [vmem:[%s6402_s3 + $0x30] sm:$0xf] }
  0x3f   :  { %656 = vmatpush.bf16.msrb.mxu0 %v3407_v34  ;;  %v4405_v33 = vld [vmem:[%s6402_s3 + $0x34] sm:$0xf0]  ;;  %v4404_v34 = vld [vmem:[%s6402_s3 + $0x34] sm:$0xf]  ;;  %v3678_v38 = vld [vmem:[%s6402_s3 + $0x20] sm:$0xf] }
  0x40   :  { %670 = vmatpush.bf16.msrb.mxu1 %v3567_v54  ;;  %6759 = vst [vmem:[#allocation12_spill] sm:$0xff] %v4751_v18  ;;  %v4403_v39 = vld [vmem:[%s6402_s3 + $0x24] sm:$0xf0]  ;;  %v4402_v40 = vld [vmem:[%s6402_s3 + $0x24] sm:$0xf] }
  0x41   :  { %684 = vmatpush.bf16.msrb.mxu2 %v3411_v25  ;;  %v3694_v25 = vld [vmem:[%s6402_s3 + $0x40] sm:$0xf]  ;;  %v3670_v45 = vld [vmem:[%s6402_s3 + $0x10] sm:$0xf]  ;;  %v4401_v46 = vld [vmem:[%s6402_s3 + $0x14] sm:$0xf0] }
  0x42   :  { %698 = vmatpush.bf16.msrb.mxu3 %v3571_v29  ;;  %v3696_v29 = vld [vmem:[%s6402_s3 + $0x48] sm:$0xf0]  ;;  %v4769_v30 = vor.u32 %v4407_v27, %v3694_v25  ;;  %v4400_v47 = vld [vmem:[%s6402_s3 + $0x14] sm:$0xf]  ;;  %v3662_v51 = vld [vmem:[%s6402_s3] sm:$0xf] }
  0x43   :  { %657 = vmatpush.bf16.msrb.mxu0 %v3387_v62  ;;  %v4771_v31 = vor.u32 %v4406_v28, %v3696_v29  ;;  %v4399_v53 = vld [vmem:[%s6402_s3 + $0x4] sm:$0xf0]  ;;  %v4398_v54 = vld [vmem:[%s6402_s3 + $0x4] sm:$0xf]  ;;  %v3664_v55 = vld [vmem:[%s6402_s3 + $0x8] sm:$0xf0] }
  0x44   :  { %671 = vmatpush.bf16.msrb.mxu1 %v3547_v2  ;;  %6761 = vst [vmem:[#allocation14_spill] sm:$0xff] %v4769_v30  ;;  %v4843_v56 = vor.u32 %v4399_v53, %v3662_v51  ;;  %v4845_v57 = vor.u32 %v4398_v54, %v3664_v55  ;;  %v4850_v60 = vld [vmem:[%s6401_s2] sm:$0x1f]  ;;  %v3494_v62 = vld [vmem:[#allocation2 + $0x128] sm:$0xf] }
  0x45   :  { %685 = vmatpush.bf16.msrb.mxu2 %v3391_v35  ;;  %6762 = vst [vmem:[#allocation15_spill] sm:$0xff] %v4771_v31  ;;  %v4785_v35 = vor.u32 %v4405_v33, %v3686_v32  ;;  %v160_v61 = vperm.slane %v4850_v60, 0  ;;  %v4357_v63 = vld [vmem:[#allocation2 + $0x138] sm:$0xf0]  ;;  %v3654_v0 = vld [vmem:[#allocation2 + $0x268] sm:$0xf] }
  0x46   :  { %699 = vmatpush.bf16.msrb.mxu3 %v3551_v36  ;;  %v3688_v36 = vld [vmem:[%s6402_s3 + $0x38] sm:$0xf0]  ;;  %6769 = vst [vmem:[#allocation22_spill] sm:$0xff] %v4843_v56  ;;  %v3495_v2 = vor.u32 %v4357_v63, %v3494_v62  ;;  %v3474_v4 = vld [vmem:[#allocation2 + $0x100] sm:$0xf]  ;;  %v161_v13 = vperm.slane %v4850_v60, 1 }
  0x47   :  { %658 = vmatpush.bf16.msrb.mxu0 %v3367_v10  ;;  %6763 = vst [vmem:[#allocation16_spill] sm:$0xff] %v4785_v35  ;;  %v4791_v37 = vor.u32 %v4404_v34, %v3688_v36  ;;  %v4397_v3 = vld [vmem:[#allocation2 + $0x278] sm:$0xf0]  ;;  %v4352_v5 = vld [vmem:[#allocation2 + $0x110] sm:$0xf0] }
  0x48   :  { %672 = vmatpush.bf16.msrb.mxu1 %v3527_v14  ;;  %6770 = vst [vmem:[#allocation23_spill] sm:$0xff] %v4845_v57  ;;  %v3655_v8 = vor.u32 %v4397_v3, %v3654_v0  ;;  %v3634_v9 = vld [vmem:[#allocation2 + $0x240] sm:$0xf]  ;;  %v4392_v10 = vld [vmem:[#allocation2 + $0x250] sm:$0xf0]  ;;  %v3475_v11 = vor.u32 %v4352_v5, %v3474_v4 }
  0x49   :  { %686 = vmatpush.bf16.msrb.mxu2 %v3371_v41  ;;  %6764 = vst [vmem:[#allocation17_spill] sm:$0xff] %v4791_v37  ;;  %v4804_v41 = vor.u32 %v4403_v39, %v3678_v38  ;;  %v3635_v14 = vor.u32 %v4392_v10, %v3634_v9  ;;  %v3454_v15 = vld [vmem:[#allocation2 + $0xd8] sm:$0xf]  ;;  %v4347_v16 = vld [vmem:[#allocation2 + $0xe8] sm:$0xf0] }
  0x4a   :  { %700 = vmatpush.bf16.msrb.mxu3 %v3531_v42  ;;  %v3680_v42 = vld [vmem:[%s6402_s3 + $0x28] sm:$0xf0]  ;;  %v3614_v17 = vld [vmem:[#allocation2 + $0x218] sm:$0xf]  ;;  %v3455_v23 = vor.u32 %v4347_v16, %v3454_v15  ;;  %v3434_v28 = vld [vmem:[#allocation2 + $0xb0] sm:$0xf] }
  0x4b   :  { %659 = vmatpush.bf16.msrb.mxu0 %v3347_v22  ;;  %6765 = vst [vmem:[#allocation18_spill] sm:$0xff] %v4804_v41  ;;  %v4809_v43 = vor.u32 %v4402_v40, %v3680_v42  ;;  %v4387_v20 = vld [vmem:[#allocation2 + $0x228] sm:$0xf0]  ;;  %v4342_v29 = vld [vmem:[#allocation2 + $0xc0] sm:$0xf0] }
  0x4c   :  { %673 = vmatpush.bf16.msrb.mxu1 %v3507_v26  ;;  %v3615_v27 = vor.u32 %v4387_v20, %v3614_v17  ;;  %v3594_v32 = vld [vmem:[#allocation2 + $0x1f0] sm:$0xf]  ;;  %v4382_v33 = vld [vmem:[#allocation2 + $0x200] sm:$0xf0]  ;;  %v3414_v36 = vld [vmem:[#allocation2 + $0x88] sm:$0xf]  ;;  %v3435_v39 = vor.u32 %v4342_v29, %v3434_v28 }
  0x4d   :  { %687 = vmatpush.bf16.msrb.mxu2 %v3351_v48  ;;  %6766 = vst [vmem:[#allocation19_spill] sm:$0xff] %v4809_v43  ;;  %v4822_v48 = vor.u32 %v4401_v46, %v3670_v45  ;;  %v4337_v40 = vld [vmem:[#allocation2 + $0x98] sm:$0xf0]  ;;  %v3574_v42 = vld [vmem:[#allocation2 + $0x1c8] sm:$0xf] }
  0x4e   :  { %701 = vmatpush.bf16.msrb.mxu3 %v3511_v50  ;;  %660 = vmatmul.bf16.vlgmr.msrb.gmra.mxu0 %v4693_v44  ;;  %v3672_v50 = vld [vmem:[%s6402_s3 + $0x18] sm:$0xf0]  ;;  %v3980_v51 = vld [vmem:[#allocation4 + $0x21c] sm:$0xf0]  ;;  %v4468_v0 = vld [vmem:[#allocation4 + $0x1b4] sm:$0xf] }
  0x4f   :  { %674 = vmatmul.bf16.vlgmr.msrb.gmra.mxu1 %v4695_v49  ;;  %6767 = vst [vmem:[#allocation20_spill] sm:$0xff] %v4822_v48  ;;  %v4830_v52 = vor.u32 %v4400_v47, %v3672_v50  ;;  %708 = vmatpush.bf16.msra.mxu0 %v3495_v2  ;;  %v4377_v45 = vld [vmem:[#allocation2 + $0x1d8] sm:$0xf0]  ;;  %v3595_v47 = vor.u32 %v4382_v33, %v3594_v32  ;;  %v4268_v55 = vld [vmem:[#allocation4 + $0x45c] sm:$0xf0] }
  0x50   :  { %688 = vmatmul.bf16.vlgmr.msrb.gmra.mxu2 %v4693_v44  ;;  %722 = vmatpush.bf16.msra.mxu1 %v3655_v8  ;;  %v4477_v50 = vld [vmem:[#allocation4 + $0x1fc] sm:$0xf]  ;;  %v3415_v2 = vor.u32 %v4337_v40, %v3414_v36  ;;  %v3575_v3 = vor.u32 %v4377_v45, %v3574_v42  ;;  %v3944_v4 = vld [vmem:[#allocation4 + $0x1d4] sm:$0xf0]  ;;  %v4540_v5 = vld [vmem:[#allocation4 + $0x3f4] sm:$0xf] }
  0x51   :  { %702 = vmatmul.bf16.vlgmr.msrb.gmra.mxu3 %v4695_v49  ;;  %1020 = vmatpush.bf16.msra.mxu2 %v4715_v58  ;;  %6768 = vst [vmem:[#allocation21_spill] sm:$0xff] %v4830_v52  ;;  %v4549_v53 = vld [vmem:[#allocation4 + $0x43c] sm:$0xf]  ;;  %v4856_v54 = vor.u32 %v4477_v50, %v3980_v51  ;;  %v4232_v8 = vld [vmem:[#allocation4 + $0x414] sm:$0xf0] }
  0x52   :  { %1034 = vmatpush.bf16.msra.mxu3 %v4717_v59  ;;  %v4861_v63 = vor.u32 %v4549_v53, %v4268_v55  ;;  %v3394_v10 = vld [vmem:[#allocation2 + $0x60] sm:$0xf]  ;;  %v4372_v17 = vld [vmem:[#allocation2 + $0x1b0] sm:$0xf0]  ;;  %v4459_v20 = vld [vmem:[#allocation4 + $0x16c] sm:$0xf] }
  0x53   :  { %709 = vmatpush.bf16.msra.mxu0 %v3475_v11  ;;  %6771 = vst [vmem:[#allocation24_spill] sm:$0xff] %v4856_v54  ;;  %v4332_v11 = vld [vmem:[#allocation2 + $0x70] sm:$0xf0]  ;;  %v3534_v33 = vld [vmem:[#allocation2 + $0x178] sm:$0xf] }
  0x54   :  { %723 = vmatpush.bf16.msra.mxu1 %v3635_v14  ;;  %6772 = vst [vmem:[#allocation25_spill] sm:$0xff] %v4861_v63  ;;  %v4867_v14 = vor.u32 %v4540_v5, %v4232_v8  ;;  %v4450_v36 = vld [vmem:[#allocation4 + $0x124] sm:$0xf]  ;;  %v4160_v42 = vld [vmem:[#allocation4 + $0x384] sm:$0xf0] }
  0x55   :  { %1021 = vmatpush.bf16.msra.mxu2 %v4733_v6  ;;  %v4522_v40 = vld [vmem:[#allocation4 + $0x364] sm:$0xf]  ;;  %v4441_v55 = vld [vmem:[#allocation4 + $0xdc] sm:$0xf] }
  0x56   :  { %1035 = vmatpush.bf16.msra.mxu3 %v4735_v7  ;;  %6774 = vst [vmem:[#allocation27_spill] sm:$0xff] %v4867_v14  ;;  %v4322_v51 = vld [vmem:[#allocation2 + $0x20] sm:$0xf0]  ;;  %v4882_v53 = vor.u32 %v4522_v40, %v4160_v42  ;;  %v4553_v8 = vld [vmem:[#allocation4 + $0x458] sm:$0xf0] }
  0x57   :  { %710 = vmatpush.bf16.msra.mxu0 %v3455_v23  ;;  %v4463_v40 = vld [vmem:[#allocation4 + $0x188] sm:$0xf0] }
  0x58   :  { %724 = vmatpush.bf16.msra.mxu1 %v3615_v27  ;;  %v4327_v27 = vld [vmem:[#allocation2 + $0x48] sm:$0xf0]  ;;  %6778 = vst [vmem:[#allocation31_spill] sm:$0xff] %v4882_v53 }
  0x59   :  { %1022 = vmatpush.bf16.msra.mxu2 %v4751_v18 }
  0x5a   :  { %1036 = vmatpush.bf16.msra.mxu3 %v4753_v19 }
  0x5b   :  { %711 = vmatpush.bf16.msra.mxu0 %v3435_v39  ;;  %v4367_v39 = vld [vmem:[#allocation2 + $0x188] sm:$0xf0] }
  0x5c   :  { %725 = vmatpush.bf16.msra.mxu1 %v3595_v47  ;;  %v3535_v50 = vor.u32 %v4367_v39, %v3534_v33  ;;  %v4088_v33 = vld [vmem:[#allocation4 + $0x2f4] sm:$0xf0]  ;;  %v3906_v39 = vld [vmem:[#allocation4 + $0x168] sm:$0xf] }
  0x5d   :  { %1023 = vmatpush.bf16.msra.mxu2 %v4769_v30 }
  0x5e   :  { %1037 = vmatpush.bf16.msra.mxu3 %v4771_v31 }
  0x5f   :  { %712 = vmatpush.bf16.msra.mxu0 %v3415_v2  ;;  %v3978_v2 = vld [vmem:[#allocation4 + $0x1f8] sm:$0xf] }
  0x60   :  { %726 = vmatpush.bf16.msra.mxu1 %v3575_v3  ;;  %v4481_v3 = vld [vmem:[#allocation4 + $0x218] sm:$0xf0] }
  0x61   :  { %1024 = vmatpush.bf16.msra.mxu2 %v4785_v35 }
  0x62   :  { %1038 = vmatpush.bf16.msra.mxu3 %v4791_v37 }
  0x65   :  { %1025 = vmatpush.bf16.msra.mxu2 %v4804_v41 }
  0x66   :  { %1039 = vmatpush.bf16.msra.mxu3 %v4809_v43 }
  0x69   :  { %1026 = vmatpush.bf16.msra.mxu2 %v4822_v48 }
  0x6a   :  { %1040 = vmatpush.bf16.msra.mxu3 %v4830_v52 }
  0x6d   :  { %1027 = vmatpush.bf16.msra.mxu2 %v4843_v56 }
  0x6e   :  { %1041 = vmatpush.bf16.msra.mxu3 %v4845_v57 }
  0x71   :  { %1834 = vmatpush.bf16.msrb.mxu2 %v4856_v54 }
  0x72   :  { %1848 = vmatpush.bf16.msrb.mxu3 %v4861_v63 }
  0x76   :  { %1849 = vmatpush.bf16.msrb.mxu3 %v4867_v14 }
  0xab   :  { %v605_v1 = vpop.f32.mrf.mxu0 }
  0xac   :  { %v606_v12 = vadd.f32 %v605_v1, %v160_v61  ;;  %v619_v21 = vpop.f32.mrf.mxu1 }
  0xae   :  { %v620_v24 = vadd.f32 %v619_v21, %v606_v12  ;;  %v3554_v12 = vld [vmem:[#allocation2 + $0x1a0] sm:$0xf]  ;;  %v3908_v21 = vld [vmem:[#allocation4 + $0x18c] sm:$0xf0] }
  0xaf   :  { %v4870_v28 = vor.u32 %v4459_v20, %v3908_v21  ;;  %v3555_v32 = vor.u32 %v4372_v17, %v3554_v12  ;;  %v4432_v12 = vld [vmem:[#allocation4 + $0x94] sm:$0xf]  ;;  %v4894_v21 = vor.u32 %v4481_v3, %v3978_v2  ;;  %v4445_v3 = vld [vmem:[#allocation4 + $0xf8] sm:$0xf0] }
  0xb1   :  { %6775 = vst [vmem:[#allocation28_spill] sm:$0xff] %v4870_v28  ;;  %727 = vmatpush.bf16.msra.mxu1 %v3555_v32  ;;  %v4504_v32 = vld [vmem:[#allocation4 + $0x2d4] sm:$0xf] }
  0xb2   :  { %6780 = vst [vmem:[#allocation33_spill] sm:$0xff] %v4894_v21  ;;  %v4910_v42 = vor.u32 %v4504_v32, %v4088_v33  ;;  %v4423_v32 = vld [vmem:[#allocation4 + $0x4c] sm:$0xf]  ;;  %v3764_v33 = vld [vmem:[#allocation4 + $0x6c] sm:$0xf0] }
  0xb3   :  { %v633_v22 = vpop.f32.mrf.mxu2  ;;  %v607_v38 = vpop.f32.mrf.mxu0 }
  0xb4   :  { %v634_v25 = vadd.f32 %v633_v22, %v161_v13  ;;  %v647_v26 = vpop.f32.mrf.mxu3  ;;  %v608_v62 = vadd.f32 %v607_v38, %v160_v61  ;;  %v4865_v61 = vor.u32 %v4468_v0, %v3944_v4  ;;  %v621_v15 = vpop.f32.mrf.mxu1  ;;  %v3872_v38 = vld [vmem:[#allocation4 + $0x144] sm:$0xf0]  ;;  %v3514_v0 = vld [vmem:[#allocation2 + $0x150] sm:$0xf]  ;;  %v4266_v4 = vld [vmem:[#allocation4 + $0x438] sm:$0xf] }
  0xb5   :  { %v4879_v47 = vor.u32 %v4450_v36, %v3872_v38  ;;  %728 = vmatpush.bf16.msra.mxu1 %v3535_v50  ;;  %6786 = vst [vmem:[#allocation39_spill] sm:$0xff] %v4910_v42  ;;  %v4916_v50 = vor.u32 %v4463_v40, %v3906_v39  ;;  %v4946_v40 = vor.u32 %v4423_v32, %v3764_v33  ;;  %v4274_v32 = vld [vmem:[#allocation4 + $0x440] sm:$0xf]  ;;  %v4554_v33 = vld [vmem:[#allocation4 + $0x460] sm:$0xf0] }
  0xb6   :  { %v648_v34 = vadd.f32 %v647_v26, %v634_v25  ;;  %6773 = vst [vmem:[#allocation26_spill] sm:$0xff] %v4865_v61  ;;  %v622_v22 = vadd.f32 %v621_v15, %v608_v62  ;;  %v4196_v25 = vld [vmem:[#allocation4 + $0x3cc] sm:$0xf0]  ;;  %v3374_v26 = vld [vmem:[#allocation2 + $0x38] sm:$0xf]  ;;  %1835 = vmatpush.bf16.msrb.mxu2 %v4865_v61 }
  0xb7   :  { %v3375_v45 = vor.u32 %v4327_v27, %v3374_v26  ;;  %6777 = vst [vmem:[#allocation30_spill] sm:$0xff] %v4879_v47  ;;  %v3836_v62 = vld [vmem:[#allocation4 + $0xfc] sm:$0xf0]  ;;  %v3800_v15 = vld [vmem:[#allocation4 + $0xb4] sm:$0xf0] }
  0xb8   :  { %v736_v46 = vpack.c.bf16 %v648_v34, %v620_v24  ;;  %v4531_v24 = vld [vmem:[#allocation4 + $0x3ac] sm:$0xf]  ;;  %v4544_v27 = vld [vmem:[#allocation4 + $0x410] sm:$0xf0]  ;;  %6787 = vst [vmem:[#allocation40_spill] sm:$0xff] %v4916_v50 }
  0xb9   :  { %v4873_v34 = vor.u32 %v4531_v24, %v4196_v25  ;;  %v3942_v24 = vld [vmem:[#allocation4 + $0x1b0] sm:$0xf]  ;;  %v4472_v25 = vld [vmem:[#allocation4 + $0x1d0] sm:$0xf0]  ;;  %6797 = vst [vmem:[#allocation50_spill] sm:$0xff] %v4946_v40 }
  0xba   :  { %742 = vst [vmem:[%s6406_s7] sm:$0xff] %v736_v46  ;;  %v3354_v46 = vld [vmem:[#allocation2 + $0x10] sm:$0xf]  ;;  %1836 = vmatpush.bf16.msrb.mxu2 %v4870_v28  ;;  %v4904_v36 = vor.u32 %v4472_v25, %v3942_v24  ;;  %v4427_v24 = vld [vmem:[#allocation4 + $0x68] sm:$0xf0]  ;;  %v4050_v25 = vld [vmem:[#allocation4 + $0x288] sm:$0xf] }
  0xbb   :  { %v635_v1 = vpop.f32.mrf.mxu2  ;;  %6776 = vst [vmem:[#allocation29_spill] sm:$0xff] %v4873_v34  ;;  %1850 = vmatpush.bf16.msrb.mxu3 %v4873_v34  ;;  %v3355_v5 = vor.u32 %v4322_v51, %v3354_v46  ;;  %v4535_v46 = vld [vmem:[#allocation4 + $0x3c8] sm:$0xf0] }
  0xbc   :  { %v636_v9 = vadd.f32 %v635_v1, %v161_v13  ;;  %v649_v16 = vpop.f32.mrf.mxu3  ;;  %v3395_v13 = vor.u32 %v4332_v11, %v3394_v10  ;;  %v4362_v1 = vld [vmem:[#allocation2 + $0x160] sm:$0xf0]  ;;  %v4513_v10 = vld [vmem:[#allocation4 + $0x31c] sm:$0xf]  ;;  %v4124_v11 = vld [vmem:[#allocation4 + $0x33c] sm:$0xf0] }
  0xbd   :  { %v3515_v20 = vor.u32 %v4362_v1, %v3514_v0  ;;  %v4898_v26 = vor.u32 %v4513_v10, %v4124_v11  ;;  %6784 = vst [vmem:[#allocation37_spill] sm:$0xff] %v4904_v36  ;;  %v4158_v0 = vld [vmem:[#allocation4 + $0x360] sm:$0xf]  ;;  %v4526_v1 = vld [vmem:[#allocation4 + $0x380] sm:$0xf0] }
  0xbe   :  { %v650_v23 = vadd.f32 %v649_v16, %v636_v9  ;;  %713 = vmatpush.bf16.msra.mxu0 %v3395_v13  ;;  %1837 = vmatpush.bf16.msrb.mxu2 %v4879_v47  ;;  %v4885_v9 = vor.u32 %v4441_v55, %v3836_v62  ;;  %v4230_v13 = vld [vmem:[#allocation4 + $0x3f0] sm:$0xf]  ;;  %v3870_v55 = vld [vmem:[#allocation4 + $0x120] sm:$0xf]  ;;  %v4454_v62 = vld [vmem:[#allocation4 + $0x140] sm:$0xf0] }
  0xbf   :  { %1851 = vmatpush.bf16.msrb.mxu3 %v4882_v53  ;;  %6782 = vst [vmem:[#allocation35_spill] sm:$0xff] %v4898_v26  ;;  %729 = vmatpush.bf16.msra.mxu1 %v3515_v20  ;;  %v4907_v38 = vor.u32 %v4544_v27, %v4230_v13  ;;  %v4923_v2 = vor.u32 %v4454_v62, %v3870_v55  ;;  %v3798_v11 = vld [vmem:[#allocation4 + $0x90] sm:$0xf]  ;;  %v4499_v27 = vld [vmem:[#allocation4 + $0x2a8] sm:$0xf0] }
  0xc0   :  { %v739_v29 = vpack.c.bf16 %v650_v23, %v622_v22  ;;  %6779 = vst [vmem:[#allocation32_spill] sm:$0xff] %v4885_v9  ;;  %v4896_v23 = vor.u32 %v4553_v8, %v4266_v4  ;;  %v4122_v4 = vld [vmem:[#allocation4 + $0x318] sm:$0xf]  ;;  %v4944_v39 = vor.u32 %v4499_v27, %v4050_v25  ;;  %v3726_v55 = vld [vmem:[#allocation4] sm:$0xf] }
  0xc1   :  { %v3658_v16 = vld [vmem:[%s6406_s7] sm:$0xf]  ;;  %6785 = vst [vmem:[#allocation38_spill] sm:$0xff] %v4907_v38 }
  0xc2   :  { %745 = vst [vmem:[%s6406_s7 + $0x14] sm:$0xff] %v739_v29  ;;  %714 = vmatpush.bf16.msra.mxu0 %v3375_v45  ;;  %1838 = vmatpush.bf16.msrb.mxu2 %v4885_v9  ;;  %v4901_v29 = vor.u32 %v4432_v12, %v3800_v15  ;;  %v4194_v45 = vld [vmem:[#allocation4 + $0x3a8] sm:$0xf]  ;;  %v4436_v12 = vld [vmem:[#allocation4 + $0xb0] sm:$0xf0] }
  0xc3   :  { %6781 = vst [vmem:[#allocation34_spill] sm:$0xff] %v4896_v23  ;;  %1820 = vmatpush.bf16.msrb.mxu1 %v4896_v23  ;;  %1852 = vmatpush.bf16.msrb.mxu3 %v4898_v26  ;;  %v4919_v51 = vor.u32 %v4535_v46, %v4194_v45  ;;  %v4086_v15 = vld [vmem:[#allocation4 + $0x2d0] sm:$0xf]  ;;  %v4495_v45 = vld [vmem:[#allocation4 + $0x28c] sm:$0xf] }
  0xc4   :  { %6783 = vst [vmem:[#allocation36_spill] sm:$0xff] %v4901_v29  ;;  %730 = vmatmul.bf16.vlgmr.msra.gmra.mxu1 %v4695_v49  ;;  %v3834_v49 = vld [vmem:[#allocation4 + $0xd8] sm:$0xf]  ;;  %v4052_v46 = vld [vmem:[#allocation4 + $0x2ac] sm:$0xf0] }
  0xc5   :  { %6788 = vst [vmem:[#allocation41_spill] sm:$0xff] %v4919_v51  ;;  %v4929_v8 = vor.u32 %v4445_v3, %v3834_v49  ;;  %v4949_v62 = vor.u32 %v4495_v45, %v4052_v46  ;;  %v4490_v49 = vld [vmem:[#allocation4 + $0x260] sm:$0xf0]  ;;  %v4965_v46 = vor.u32 %v4554_v33, %v4274_v32  ;;  %v4469_v32 = vld [vmem:[#allocation4 + $0x1bc] sm:$0xf] }
  0xc6   :  { %715 = vmatpush.bf16.msra.mxu0 %v3355_v5  ;;  %1839 = vmatpush.bf16.msrb.mxu2 %v4901_v29  ;;  %6789 = vst [vmem:[#allocation42_spill] sm:$0xff] %v4923_v2  ;;  %v4517_v5 = vld [vmem:[#allocation4 + $0x338] sm:$0xf0]  ;;  %v4478_v45 = vld [vmem:[#allocation4 + $0x204] sm:$0xf] }
  0xc7   :  { %1821 = vmatpush.bf16.msrb.mxu1 %v4907_v38  ;;  %1853 = vmatpush.bf16.msrb.mxu3 %v4910_v42  ;;  %6791 = vst [vmem:[#allocation44_spill] sm:$0xff] %v4929_v8  ;;  %v4932_v10 = vor.u32 %v4517_v5, %v4122_v4  ;;  %v4414_v5 = vld [vmem:[#allocation4 + $0x4] sm:$0xf]  ;;  %v3952_v33 = vld [vmem:[#allocation4 + $0x1dc] sm:$0xf0] }
  0xc8   :  { %6796 = vst [vmem:[#allocation49_spill] sm:$0xff] %v4944_v39  ;;  %v4032_v42 = vld [vmem:[#allocation4 + $0x274] sm:$0xf0]  ;;  %v4471_v26 = vld [vmem:[#allocation4 + $0x1cc] sm:$0xf] }
  0xc9   :  { %v4558_v17 = vld [vmem:[%s6406_s7 + $0x10] sm:$0xf0]  ;;  %716 = vmatmul.bf16.vlgmr.msra.gmra.mxu0 %v4693_v44  ;;  %v4926_v44 = vor.u32 %v4526_v1, %v4158_v0  ;;  %6792 = vst [vmem:[#allocation45_spill] sm:$0xff] %v4932_v10  ;;  %v4418_v0 = vld [vmem:[#allocation4 + $0x20] sm:$0xf0] }
  0xca   :  { %v3659_v22 = vor.u32 %v4558_v17, %v3658_v16  ;;  %1806 = vmatpush.bf16.msrb.mxu0 %v4894_v21  ;;  %v4508_v16 = vld [vmem:[#allocation4 + $0x2f0] sm:$0xf0]  ;;  %v4935_v17 = vor.u32 %v4436_v12, %v3798_v11  ;;  %6798 = vst [vmem:[#allocation51_spill] sm:$0xff] %v4949_v62  ;;  %v4014_v1 = vld [vmem:[#allocation4 + $0x240] sm:$0xf]  ;;  %1840 = vmatpush.bf16.msrb.mxu2 %v4946_v40 }
  0xcb   :  { %1822 = vmatpush.bf16.msrb.mxu1 %v4919_v51  ;;  %6790 = vst [vmem:[#allocation43_spill] sm:$0xff] %v4926_v44  ;;  %v4938_v20 = vor.u32 %v4508_v16, %v4086_v15  ;;  %v4953_v3 = vor.u32 %v4418_v0, %v3726_v55  ;;  %v4955_v4 = vor.u32 %v4490_v49, %v4014_v1  ;;  %v3728_v11 = vld [vmem:[#allocation4 + $0x24] sm:$0xf0]  ;;  %v4486_v12 = vld [vmem:[#allocation4 + $0x244] sm:$0xf] }
  0xcc   :  { %1028 = vmatmul.bf16.vlgmr.msra.gmra.mxu2 %v3659_v22  ;;  %1042 = vmatmul.bf16.vlgmr.msra.gmra.mxu3 %v3659_v22  ;;  %6793 = vst [vmem:[#allocation46_spill] sm:$0xff] %v4935_v17  ;;  %v3762_v22 = vld [vmem:[#allocation4 + $0x48] sm:$0xf]  ;;  %v4958_v15 = vor.u32 %v4414_v5, %v3728_v11  ;;  %v4550_v0 = vld [vmem:[#allocation4 + $0x444] sm:$0xf] }
  0xcd   :  { %6794 = vst [vmem:[#allocation47_spill] sm:$0xff] %v4938_v20  ;;  %v4942_v13 = vor.u32 %v4427_v24, %v3762_v22  ;;  %1854 = vmatpush.bf16.msrb.mxu3 %v4949_v62  ;;  %v4016_v16 = vld [vmem:[#allocation4 + $0x264] sm:$0xf0]  ;;  %v3986_v22 = vld [vmem:[#allocation4 + $0x200] sm:$0xf] }
  0xce   :  { %1807 = vmatpush.bf16.msrb.mxu0 %v4904_v36  ;;  %6799 = vst [vmem:[#allocation52_spill] sm:$0xff] %v4953_v3  ;;  %v4482_v24 = vld [vmem:[#allocation4 + $0x220] sm:$0xf0]  ;;  %v4960_v25 = vor.u32 %v4486_v12, %v4016_v16  ;;  %v3988_v55 = vld [vmem:[#allocation4 + $0x224] sm:$0xf0]  ;;  %1841 = vmatpush.bf16.msrb.mxu2 %v4958_v15 }
  0xcf   :  { %1823 = vmatpush.bf16.msrb.mxu1 %v4926_v44  ;;  %6795 = vst [vmem:[#allocation48_spill] sm:$0xff] %v4942_v13  ;;  %v4962_v27 = vor.u32 %v4482_v24, %v3986_v22  ;;  %v4276_v1 = vld [vmem:[#allocation4 + $0x464] sm:$0xf0]  ;;  %v4969_v49 = vor.u32 %v4478_v45, %v3988_v55  ;;  %v3950_v11 = vld [vmem:[#allocation4 + $0x1b8] sm:$0xf]  ;;  %v4981_v55 = vor.u32 %v4469_v32, %v3952_v33 }
  0xd0   :  { %6800 = vst [vmem:[#allocation53_spill] sm:$0xff] %v4955_v4  ;;  %v4971_v5 = vor.u32 %v4550_v0, %v4276_v1  ;;  %v4473_v12 = vld [vmem:[#allocation4 + $0x1d8] sm:$0xf0]  ;;  %v4238_v16 = vld [vmem:[#allocation4 + $0x3f8] sm:$0xf] }
  0xd1   :  { %6801 = vst [vmem:[#allocation54_spill] sm:$0xff] %v4958_v15  ;;  %1855 = vmatpush.bf16.msrb.mxu3 %v4960_v25  ;;  %v4975_v22 = vor.u32 %v4473_v12, %v3950_v11  ;;  %v4545_v24 = vld [vmem:[#allocation4 + $0x418] sm:$0xf0]  ;;  %v4240_v1 = vld [vmem:[#allocation4 + $0x41c] sm:$0xf0] }
  0xd2   :  { %1808 = vmatpush.bf16.msrb.mxu0 %v4916_v50  ;;  %6802 = vst [vmem:[#allocation55_spill] sm:$0xff] %v4960_v25  ;;  %1890 = vmatpush.bf16.msra.mxu2 %v4969_v49  ;;  %v4979_v45 = vor.u32 %v4545_v24, %v4238_v16  ;;  %v4541_v0 = vld [vmem:[#allocation4 + $0x3fc] sm:$0xf]  ;;  %v3914_v15 = vld [vmem:[#allocation4 + $0x170] sm:$0xf] }
  0xd3   :  { %1824 = vmatpush.bf16.msrb.mxu1 %v4932_v10  ;;  %6803 = vst [vmem:[#allocation56_spill] sm:$0xff] %v4962_v27  ;;  %v4984_v25 = vor.u32 %v4541_v0, %v4240_v1  ;;  %v4464_v11 = vld [vmem:[#allocation4 + $0x190] sm:$0xf0]  ;;  %v4202_v12 = vld [vmem:[#allocation4 + $0x3b0] sm:$0xf] }
  0xd4   :  { %6804 = vst [vmem:[#allocation57_spill] sm:$0xff] %v4965_v46  ;;  %v4532_v62 = vld [vmem:[#allocation4 + $0x3b4] sm:$0xf]  ;;  %v4204_v16 = vld [vmem:[#allocation4 + $0x3d4] sm:$0xf0] }
  0xd5   :  { %6805 = vst [vmem:[#allocation58_spill] sm:$0xff] %v4969_v49  ;;  %1904 = vmatpush.bf16.msra.mxu3 %v4971_v5  ;;  %v4987_v49 = vor.u32 %v4464_v11, %v3914_v15  ;;  %v3878_v33 = vld [vmem:[#allocation4 + $0x128] sm:$0xf]  ;;  %v4455_v0 = vld [vmem:[#allocation4 + $0x148] sm:$0xf0] }
  0xd6   :  { %1809 = vmatpush.bf16.msrb.mxu0 %v4923_v2  ;;  %6806 = vst [vmem:[#allocation59_spill] sm:$0xff] %v4971_v5  ;;  %1891 = vmatpush.bf16.msra.mxu2 %v4981_v55  ;;  %v4166_v1 = vld [vmem:[#allocation4 + $0x368] sm:$0xf]  ;;  %v4996_v5 = vor.u32 %v4532_v62, %v4204_v16  ;;  %v3880_v15 = vld [vmem:[#allocation4 + $0x14c] sm:$0xf0]  ;;  %v162_v16 = vperm.slane %v4850_v60, 2 }
  0xd7   :  { %1825 = vmatpush.bf16.msrb.mxu1 %v4938_v20  ;;  %6807 = vst [vmem:[#allocation60_spill] sm:$0xff] %v4975_v22  ;;  %v4523_v11 = vld [vmem:[#allocation4 + $0x36c] sm:$0xf]  ;;  %v4168_v40 = vld [vmem:[#allocation4 + $0x38c] sm:$0xf0] }
  0xd8   :  { %6808 = vst [vmem:[#allocation61_spill] sm:$0xff] %v4979_v45 }
  0xd9   :  { %6809 = vst [vmem:[#allocation62_spill] sm:$0xff] %v4981_v55  ;;  %1905 = vmatpush.bf16.msra.mxu3 %v4984_v25  ;;  %v4999_v55 = vor.u32 %v4455_v0, %v3878_v33 }
  0xda   :  { %1810 = vmatpush.bf16.msrb.mxu0 %v4929_v8  ;;  %6810 = vst [vmem:[#allocation63_spill] sm:$0xff] %v4984_v25 }
  0xdb   :  { %1826 = vmatpush.bf16.msrb.mxu1 %v4944_v39  ;;  %6811 = vst [vmem:[#allocation64_spill] sm:$0xff] %v4987_v49  ;;  %v689_v39 = vpop.f32.mrf.mxu2 }
  0xdc   :  { %6814 = vst [vmem:[#allocation67_spill] sm:$0xff] %v4996_v5 }
  0xdd   :  { %6815 = vst [vmem:[#allocation68_spill] sm:$0xff] %v4999_v55  ;;  %1906 = vmatpush.bf16.msra.mxu3 %v4996_v5 }
  0xde   :  { %1811 = vmatpush.bf16.msrb.mxu0 %v4935_v17  ;;  %v4547_v17 = vld [vmem:[#allocation4 + $0x428] sm:$0xf0] }
  0xdf   :  { %1827 = vmatpush.bf16.msrb.mxu1 %v4955_v4  ;;  %v4460_v4 = vld [vmem:[#allocation4 + $0x174] sm:$0xf] }
  0xe2   :  { %1812 = vmatpush.bf16.msrb.mxu0 %v4942_v13  ;;  %v4474_v13 = vld [vmem:[#allocation4 + $0x1e0] sm:$0xf0] }
  0xe3   :  { %1876 = vmatpush.bf16.msra.mxu1 %v4965_v46  ;;  %v4527_v46 = vld [vmem:[#allocation4 + $0x388] sm:$0xf0] }
  0xe6   :  { %1813 = vmatpush.bf16.msrb.mxu0 %v4953_v3  ;;  %v3916_v3 = vld [vmem:[#allocation4 + $0x194] sm:$0xf0] }
  0xe7   :  { %1877 = vmatpush.bf16.msra.mxu1 %v4979_v45  ;;  %v4993_v32 = vor.u32 %v4460_v4, %v3916_v3  ;;  %v163_v3 = vperm.slane %v4850_v60, 3  ;;  %v5004_v4 = vor.u32 %v4527_v46, %v4166_v1  ;;  %v661_v46 = vpop.f32.mrf.mxu0  ;;  %v3958_v45 = vld [vmem:[#allocation4 + $0x1c0] sm:$0xf] }
  0xe8   :  { %v662_v0 = vadd.f32 %v661_v46, %v162_v16  ;;  %v4130_v46 = vld [vmem:[#allocation4 + $0x320] sm:$0xf] }
  0xe9   :  { %6813 = vst [vmem:[#allocation66_spill] sm:$0xff] %v4993_v32  ;;  %1892 = vmatpush.bf16.msra.mxu2 %v4993_v32  ;;  %v690_v33 = vadd.f32 %v689_v39, %v163_v3 }
  0xea   :  { %1862 = vmatpush.bf16.msra.mxu0 %v4962_v27  ;;  %v4536_v27 = vld [vmem:[#allocation4 + $0x3d0] sm:$0xf0]  ;;  %6816 = vst [vmem:[#allocation69_spill] sm:$0xff] %v5004_v4 }
  0xeb   :  { %v4991_v24 = vor.u32 %v4536_v27, %v4202_v12  ;;  %v5009_v27 = vor.u32 %v4523_v11, %v4168_v40  ;;  %v703_v12 = vpop.f32.mrf.mxu3 }
  0xec   :  { %v704_v1 = vadd.f32 %v703_v12, %v690_v33  ;;  %v3842_v12 = vld [vmem:[#allocation4 + $0xe0] sm:$0xf]  ;;  %v4446_v33 = vld [vmem:[#allocation4 + $0x100] sm:$0xf0] }
  0xed   :  { %6812 = vst [vmem:[#allocation65_spill] sm:$0xff] %v4991_v24  ;;  %1878 = vmatpush.bf16.msra.mxu1 %v4991_v24  ;;  %1907 = vmatpush.bf16.msra.mxu3 %v5009_v27 }
  0xee   :  { %1863 = vmatpush.bf16.msra.mxu0 %v4975_v22  ;;  %v4451_v22 = vld [vmem:[#allocation4 + $0x12c] sm:$0xf]  ;;  %6818 = vst [vmem:[#allocation71_spill] sm:$0xff] %v5009_v27 }
  0xef   :  { %v5006_v62 = vor.u32 %v4451_v22, %v3880_v15  ;;  %v675_v22 = vpop.f32.mrf.mxu1  ;;  %v691_v15 = vpop.f32.mrf.mxu2 }
  0xf0   :  { %v676_v5 = vadd.f32 %v675_v22, %v662_v0  ;;  %v692_v11 = vadd.f32 %v691_v15, %v163_v3  ;;  %v663_v60 = vpop.f32.mrf.mxu0  ;;  %v4518_v3 = vld [vmem:[#allocation4 + $0x340] sm:$0xf0]  ;;  %v3844_v22 = vld [vmem:[#allocation4 + $0x104] sm:$0xf0] }
  0xf1   :  { %6817 = vst [vmem:[#allocation70_spill] sm:$0xff] %v5006_v62  ;;  %1879 = vmatpush.bf16.msra.mxu1 %v5004_v4  ;;  %1893 = vmatpush.bf16.msra.mxu2 %v5006_v62  ;;  %v664_v39 = vadd.f32 %v663_v60, %v162_v16  ;;  %v4442_v0 = vld [vmem:[#allocation4 + $0xe4] sm:$0xf]  ;;  %v4433_v60 = vld [vmem:[#allocation4 + $0x9c] sm:$0xf] }
  0xf2   :  { %1864 = vmatpush.bf16.msra.mxu0 %v4987_v49  ;;  %v737_v40 = vpack.c.bf16 %v704_v1, %v676_v5  ;;  %v5022_v5 = vor.u32 %v4446_v33, %v3842_v12  ;;  %v5024_v1 = vor.u32 %v4518_v3, %v4130_v46  ;;  %v5026_v15 = vor.u32 %v4442_v0, %v3844_v22  ;;  %v4514_v16 = vld [vmem:[#allocation4 + $0x324] sm:$0xf]  ;;  %v4505_v46 = vld [vmem:[#allocation4 + $0x2dc] sm:$0xf]  ;;  %v4096_v3 = vld [vmem:[#allocation4 + $0x2fc] sm:$0xf0] }
  0xf3   :  { %v705_v32 = vpop.f32.mrf.mxu3  ;;  %v5040_v0 = vor.u32 %v4505_v46, %v4096_v3  ;;  %v3770_v22 = vld [vmem:[#allocation4 + $0x50] sm:$0xf]  ;;  %v4496_v46 = vld [vmem:[#allocation4 + $0x294] sm:$0xf]  ;;  %v4060_v3 = vld [vmem:[#allocation4 + $0x2b4] sm:$0xf0] }
  0xf4   :  { %743 = vst [vmem:[%s6406_s7 + $0x8] sm:$0xff] %v737_v40 }
  0xf5   :  { %6819 = vst [vmem:[#allocation72_spill] sm:$0xff] %v5022_v5  ;;  %1880 = vmatpush.bf16.msra.mxu1 %v5024_v1  ;;  %1894 = vmatpush.bf16.msra.mxu2 %v5026_v15 }
  0xf6   :  { %1865 = vmatpush.bf16.msra.mxu0 %v4999_v55  ;;  %v706_v55 = vadd.f32 %v705_v32, %v692_v11  ;;  %6820 = vst [vmem:[#allocation73_spill] sm:$0xff] %v5024_v1  ;;  %v4132_v32 = vld [vmem:[#allocation4 + $0x344] sm:$0xf0]  ;;  %v4509_v11 = vld [vmem:[#allocation4 + $0x2f8] sm:$0xf0] }
  0xf7   :  { %v677_v4 = vpop.f32.mrf.mxu1  ;;  %6821 = vst [vmem:[#allocation74_spill] sm:$0xff] %v5026_v15  ;;  %v3996_v15 = vld [vmem:[#allocation4 + $0x22c] sm:$0xf0]  ;;  %v4551_v1 = vld [vmem:[#allocation4 + $0x44c] sm:$0xf] }
  0xf8   :  { %v678_v62 = vadd.f32 %v677_v4, %v664_v39  ;;  %v3806_v4 = vld [vmem:[#allocation4 + $0x98] sm:$0xf]  ;;  %v3808_v39 = vld [vmem:[#allocation4 + $0xbc] sm:$0xf0]  ;;  %6826 = vst [vmem:[#allocation79_spill] sm:$0xff] %v5040_v0 }
  0xf9   :  { %v5038_v33 = vor.u32 %v4433_v60, %v3808_v39 }
  0xfa   :  { %v740_v24 = vpack.c.bf16 %v706_v55, %v678_v62  ;;  %1866 = vmatpush.bf16.msra.mxu0 %v5022_v5  ;;  %v5029_v55 = vor.u32 %v4514_v16, %v4132_v32  ;;  %v4094_v62 = vld [vmem:[#allocation4 + $0x2d8] sm:$0xf]  ;;  %v4428_v16 = vld [vmem:[#allocation4 + $0x70] sm:$0xf0]  ;;  %v4058_v32 = vld [vmem:[#allocation4 + $0x290] sm:$0xf] }
  0xfb   :  { %v5036_v12 = vor.u32 %v4509_v11, %v4094_v62  ;;  %6825 = vst [vmem:[#allocation78_spill] sm:$0xff] %v5038_v33  ;;  %1895 = vmatpush.bf16.msra.mxu2 %v5038_v33  ;;  %v4424_v62 = vld [vmem:[#allocation4 + $0x54] sm:$0xf]  ;;  %v3772_v11 = vld [vmem:[#allocation4 + $0x74] sm:$0xf0] }
  0xfc   :  { %746 = vst [vmem:[%s6406_s7 + $0x1c] sm:$0xff] %v740_v24  ;;  %v4437_v24 = vld [vmem:[#allocation4 + $0xb8] sm:$0xf0]  ;;  %1908 = vmatpush.bf16.msra.mxu3 %v5029_v55  ;;  %v5050_v39 = vor.u32 %v4424_v62, %v3772_v11  ;;  %v3736_v62 = vld [vmem:[#allocation4 + $0x2c] sm:$0xf0] }
  0xfd   :  { %6822 = vst [vmem:[#allocation75_spill] sm:$0xff] %v5029_v55  ;;  %v5033_v40 = vor.u32 %v4437_v24, %v3806_v4  ;;  %1881 = vmatpush.bf16.msra.mxu1 %v5036_v12  ;;  %v5046_v4 = vor.u32 %v4428_v16, %v3770_v22  ;;  %v4500_v24 = vld [vmem:[#allocation4 + $0x2b0] sm:$0xf0]  ;;  %v4419_v22 = vld [vmem:[#allocation4 + $0x28] sm:$0xf0] }
  0xfe   :  { %6824 = vst [vmem:[#allocation77_spill] sm:$0xff] %v5036_v12  ;;  %v5048_v60 = vor.u32 %v4500_v24, %v4058_v32  ;;  %v5053_v12 = vor.u32 %v4496_v46, %v4060_v3  ;;  %v4022_v16 = vld [vmem:[#allocation4 + $0x248] sm:$0xf]  ;;  %v4491_v32 = vld [vmem:[#allocation4 + $0x268] sm:$0xf0] }
  0xff   :  { %6823 = vst [vmem:[#allocation76_spill] sm:$0xff] %v5033_v40  ;;  %1867 = vmatpush.bf16.msra.mxu0 %v5033_v40  ;;  %1896 = vmatpush.bf16.msra.mxu2 %v5050_v39  ;;  %v4415_v24 = vld [vmem:[#allocation4 + $0xc] sm:$0xf]  ;;  %v5060_v11 = vor.u32 %v4491_v32, %v4022_v16  ;;  %v4024_v3 = vld [vmem:[#allocation4 + $0x26c] sm:$0xf0] }
 0x100   :  { %1909 = vmatpush.bf16.msra.mxu3 %v5040_v0  ;;  %6827 = vst [vmem:[#allocation80_spill] sm:$0xff] %v5046_v4  ;;  %v3734_v0 = vld [vmem:[#allocation4 + $0x8] sm:$0xf]  ;;  %v5062_v40 = vor.u32 %v4415_v24, %v3736_v62  ;;  %v4487_v46 = vld [vmem:[#allocation4 + $0x24c] sm:$0xf] }
 0x101   :  { %6828 = vst [vmem:[#allocation81_spill] sm:$0xff] %v5048_v60  ;;  %1882 = vmatpush.bf16.msra.mxu1 %v5048_v60  ;;  %v5058_v33 = vor.u32 %v4419_v22, %v3734_v0  ;;  %v5065_v60 = vor.u32 %v4487_v46, %v4024_v3  ;;  %v764_v16 = vld [vmem:[%s6403_s4] sm:$0x3]  ;;  %v3994_v62 = vld [vmem:[#allocation4 + $0x208] sm:$0xf] }
 0x102   :  { %6829 = vst [vmem:[#allocation82_spill] sm:$0xff] %v5050_v39  ;;  %v5073_v32 = vperm.slane %v764_v16, 0  ;;  %v5075_v24 = vperm.slane %v764_v16, 1  ;;  %v4479_v39 = vld [vmem:[#allocation4 + $0x20c] sm:$0xf] }
 0x103   :  { %1868 = vmatpush.bf16.msra.mxu0 %v5046_v4  ;;  %6830 = vst [vmem:[#allocation83_spill] sm:$0xff] %v5053_v12  ;;  %1897 = vmatpush.bf16.msra.mxu2 %v5062_v40  ;;  %v4284_v5 = vld [vmem:[#allocation4 + $0x46c] sm:$0xf0] }
 0x104   :  { %1910 = vmatpush.bf16.msra.mxu3 %v5053_v12  ;;  %6831 = vst [vmem:[#allocation84_spill] sm:$0xff] %v5058_v33  ;;  %v4282_v12 = vld [vmem:[#allocation4 + $0x448] sm:$0xf] }
 0x105   :  { %6832 = vst [vmem:[#allocation85_spill] sm:$0xff] %v5060_v11  ;;  %1883 = vmatpush.bf16.msra.mxu1 %v5060_v11  ;;  %v4555_v11 = vld [vmem:[#allocation4 + $0x468] sm:$0xf0] }
 0x106   :  { %6833 = vst [vmem:[#allocation86_spill] sm:$0xff] %v5062_v40  ;;  %v5087_v25 = vor.u32 %v4555_v11, %v4282_v12  ;;  %v4465_v12 = vld [vmem:[#allocation4 + $0x198] sm:$0xf0] }
 0x107   :  { %1869 = vmatpush.bf16.msra.mxu0 %v5058_v33  ;;  %6834 = vst [vmem:[#allocation87_spill] sm:$0xff] %v5065_v60  ;;  %v4483_v33 = vld [vmem:[#allocation4 + $0x228] sm:$0xf0]  ;;  %v4537_v11 = vld [vmem:[#allocation4 + $0x3d8] sm:$0xf0] }
 0x108   :  { %1911 = vmatpush.bf16.msra.mxu3 %v5065_v60  ;;  %6835 = vst [vmem:[#allocation88_spill] sm:$0xff] %v5073_v32  ;;  %v5085_v49 = vor.u32 %v4483_v33, %v3994_v62  ;;  %v4461_v62 = vld [vmem:[#allocation4 + $0x17c] sm:$0xf] }
 0x109   :  { %6836 = vst [vmem:[#allocation89_spill] sm:$0xff] %v5075_v24 }
 0x10a   :  { %6837 = vst [vmem:[#allocation90_spill] sm:$0xff] %v5085_v49 }
 0x10b   :  { %6838 = vst [vmem:[#allocation91_spill] sm:$0xff] %v5087_v25 }
 0x14f   :  { %v1029_v0 = vpop.f32.mrf.mxu2  ;;  %v1043_v22 = vpop.f32.mrf.mxu3 }
 0x150   :  { %v1030_v40 = vadd.f32 %v1029_v0, %v5073_v32  ;;  %v1044_v60 = vadd.f32 %v1043_v22, %v5075_v24  ;;  %v5089_v0 = vor.u32 %v4479_v39, %v3996_v15  ;;  %v5091_v22 = vor.u32 %v4551_v1, %v4284_v5  ;;  %v3922_v15 = vld [vmem:[#allocation4 + $0x178] sm:$0xf] }
 0x151   :  { %v5099_v5 = vor.u32 %v4474_v13, %v3958_v45  ;;  %v4210_v39 = vld [vmem:[#allocation4 + $0x3b8] sm:$0xf]  ;;  %v5111_v13 = vor.u32 %v4465_v12, %v3922_v15 }
 0x152   :  { %6839 = vst [vmem:[#allocation92_spill] sm:$0xff] %v5089_v0  ;;  %v5113_v45 = vor.u32 %v4537_v11, %v4210_v39  ;;  %v3850_v39 = vld [vmem:[#allocation4 + $0xe8] sm:$0xf]  ;;  %v4447_v11 = vld [vmem:[#allocation4 + $0x108] sm:$0xf0] }
 0x153   :  { %6840 = vst [vmem:[#allocation93_spill] sm:$0xff] %v5091_v22 }
 0x154   :  { %6841 = vst [vmem:[#allocation94_spill] sm:$0xff] %v5099_v5 }
 0x155   :  { %6845 = vst [vmem:[#allocation98_spill] sm:$0xff] %v5111_v13 }
 0x156   :  { %6846 = vst [vmem:[#allocation99_spill] sm:$0xff] %v5113_v45 }
 0x157   :  { %v1031_v46 = vpop.f32.mrf.mxu2  ;;  %v1045_v3 = vpop.f32.mrf.mxu3 }
 0x158   :  { %v1032_v4 = vadd.f32 %v1031_v46, %v5073_v32  ;;  %v1046_v55 = vadd.f32 %v1045_v3, %v5075_v24  ;;  %v4246_v46 = vld [vmem:[#allocation4 + $0x400] sm:$0xf]  ;;  %v4546_v32 = vld [vmem:[#allocation4 + $0x420] sm:$0xf0]  ;;  %v4533_v24 = vld [vmem:[#allocation4 + $0x3bc] sm:$0xf] }
 0x159   :  { %v4470_v3 = vld [vmem:[#allocation4 + $0x1c4] sm:$0xf]  ;;  %v5101_v1 = vor.u32 %v4546_v32, %v4246_v46  ;;  %v3886_v32 = vld [vmem:[#allocation4 + $0x130] sm:$0xf]  ;;  %v4456_v46 = vld [vmem:[#allocation4 + $0x150] sm:$0xf0] }
 0x15a   :  { %v5081_v16 = vpack.c.bf16 %v1032_v4, %v1030_v40  ;;  %v5083_v27 = vpack.c.bf16 %v1046_v55, %v1044_v60  ;;  %v3960_v40 = vld [vmem:[#allocation4 + $0x1e4] sm:$0xf0]  ;;  %v4542_v55 = vld [vmem:[#allocation4 + $0x404] sm:$0xf]  ;;  %v5123_v15 = vor.u32 %v4456_v46, %v3886_v32  ;;  %v5135_v32 = vor.u32 %v4447_v11, %v3850_v39 }
 0x15b   :  { %v4248_v4 = vld [vmem:[#allocation4 + $0x424] sm:$0xf0]  ;;  %6842 = vst [vmem:[#allocation95_spill] sm:$0xff] %v5101_v1  ;;  %v5105_v33 = vor.u32 %v4470_v3, %v3960_v40  ;;  %v4506_v11 = vld [vmem:[#allocation4 + $0x2e4] sm:$0xf] }
 0x15c   :  { %1814 = vmatmul.bf16.vlgmr.msrb.gmra.mxu0 %v5081_v16  ;;  %1828 = vmatmul.bf16.vlgmr.msrb.gmra.mxu1 %v5083_v27  ;;  %v5107_v60 = vor.u32 %v4542_v55, %v4248_v4  ;;  %v4174_v55 = vld [vmem:[#allocation4 + $0x370] sm:$0xf]  ;;  %v4528_v4 = vld [vmem:[#allocation4 + $0x390] sm:$0xf0]  ;;  %6849 = vst [vmem:[#allocation102_spill] sm:$0xff] %v5123_v15 }
 0x15d   :  { %1842 = vmatmul.bf16.vlgmr.msrb.gmra.mxu2 %v5081_v16  ;;  %1856 = vmatmul.bf16.vlgmr.msrb.gmra.mxu3 %v5083_v27  ;;  %6843 = vst [vmem:[#allocation96_spill] sm:$0xff] %v5105_v33  ;;  %v5125_v12 = vor.u32 %v4528_v4, %v4174_v55  ;;  %v3814_v55 = vld [vmem:[#allocation4 + $0xa0] sm:$0xf]  ;;  %v4438_v4 = vld [vmem:[#allocation4 + $0xc0] sm:$0xf0] }
 0x15e   :  { %1918 = vmatpush.bf16.msrb.mxu0 %v5085_v49  ;;  %1932 = vmatpush.bf16.msrb.mxu1 %v5087_v25  ;;  %6844 = vst [vmem:[#allocation97_spill] sm:$0xff] %v5107_v60  ;;  %v3924_v49 = vld [vmem:[#allocation4 + $0x19c] sm:$0xf0]  ;;  %v3816_v39 = vld [vmem:[#allocation4 + $0xc4] sm:$0xf0] }
 0x15f   :  { %1946 = vmatpush.bf16.msrb.mxu2 %v5089_v0  ;;  %1960 = vmatpush.bf16.msrb.mxu3 %v5091_v22  ;;  %v4212_v25 = vld [vmem:[#allocation4 + $0x3dc] sm:$0xf0]  ;;  %v5117_v3 = vor.u32 %v4461_v62, %v3924_v49  ;;  %v4452_v22 = vld [vmem:[#allocation4 + $0x134] sm:$0xf]  ;;  %6850 = vst [vmem:[#allocation103_spill] sm:$0xff] %v5125_v12 }
 0x160   :  { %v5119_v40 = vor.u32 %v4533_v24, %v4212_v25  ;;  %v4524_v0 = vld [vmem:[#allocation4 + $0x374] sm:$0xf]  ;;  %v4138_v24 = vld [vmem:[#allocation4 + $0x328] sm:$0xf]  ;;  %v4519_v62 = vld [vmem:[#allocation4 + $0x348] sm:$0xf0] }
 0x161   :  { %6847 = vst [vmem:[#allocation100_spill] sm:$0xff] %v5117_v3  ;;  %v5137_v46 = vor.u32 %v4519_v62, %v4138_v24  ;;  %v4104_v24 = vld [vmem:[#allocation4 + $0x304] sm:$0xf0] }
 0x162   :  { %1919 = vmatpush.bf16.msrb.mxu0 %v5099_v5  ;;  %1933 = vmatpush.bf16.msrb.mxu1 %v5101_v1  ;;  %6848 = vst [vmem:[#allocation101_spill] sm:$0xff] %v5119_v40  ;;  %v3888_v5 = vld [vmem:[#allocation4 + $0x154] sm:$0xf0] }
 0x163   :  { %1947 = vmatpush.bf16.msrb.mxu2 %v5105_v33  ;;  %1961 = vmatpush.bf16.msrb.mxu3 %v5107_v60  ;;  %v4176_v1 = vld [vmem:[#allocation4 + $0x394] sm:$0xf0]  ;;  %v5129_v25 = vor.u32 %v4452_v22, %v3888_v5  ;;  %v4443_v60 = vld [vmem:[#allocation4 + $0xec] sm:$0xf]  ;;  %6853 = vst [vmem:[#allocation106_spill] sm:$0xff] %v5135_v32 }
 0x164   :  { %v5131_v49 = vor.u32 %v4524_v0, %v4176_v1  ;;  %v4515_v33 = vld [vmem:[#allocation4 + $0x32c] sm:$0xf]  ;;  %6854 = vst [vmem:[#allocation107_spill] sm:$0xff] %v5137_v46  ;;  %v4102_v5 = vld [vmem:[#allocation4 + $0x2e0] sm:$0xf] }
 0x165   :  { %6851 = vst [vmem:[#allocation104_spill] sm:$0xff] %v5129_v25  ;;  %v4510_v1 = vld [vmem:[#allocation4 + $0x300] sm:$0xf0] }
 0x166   :  { %1920 = vmatpush.bf16.msrb.mxu0 %v5111_v13  ;;  %1934 = vmatpush.bf16.msrb.mxu1 %v5113_v45  ;;  %6852 = vst [vmem:[#allocation105_spill] sm:$0xff] %v5131_v49  ;;  %v3852_v13 = vld [vmem:[#allocation4 + $0x10c] sm:$0xf0] }
 0x167   :  { %1948 = vmatpush.bf16.msrb.mxu2 %v5117_v3  ;;  %1962 = vmatpush.bf16.msrb.mxu3 %v5119_v40  ;;  %v4140_v45 = vld [vmem:[#allocation4 + $0x34c] sm:$0xf0]  ;;  %v5141_v0 = vor.u32 %v4443_v60, %v3852_v13  ;;  %v4434_v40 = vld [vmem:[#allocation4 + $0xa4] sm:$0xf]  ;;  %v5153_v60 = vor.u32 %v4510_v1, %v4102_v5  ;;  %v3778_v13 = vld [vmem:[#allocation4 + $0x58] sm:$0xf] }
 0x168   :  { %v5143_v22 = vor.u32 %v4515_v33, %v4140_v45  ;;  %v5151_v33 = vor.u32 %v4438_v4, %v3814_v55  ;;  %v4429_v45 = vld [vmem:[#allocation4 + $0x78] sm:$0xf0]  ;;  %v5157_v62 = vor.u32 %v4434_v40, %v3816_v39  ;;  %v3742_v55 = vld [vmem:[#allocation4 + $0x10] sm:$0xf]  ;;  %v4420_v1 = vld [vmem:[#allocation4 + $0x30] sm:$0xf0] }
 0x169   :  { %6855 = vst [vmem:[#allocation108_spill] sm:$0xff] %v5141_v0  ;;  %v4497_v3 = vld [vmem:[#allocation4 + $0x29c] sm:$0xf]  ;;  %v5163_v4 = vor.u32 %v4429_v45, %v3778_v13  ;;  %v4030_v40 = vld [vmem:[#allocation4 + $0x250] sm:$0xf] }
 0x16a   :  { %1921 = vmatpush.bf16.msrb.mxu0 %v5123_v15  ;;  %1935 = vmatpush.bf16.msrb.mxu1 %v5125_v12  ;;  %6856 = vst [vmem:[#allocation109_spill] sm:$0xff] %v5143_v22  ;;  %v4501_v12 = vld [vmem:[#allocation4 + $0x2b8] sm:$0xf0]  ;;  %v4492_v39 = vld [vmem:[#allocation4 + $0x270] sm:$0xf0] }
 0x16b   :  { %1949 = vmatpush.bf16.msrb.mxu2 %v5129_v25  ;;  %1963 = vmatpush.bf16.msrb.mxu3 %v5131_v49  ;;  %6857 = vst [vmem:[#allocation110_spill] sm:$0xff] %v5151_v33  ;;  %v5159_v49 = vor.u32 %v4506_v11, %v4104_v24  ;;  %v4066_v25 = vld [vmem:[#allocation4 + $0x298] sm:$0xf]  ;;  %v4425_v15 = vld [vmem:[#allocation4 + $0x5c] sm:$0xf] }
 0x16c   :  { %1870 = vmatmul.bf16.vlgmr.msra.gmra.mxu0 %v5081_v16  ;;  %1884 = vmatmul.bf16.vlgmr.msra.gmra.mxu1 %v5083_v27  ;;  %6858 = vst [vmem:[#allocation111_spill] sm:$0xff] %v5153_v60  ;;  %v5165_v5 = vor.u32 %v4501_v12, %v4066_v25  ;;  %v4484_v13 = vld [vmem:[#allocation4 + $0x230] sm:$0xf0]  ;;  %v4290_v45 = vld [vmem:[#allocation4 + $0x450] sm:$0xf] }
 0x16d   :  { %1898 = vmatmul.bf16.vlgmr.msra.gmra.mxu2 %v5081_v16  ;;  %1912 = vmatmul.bf16.vlgmr.msra.gmra.mxu3 %v5083_v27  ;;  %6859 = vst [vmem:[#allocation112_spill] sm:$0xff] %v5157_v62  ;;  %v4556_v12 = vld [vmem:[#allocation4 + $0x470] sm:$0xf0] }
 0x16e   :  { %1922 = vmatpush.bf16.msrb.mxu0 %v5135_v32  ;;  %1936 = vmatpush.bf16.msrb.mxu1 %v5137_v46  ;;  %6860 = vst [vmem:[#allocation113_spill] sm:$0xff] %v5159_v49  ;;  %v3780_v32 = vld [vmem:[#allocation4 + $0x7c] sm:$0xf0]  ;;  %v4480_v25 = vld [vmem:[#allocation4 + $0x214] sm:$0xf] }
 0x16f   :  { %1950 = vmatpush.bf16.msrb.mxu2 %v5141_v0  ;;  %1964 = vmatpush.bf16.msrb.mxu3 %v5143_v22  ;;  %v4068_v46 = vld [vmem:[#allocation4 + $0x2bc] sm:$0xf0]  ;;  %6861 = vst [vmem:[#allocation114_spill] sm:$0xff] %v5163_v4  ;;  %v5169_v11 = vor.u32 %v4425_v15, %v3780_v32  ;;  %v4416_v22 = vld [vmem:[#allocation4 + $0x14] sm:$0xf] }
 0x170   :  { %6862 = vst [vmem:[#allocation115_spill] sm:$0xff] %v5165_v5  ;;  %v5171_v24 = vor.u32 %v4497_v3, %v4068_v46  ;;  %v3744_v0 = vld [vmem:[#allocation4 + $0x34] sm:$0xf0]  ;;  %v4552_v3 = vld [vmem:[#allocation4 + $0x454] sm:$0xf] }
 0x171   :  { %6863 = vst [vmem:[#allocation116_spill] sm:$0xff] %v5169_v11  ;;  %v4004_v15 = vld [vmem:[#allocation4 + $0x234] sm:$0xf0]  ;;  %v5181_v46 = vor.u32 %v4416_v22, %v3744_v0  ;;  %v3968_v0 = vld [vmem:[#allocation4 + $0x1ec] sm:$0xf0] }
 0x172   :  { %1923 = vmatpush.bf16.msrb.mxu0 %v5151_v33  ;;  %1937 = vmatpush.bf16.msrb.mxu1 %v5153_v60  ;;  %6864 = vst [vmem:[#allocation117_spill] sm:$0xff] %v5171_v24  ;;  %v4488_v33 = vld [vmem:[#allocation4 + $0x254] sm:$0xf]  ;;  %v4002_v60 = vld [vmem:[#allocation4 + $0x210] sm:$0xf] }
 0x173   :  { %1951 = vmatpush.bf16.msrb.mxu2 %v5157_v62  ;;  %1965 = vmatpush.bf16.msrb.mxu3 %v5159_v49  ;;  %v5175_v62 = vor.u32 %v4420_v1, %v3742_v55  ;;  %v5177_v49 = vor.u32 %v4492_v39, %v4030_v40  ;;  %v4292_v32 = vld [vmem:[#allocation4 + $0x474] sm:$0xf0]  ;;  %6867 = vst [vmem:[#allocation120_spill] sm:$0xff] %v5181_v46  ;;  %v4475_v55 = vld [vmem:[#allocation4 + $0x1e8] sm:$0xf0] }
 0x174   :  { %v5183_v29 = vor.u32 %v4488_v33, %v4032_v42  ;;  %v5185_v20 = vor.u32 %v4484_v13, %v4002_v60  ;;  %v5189_v1 = vor.u32 %v4480_v25, %v4004_v15  ;;  %v5191_v40 = vor.u32 %v4552_v3, %v4292_v32  ;;  %v4254_v39 = vld [vmem:[#allocation4 + $0x408] sm:$0xf]  ;;  %v4543_v42 = vld [vmem:[#allocation4 + $0x40c] sm:$0xf]  ;;  %v4256_v22 = vld [vmem:[#allocation4 + $0x42c] sm:$0xf0] }
 0x175   :  { %6865 = vst [vmem:[#allocation118_spill] sm:$0xff] %v5175_v62  ;;  %v5201_v60 = vor.u32 %v4547_v17, %v4254_v39  ;;  %v3930_v13 = vld [vmem:[#allocation4 + $0x180] sm:$0xf]  ;;  %v5207_v25 = vor.u32 %v4543_v42, %v4256_v22  ;;  %v4538_v3 = vld [vmem:[#allocation4 + $0x3e0] sm:$0xf0] }
 0x176   :  { %1924 = vmatpush.bf16.msrb.mxu0 %v5163_v4  ;;  %1938 = vmatpush.bf16.msrb.mxu1 %v5165_v5  ;;  %6866 = vst [vmem:[#allocation119_spill] sm:$0xff] %v5177_v49  ;;  %v5187_v4 = vor.u32 %v4556_v12, %v4290_v45  ;;  %v3966_v5 = vld [vmem:[#allocation4 + $0x1c8] sm:$0xf]  ;;  %v4466_v45 = vld [vmem:[#allocation4 + $0x1a0] sm:$0xf0]  ;;  %v5205_v12 = vor.u32 %v4471_v26, %v3968_v0 }
 0x177   :  { %1952 = vmatpush.bf16.msrb.mxu2 %v5169_v11  ;;  %1966 = vmatpush.bf16.msrb.mxu3 %v5171_v24  ;;  %6868 = vst [vmem:[#allocation121_spill] sm:$0xff] %v5183_v29  ;;  %v5199_v33 = vor.u32 %v4475_v55, %v3966_v5  ;;  %v4218_v15 = vld [vmem:[#allocation4 + $0x3c0] sm:$0xf]  ;;  %v4462_v32 = vld [vmem:[#allocation4 + $0x184] sm:$0xf]  ;;  %v5215_v26 = vor.u32 %v4466_v45, %v3930_v13 }
 0x178   :  { %6869 = vst [vmem:[#allocation122_spill] sm:$0xff] %v5185_v20  ;;  %v3932_v5 = vld [vmem:[#allocation4 + $0x1a4] sm:$0xf0]  ;;  %v4534_v17 = vld [vmem:[#allocation4 + $0x3c4] sm:$0xf]  ;;  %v5217_v39 = vor.u32 %v4538_v3, %v4218_v15 }
 0x179   :  { %6870 = vst [vmem:[#allocation123_spill] sm:$0xff] %v5187_v4  ;;  %v4220_v55 = vld [vmem:[#allocation4 + $0x3e4] sm:$0xf0]  ;;  %v3894_v0 = vld [vmem:[#allocation4 + $0x138] sm:$0xf]  ;;  %v5221_v22 = vor.u32 %v4462_v32, %v3932_v5 }
 0x17a   :  { %6871 = vst [vmem:[#allocation124_spill] sm:$0xff] %v5189_v1  ;;  %1925 = vmatpush.bf16.msrb.mxu0 %v5175_v62  ;;  %1939 = vmatpush.bf16.msrb.mxu1 %v5177_v49  ;;  %v4457_v42 = vld [vmem:[#allocation4 + $0x158] sm:$0xf0]  ;;  %v3858_v15 = vld [vmem:[#allocation4 + $0xf0] sm:$0xf] }
 0x17b   :  { %6872 = vst [vmem:[#allocation125_spill] sm:$0xff] %v5191_v40  ;;  %1953 = vmatpush.bf16.msrb.mxu2 %v5181_v46  ;;  %1967 = vmatpush.bf16.msrb.mxu3 %v5183_v29  ;;  %v4525_v29 = vld [vmem:[#allocation4 + $0x37c] sm:$0xf]  ;;  %v5227_v13 = vor.u32 %v4457_v42, %v3894_v0  ;;  %v4448_v3 = vld [vmem:[#allocation4 + $0x110] sm:$0xf0] }
 0x17c   :  { %6873 = vst [vmem:[#allocation126_spill] sm:$0xff] %v5199_v33  ;;  %v3822_v0 = vld [vmem:[#allocation4 + $0xa8] sm:$0xf]  ;;  %v4439_v42 = vld [vmem:[#allocation4 + $0xc8] sm:$0xf0] }
 0x17d   :  { %6874 = vst [vmem:[#allocation127_spill] sm:$0xff] %v5201_v60  ;;  %1926 = vmatmul.bf16.vlgmr.msrb.gmra.mxu0 %v5081_v16  ;;  %1940 = vmatmul.bf16.vlgmr.msrb.gmra.mxu1 %v5083_v27  ;;  %v3974_v46 = vld [vmem:[#allocation4 + $0x1d0] sm:$0xf] }
 0x17e   :  { %1974 = vmatpush.bf16.msra.mxu0 %v5185_v20  ;;  %1988 = vmatpush.bf16.msra.mxu1 %v5187_v4  ;;  %6875 = vst [vmem:[#allocation128_spill] sm:$0xff] %v5205_v12  ;;  %v4529_v4 = vld [vmem:[#allocation4 + $0x398] sm:$0xf0]  ;;  %v4262_v49 = vld [vmem:[#allocation4 + $0x410] sm:$0xf] }
 0x17f   :  { %2002 = vmatpush.bf16.msra.mxu2 %v5189_v1  ;;  %2016 = vmatpush.bf16.msra.mxu3 %v5191_v40  ;;  %6876 = vst [vmem:[#allocation129_spill] sm:$0xff] %v5207_v25  ;;  %v5223_v40 = vor.u32 %v4534_v17, %v4220_v55  ;;  %v4182_v1 = vld [vmem:[#allocation4 + $0x378] sm:$0xf]  ;;  %v4453_v20 = vld [vmem:[#allocation4 + $0x13c] sm:$0xf] }
 0x180   :  { %1954 = vmatmul.bf16.vlgmr.msrb.gmra.mxu2 %v5081_v16  ;;  %1968 = vmatmul.bf16.vlgmr.msrb.gmra.mxu3 %v5083_v27  ;;  %6877 = vst [vmem:[#allocation130_spill] sm:$0xff] %v5215_v26  ;;  %v5229_v45 = vor.u32 %v4529_v4, %v4182_v1  ;;  %v4146_v17 = vld [vmem:[#allocation4 + $0x330] sm:$0xf]  ;;  %v4520_v55 = vld [vmem:[#allocation4 + $0x350] sm:$0xf0]  ;;  %v5239_v4 = vor.u32 %v4448_v3, %v3858_v15 }
 0x181   :  { %6878 = vst [vmem:[#allocation131_spill] sm:$0xff] %v5217_v39  ;;  %v5241_v1 = vor.u32 %v4520_v55, %v4146_v17  ;;  %v5251_v15 = vor.u32 %v4439_v42, %v3822_v0  ;;  %v3786_v17 = vld [vmem:[#allocation4 + $0x60] sm:$0xf]  ;;  %v4430_v55 = vld [vmem:[#allocation4 + $0x80] sm:$0xf0] }
 0x182   :  { %1975 = vmatpush.bf16.msra.mxu0 %v5199_v33  ;;  %1989 = vmatpush.bf16.msra.mxu1 %v5201_v60  ;;  %6879 = vst [vmem:[#allocation132_spill] sm:$0xff] %v5221_v22  ;;  %v3896_v33 = vld [vmem:[#allocation4 + $0x15c] sm:$0xf0]  ;;  %v5263_v0 = vor.u32 %v4430_v55, %v3786_v17  ;;  %v4010_v17 = vld [vmem:[#allocation4 + $0x218] sm:$0xf] }
 0x183   :  { %2003 = vmatpush.bf16.msra.mxu2 %v5205_v12  ;;  %2017 = vmatpush.bf16.msra.mxu3 %v5207_v25  ;;  %6880 = vst [vmem:[#allocation133_spill] sm:$0xff] %v5223_v40  ;;  %v4184_v60 = vld [vmem:[#allocation4 + $0x39c] sm:$0xf0]  ;;  %v5233_v32 = vor.u32 %v4453_v20, %v3896_v33  ;;  %v4444_v25 = vld [vmem:[#allocation4 + $0xf4] sm:$0xf] }
 0x184   :  { %6881 = vst [vmem:[#allocation134_spill] sm:$0xff] %v5227_v13  ;;  %v5235_v5 = vor.u32 %v4525_v29, %v4184_v60  ;;  %v4516_v12 = vld [vmem:[#allocation4 + $0x334] sm:$0xf]  ;;  %v4110_v33 = vld [vmem:[#allocation4 + $0x2e8] sm:$0xf] }
 0x185   :  { %6882 = vst [vmem:[#allocation135_spill] sm:$0xff] %v5229_v45  ;;  %v4511_v60 = vld [vmem:[#allocation4 + $0x308] sm:$0xf0]  ;;  %v4485_v55 = vld [vmem:[#allocation4 + $0x238] sm:$0xf0] }
 0x186   :  { %1976 = vmatpush.bf16.msra.mxu0 %v5215_v26  ;;  %1990 = vmatpush.bf16.msra.mxu1 %v5217_v39  ;;  %6883 = vst [vmem:[#allocation136_spill] sm:$0xff] %v5233_v32  ;;  %v3860_v26 = vld [vmem:[#allocation4 + $0x114] sm:$0xf0]  ;;  %v5253_v3 = vor.u32 %v4511_v60, %v4110_v33  ;;  %v4421_v60 = vld [vmem:[#allocation4 + $0x38] sm:$0xf0] }
 0x187   :  { %2004 = vmatpush.bf16.msra.mxu2 %v5221_v22  ;;  %2018 = vmatpush.bf16.msra.mxu3 %v5223_v40  ;;  %6884 = vst [vmem:[#allocation137_spill] sm:$0xff] %v5235_v5  ;;  %v4148_v39 = vld [vmem:[#allocation4 + $0x354] sm:$0xf0]  ;;  %v5245_v29 = vor.u32 %v4444_v25, %v3860_v26  ;;  %v4435_v40 = vld [vmem:[#allocation4 + $0xac] sm:$0xf] }
 0x188   :  { %6885 = vst [vmem:[#allocation138_spill] sm:$0xff] %v5239_v4  ;;  %v5247_v20 = vor.u32 %v4516_v12, %v4148_v39  ;;  %v4507_v22 = vld [vmem:[#allocation4 + $0x2ec] sm:$0xf]  ;;  %v4074_v26 = vld [vmem:[#allocation4 + $0x2a0] sm:$0xf] }
 0x189   :  { %6886 = vst [vmem:[#allocation139_spill] sm:$0xff] %v5241_v1  ;;  %v4502_v39 = vld [vmem:[#allocation4 + $0x2c0] sm:$0xf0]  ;;  %v3750_v33 = vld [vmem:[#allocation4 + $0x18] sm:$0xf] }
 0x18a   :  { %1977 = vmatpush.bf16.msra.mxu0 %v5227_v13  ;;  %1991 = vmatpush.bf16.msra.mxu1 %v5229_v45  ;;  %6887 = vst [vmem:[#allocation140_spill] sm:$0xff] %v5245_v29  ;;  %v3824_v13 = vld [vmem:[#allocation4 + $0xcc] sm:$0xf0]  ;;  %v5265_v42 = vor.u32 %v4502_v39, %v4074_v26  ;;  %v4298_v26 = vld [vmem:[#allocation4 + $0x458] sm:$0xf] }
 0x18b   :  { %2005 = vmatpush.bf16.msra.mxu2 %v5233_v32  ;;  %2019 = vmatpush.bf16.msra.mxu3 %v5235_v5  ;;  %6888 = vst [vmem:[#allocation141_spill] sm:$0xff] %v5247_v20  ;;  %v4112_v45 = vld [vmem:[#allocation4 + $0x30c] sm:$0xf0]  ;;  %v5257_v12 = vor.u32 %v4435_v40, %v3824_v13  ;;  %v4426_v5 = vld [vmem:[#allocation4 + $0x64] sm:$0xf] }
 0x18c   :  { %6889 = vst [vmem:[#allocation142_spill] sm:$0xff] %v5251_v15  ;;  %v5259_v25 = vor.u32 %v4507_v22, %v4112_v45  ;;  %v4498_v32 = vld [vmem:[#allocation4 + $0x2a4] sm:$0xf]  ;;  %v4038_v40 = vld [vmem:[#allocation4 + $0x258] sm:$0xf] }
 0x18d   :  { %6890 = vst [vmem:[#allocation143_spill] sm:$0xff] %v5253_v3  ;;  %v4493_v45 = vld [vmem:[#allocation4 + $0x278] sm:$0xf0] }
 0x18e   :  { %1978 = vmatpush.bf16.msra.mxu0 %v5239_v4  ;;  %1992 = vmatpush.bf16.msra.mxu1 %v5241_v1  ;;  %6891 = vst [vmem:[#allocation144_spill] sm:$0xff] %v5257_v12  ;;  %v3788_v4 = vld [vmem:[#allocation4 + $0x84] sm:$0xf0]  ;;  %v4557_v39 = vld [vmem:[#allocation4 + $0x478] sm:$0xf0] }
 0x18f   :  { %2006 = vmatpush.bf16.msra.mxu2 %v5245_v29  ;;  %2020 = vmatpush.bf16.msra.mxu3 %v5247_v20  ;;  %6892 = vst [vmem:[#allocation145_spill] sm:$0xff] %v5259_v25  ;;  %v4076_v1 = vld [vmem:[#allocation4 + $0x2c4] sm:$0xf0]  ;;  %v5269_v22 = vor.u32 %v4426_v5, %v3788_v4  ;;  %v4417_v20 = vld [vmem:[#allocation4 + $0x1c] sm:$0xf]  ;;  %v5285_v4 = vor.u32 %v4485_v55, %v4010_v17 }
 0x190   :  { %6893 = vst [vmem:[#allocation146_spill] sm:$0xff] %v5263_v0  ;;  %v5271_v13 = vor.u32 %v4498_v32, %v4076_v1  ;;  %v4489_v29 = vld [vmem:[#allocation4 + $0x25c] sm:$0xf]  ;;  %v5287_v1 = vor.u32 %v4557_v39, %v4298_v26  ;;  %v4226_v17 = vld [vmem:[#allocation4 + $0x3c8] sm:$0xf] }
 0x191   :  { %6894 = vst [vmem:[#allocation147_spill] sm:$0xff] %v5265_v42  ;;  %v4539_v55 = vld [vmem:[#allocation4 + $0x3e8] sm:$0xf0]  ;;  %v4458_v39 = vld [vmem:[#allocation4 + $0x160] sm:$0xf0] }
 0x192   :  { %1979 = vmatpush.bf16.msra.mxu0 %v5251_v15  ;;  %1993 = vmatpush.bf16.msra.mxu1 %v5253_v3  ;;  %6895 = vst [vmem:[#allocation148_spill] sm:$0xff] %v5269_v22  ;;  %v3752_v15 = vld [vmem:[#allocation4 + $0x3c] sm:$0xf0] }
 0x193   :  { %2007 = vmatpush.bf16.msra.mxu2 %v5257_v12  ;;  %2021 = vmatpush.bf16.msra.mxu3 %v5259_v25  ;;  %6896 = vst [vmem:[#allocation149_spill] sm:$0xff] %v5271_v13  ;;  %v4040_v3 = vld [vmem:[#allocation4 + $0x27c] sm:$0xf0]  ;;  %v5275_v12 = vor.u32 %v4421_v60, %v3750_v33  ;;  %v5277_v25 = vor.u32 %v4493_v45, %v4038_v40  ;;  %v717_v60 = vpop.f32.mrf.mxu0  ;;  %v731_v40 = vpop.f32.mrf.mxu1  ;;  %v4467_v45 = vld [vmem:[#allocation4 + $0x1a8] sm:$0xf0] }
 0x194   :  { %v5281_v32 = vor.u32 %v4417_v20, %v3752_v15  ;;  %v5283_v5 = vor.u32 %v4489_v29, %v4040_v3  ;;  %6901 = vst [vmem:[#allocation154_spill] sm:$0xff] %v5285_v4  ;;  %v3938_v15 = vld [vmem:[#allocation4 + $0x188] sm:$0xf]  ;;  %v4570_v3 = vld [vmem:[%s6401_s2] sm:$0x1f] }
 0x195   :  { %6897 = vst [vmem:[#allocation150_spill] sm:$0xff] %v5275_v12  ;;  %v164_v33 = vperm.slane %v4570_v3, 4  ;;  %v4190_v3 = vld [vmem:[#allocation4 + $0x380] sm:$0xf] }
 0x196   :  { %1980 = vmatpush.bf16.msra.mxu0 %v5263_v0  ;;  %1994 = vmatpush.bf16.msra.mxu1 %v5265_v42  ;;  %6898 = vst [vmem:[#allocation151_spill] sm:$0xff] %v5277_v25  ;;  %v4476_v0 = vld [vmem:[#allocation4 + $0x1f0] sm:$0xf0] }
 0x197   :  { %2008 = vmatpush.bf16.msra.mxu2 %v5269_v22  ;;  %2022 = vmatpush.bf16.msra.mxu3 %v5271_v13  ;;  %6899 = vst [vmem:[#allocation152_spill] sm:$0xff] %v5281_v32  ;;  %v4548_v42 = vld [vmem:[#allocation4 + $0x430] sm:$0xf0]  ;;  %v5295_v29 = vor.u32 %v4476_v0, %v3974_v46  ;;  %v5310_v46 = vor.u32 %v4467_v45, %v3938_v15  ;;  %v3866_v45 = vld [vmem:[#allocation4 + $0xf8] sm:$0xf] }
 0x198   :  { %6900 = vst [vmem:[#allocation153_spill] sm:$0xff] %v5283_v5  ;;  %v5297_v20 = vor.u32 %v4548_v42, %v4262_v49  ;;  %v718_v49 = vadd.f32 %v717_v60, %v164_v33  ;;  %v5312_v0 = vor.u32 %v4539_v55, %v4226_v17  ;;  %v3902_v42 = vld [vmem:[#allocation4 + $0x140] sm:$0xf]  ;;  %v4530_v60 = vld [vmem:[#allocation4 + $0x3a0] sm:$0xf0] }
 0x199   :  { %6902 = vst [vmem:[#allocation155_spill] sm:$0xff] %v5287_v1  ;;  %v5320_v15 = vor.u32 %v4530_v60, %v4190_v3  ;;  %v4449_v17 = vld [vmem:[#allocation4 + $0x118] sm:$0xf0]  ;;  %v4154_v55 = vld [vmem:[#allocation4 + $0x338] sm:$0xf] }
 0x19a   :  { %1981 = vmatpush.bf16.msra.mxu0 %v5275_v12  ;;  %1995 = vmatpush.bf16.msra.mxu1 %v5277_v25  ;;  %6903 = vst [vmem:[#allocation156_spill] sm:$0xff] %v5295_v29  ;;  %v732_v26 = vadd.f32 %v731_v40, %v718_v49  ;;  %v4521_v49 = vld [vmem:[#allocation4 + $0x358] sm:$0xf0]  ;;  %v4440_v3 = vld [vmem:[#allocation4 + $0xd0] sm:$0xf0] }
 0x19b   :  { %2009 = vmatpush.bf16.msra.mxu2 %v5281_v32  ;;  %2023 = vmatpush.bf16.msra.mxu3 %v5283_v5  ;;  %6904 = vst [vmem:[#allocation157_spill] sm:$0xff] %v5297_v20  ;;  %v719_v40 = vpop.f32.mrf.mxu0  ;;  %v4118_v60 = vld [vmem:[#allocation4 + $0x2f0] sm:$0xf] }
 0x19c   :  { %6905 = vst [vmem:[#allocation158_spill] sm:$0xff] %v5310_v46 }
 0x19d   :  { %1982 = vmatmul.bf16.vlgmr.msra.gmra.mxu0 %v5081_v16  ;;  %1996 = vmatmul.bf16.vlgmr.msra.gmra.mxu1 %v5083_v27  ;;  %6906 = vst [vmem:[#allocation159_spill] sm:$0xff] %v5312_v0 }
 0x19e   :  { %2030 = vmatpush.bf16.msrb.mxu0 %v5285_v4  ;;  %2044 = vmatpush.bf16.msrb.mxu1 %v5287_v1  ;;  %6908 = vst [vmem:[#allocation161_spill] sm:$0xff] %v5320_v15 }
 0x19f   :  { %2086 = vmatpush.bf16.msrb.mxu2 %v4715_v58  ;;  %2100 = vmatpush.bf16.msrb.mxu3 %v4717_v59  ;;  %v738_v59 = vpack.c.bf16 %v732_v26, %v732_v26  ;;  %v720_v26 = vadd.f32 %v719_v40, %v164_v33  ;;  %v4431_v40 = vld [vmem:[#allocation4 + $0x88] sm:$0xf0] }
 0x1a0   :  { %2010 = vmatmul.bf16.vlgmr.msra.gmra.mxu2 %v5081_v16  ;;  %2024 = vmatmul.bf16.vlgmr.msra.gmra.mxu3 %v5083_v27 }
 0x1a1   :  { %744 = vst [vmem:[%s6406_s7 + $0x10] sm:$0xf] %v738_v59  ;;  %v3830_v59 = vld [vmem:[#allocation4 + $0xb0] sm:$0xf] }
 0x1a2   :  { %2031 = vmatpush.bf16.msrb.mxu0 %v5295_v29  ;;  %2045 = vmatpush.bf16.msrb.mxu1 %v5297_v20  ;;  %v5318_v29 = vor.u32 %v4458_v39, %v3902_v42  ;;  %v5329_v42 = vor.u32 %v4449_v17, %v3866_v45  ;;  %v5331_v39 = vor.u32 %v4521_v49, %v4154_v55  ;;  %v3794_v45 = vld [vmem:[#allocation4 + $0x68] sm:$0xf]  ;;  %v3758_v49 = vld [vmem:[#allocation4 + $0x20] sm:$0xf] }
 0x1a3   :  { %2087 = vmatpush.bf16.msrb.mxu2 %v4733_v6  ;;  %2101 = vmatpush.bf16.msrb.mxu3 %v4735_v7  ;;  %v5340_v33 = vor.u32 %v4440_v3, %v3830_v59  ;;  %v4082_v17 = vld [vmem:[#allocation4 + $0x2a8] sm:$0xf]  ;;  %v4494_v59 = vld [vmem:[#allocation4 + $0x280] sm:$0xf0] }
 0x1a4   :  { %6907 = vst [vmem:[#allocation160_spill] sm:$0xff] %v5318_v29 }
 0x1a5   :  { %6909 = vst [vmem:[#allocation162_spill] sm:$0xff] %v5329_v42 }
 0x1a6   :  { %2032 = vmatpush.bf16.msrb.mxu0 %v5310_v46  ;;  %2046 = vmatpush.bf16.msrb.mxu1 %v5312_v0  ;;  %v733_v46 = vpop.f32.mrf.mxu1  ;;  %6910 = vst [vmem:[#allocation163_spill] sm:$0xff] %v5331_v39 }
 0x1a7   :  { %2088 = vmatpush.bf16.msrb.mxu2 %v4751_v18  ;;  %2102 = vmatpush.bf16.msrb.mxu3 %v4753_v19  ;;  %v734_v0 = vadd.f32 %v733_v46, %v720_v26  ;;  %v4512_v19 = vld [vmem:[#allocation4 + $0x310] sm:$0xf0]  ;;  %6911 = vst [vmem:[#allocation164_spill] sm:$0xff] %v5340_v33  ;;  %v4046_v26 = vld [vmem:[#allocation4 + $0x260] sm:$0xf] }
 0x1a8   :  { %v5342_v46 = vor.u32 %v4512_v19, %v4118_v60  ;;  %v4422_v19 = vld [vmem:[#allocation4 + $0x40] sm:$0xf0]  ;;  %v5358_v60 = vor.u32 %v4494_v59, %v4046_v26  ;;  %v6923_v59 = vld [vmem:[#allocation49_spill] sm:$0xff] }
 0x1a9   :  { %v741_v18 = vpack.c.bf16 %v734_v0, %v734_v0  ;;  %v4503_v0 = vld [vmem:[#allocation4 + $0x2c8] sm:$0xf0]  ;;  %v5356_v3 = vor.u32 %v4422_v19, %v3758_v49  ;;  %v6920_v49 = vld [vmem:[#allocation36_spill] sm:$0xff]  ;;  %v6921_v19 = vld [vmem:[#allocation39_spill] sm:$0xff] }
 0x1aa   :  { %2033 = vmatpush.bf16.msrb.mxu0 %v5318_v29  ;;  %2047 = vmatpush.bf16.msrb.mxu1 %v5320_v15  ;;  %6912 = vst [vmem:[#allocation165_spill] sm:$0xff] %v5342_v46  ;;  %v5350_v55 = vor.u32 %v4503_v0, %v4082_v17  ;;  %v6919_v0 = vld [vmem:[#allocation47_spill] sm:$0xff]  ;;  %v6922_v26 = vld [vmem:[#allocation48_spill] sm:$0xff] }
 0x1ab   :  { %2089 = vmatpush.bf16.msrb.mxu2 %v4769_v30  ;;  %2103 = vmatpush.bf16.msrb.mxu3 %v4771_v31  ;;  %747 = vst [vmem:[%s6406_s7 + $0x24] sm:$0xf] %v741_v18  ;;  %v5348_v18 = vor.u32 %v4431_v40, %v3794_v45  ;;  %v4559_v45 = vld [vmem:[%s6406_s7 + $0x14] sm:$0xf0]  ;;  %v4302_v40 = vld [vmem:[%s6406_s7 + $0x4] sm:$0xf] }
 0x1ac   :  { %6914 = vst [vmem:[#allocation167_spill] sm:$0xff] %v5350_v55  ;;  %v4303_v17 = vor.u32 %v4559_v45, %v4302_v40  ;;  %v6924_v45 = vld [vmem:[#allocation50_spill] sm:$0xff]  ;;  %v6925_v40 = vld [vmem:[#allocation51_spill] sm:$0xff] }
 0x1ad   :  { %6913 = vst [vmem:[#allocation166_spill] sm:$0xff] %v5348_v18 }
 0x1ae   :  { %2034 = vmatpush.bf16.msrb.mxu0 %v5329_v42  ;;  %2048 = vmatpush.bf16.msrb.mxu1 %v5331_v39  ;;  %6915 = vst [vmem:[#allocation168_spill] sm:$0xff] %v5356_v3 }
 0x1af   :  { %2090 = vmatpush.bf16.msrb.mxu2 %v4785_v35  ;;  %2104 = vmatpush.bf16.msrb.mxu3 %v4791_v37  ;;  %6916 = vst [vmem:[#allocation169_spill] sm:$0xff] %v5358_v60 }
 0x1b2   :  { %2035 = vmatpush.bf16.msrb.mxu0 %v5340_v33  ;;  %2049 = vmatpush.bf16.msrb.mxu1 %v5342_v46 }
 0x1b3   :  { %2091 = vmatpush.bf16.msrb.mxu2 %v4804_v41  ;;  %2105 = vmatpush.bf16.msrb.mxu3 %v4809_v43 }
 0x1b6   :  { %2036 = vmatpush.bf16.msrb.mxu0 %v5348_v18  ;;  %2050 = vmatpush.bf16.msrb.mxu1 %v5350_v55 }
 0x1b7   :  { %2092 = vmatpush.bf16.msrb.mxu2 %v4822_v48  ;;  %2106 = vmatpush.bf16.msrb.mxu3 %v4830_v52 }
 0x1ba   :  { %2037 = vmatpush.bf16.msrb.mxu0 %v5356_v3  ;;  %2051 = vmatpush.bf16.msrb.mxu1 %v5358_v60 }
 0x1bb   :  { %2093 = vmatpush.bf16.msrb.mxu2 %v4843_v56  ;;  %2107 = vmatpush.bf16.msrb.mxu3 %v4845_v57 }
 0x1bd   :  { %2038 = vmatmul.bf16.vlgmr.msrb.gmra.mxu0 %v5081_v16  ;;  %2052 = vmatmul.bf16.vlgmr.msrb.gmra.mxu1 %v5083_v27  ;;  %v6917_v27 = vld [vmem:[#allocation35_spill] sm:$0xff]  ;;  %v6918_v16 = vld [vmem:[#allocation46_spill] sm:$0xff] }
 0x1be   :  { %2116 = vmatpush.bf16.msra.mxu0 %v4894_v21  ;;  %2130 = vmatpush.bf16.msra.mxu1 %v4896_v23 }
 0x1bf   :  { %2094 = vmatmul.bf16.vlgmr.msrb.gmra.mxu2 %v4303_v17  ;;  %2108 = vmatmul.bf16.vlgmr.msrb.gmra.mxu3 %v4303_v17  ;;  %v6926_v17 = vld [vmem:[#allocation52_spill] sm:$0xff] }
 0x1c0   :  { %2144 = vmatpush.bf16.msra.mxu2 %v4856_v54  ;;  %2158 = vmatpush.bf16.msra.mxu3 %v4861_v63 }
 0x1c2   :  { %2117 = vmatpush.bf16.msra.mxu0 %v4904_v36  ;;  %2131 = vmatpush.bf16.msra.mxu1 %v4907_v38 }
 0x1c4   :  { %2145 = vmatpush.bf16.msra.mxu2 %v4865_v61  ;;  %2159 = vmatpush.bf16.msra.mxu3 %v4867_v14 }
 0x1c6   :  { %2118 = vmatpush.bf16.msra.mxu0 %v4916_v50  ;;  %2132 = vmatpush.bf16.msra.mxu1 %v4919_v51  ;;  %v6948_v51 = vld [vmem:[#allocation72_spill] sm:$0xff] }
 0x1c8   :  { %2146 = vmatpush.bf16.msra.mxu2 %v4870_v28  ;;  %2160 = vmatpush.bf16.msra.mxu3 %v4873_v34  ;;  %v6946_v28 = vld [vmem:[#allocation70_spill] sm:$0xff] }
 0x1ca   :  { %2119 = vmatpush.bf16.msra.mxu0 %v4923_v2  ;;  %2133 = vmatpush.bf16.msra.mxu1 %v4926_v44  ;;  %v6944_v44 = vld [vmem:[#allocation68_spill] sm:$0xff] }
 0x1cc   :  { %2147 = vmatpush.bf16.msra.mxu2 %v4879_v47  ;;  %2161 = vmatpush.bf16.msra.mxu3 %v4882_v53  ;;  %v6942_v53 = vld [vmem:[#allocation66_spill] sm:$0xff] }
 0x1ce   :  { %2120 = vmatpush.bf16.msra.mxu0 %v4929_v8  ;;  %2134 = vmatpush.bf16.msra.mxu1 %v4932_v10  ;;  %v6940_v10 = vld [vmem:[#allocation64_spill] sm:$0xff] }
 0x1d0   :  { %2148 = vmatpush.bf16.msra.mxu2 %v4885_v9  ;;  %2162 = vmatpush.bf16.msra.mxu3 %v6917_v27  ;;  %v6927_v9 = vld [vmem:[#allocation53_spill] sm:$0xff]  ;;  %v6928_v27 = vld [vmem:[#allocation56_spill] sm:$0xff] }
 0x1d2   :  { %2121 = vmatpush.bf16.msra.mxu0 %v6918_v16  ;;  %2135 = vmatpush.bf16.msra.mxu1 %v6919_v0  ;;  %v6929_v16 = vld [vmem:[#allocation57_spill] sm:$0xff]  ;;  %v6930_v0 = vld [vmem:[#allocation54_spill] sm:$0xff] }
 0x1d4   :  { %2149 = vmatpush.bf16.msra.mxu2 %v6920_v49  ;;  %2163 = vmatpush.bf16.msra.mxu3 %v6921_v19  ;;  %v6931_v49 = vld [vmem:[#allocation55_spill] sm:$0xff] }
 0x1d6   :  { %2122 = vmatpush.bf16.msra.mxu0 %v6922_v26  ;;  %2136 = vmatpush.bf16.msra.mxu1 %v6923_v59  ;;  %v5411_v59 = vld [vmem:[%s6405_s6] sm:$0xff] }
 0x1d7   :  { %v5423_v19 = vperm.slane %v5411_v59, 1 }
 0x1d8   :  { %2150 = vmatpush.bf16.msra.mxu2 %v6924_v45  ;;  %2164 = vmatpush.bf16.msra.mxu3 %v6925_v40  ;;  %v6932_v45 = vld [vmem:[#allocation58_spill] sm:$0xff]  ;;  %v6933_v40 = vld [vmem:[#allocation59_spill] sm:$0xff] }
 0x1d9   :  { %v1829_v26 = vpop.f32.mrf.mxu1  ;;  %6939 = vst [vmem:[#allocation171_spill] sm:$0xff] %v5423_v19 }
 0x1da   :  { %2123 = vmatpush.bf16.msra.mxu0 %v6926_v17  ;;  %2137 = vmatpush.bf16.msra.mxu1 %v6927_v9  ;;  %v1815_v17 = vpop.f32.mrf.mxu0  ;;  %v6934_v9 = vld [vmem:[#allocation60_spill] sm:$0xff] }
 0x1dc   :  { %2151 = vmatpush.bf16.msra.mxu2 %v6930_v0  ;;  %2165 = vmatpush.bf16.msra.mxu3 %v6931_v49  ;;  %v6937_v0 = vld [vmem:[#allocation62_spill] sm:$0xff]  ;;  %v6938_v49 = vld [vmem:[#allocation63_spill] sm:$0xff] }
 0x1de   :  { %2172 = vmatpush.bf16.msrb.mxu0 %v6928_v27  ;;  %2186 = vmatpush.bf16.msrb.mxu1 %v6929_v16  ;;  %v6935_v27 = vld [vmem:[#allocation61_spill] sm:$0xff]  ;;  %v5418_v16 = vperm.slane %v5411_v59, 0 }
 0x1e0   :  { %2200 = vmatpush.bf16.msrb.mxu2 %v6932_v45  ;;  %2214 = vmatpush.bf16.msrb.mxu3 %v6933_v40  ;;  %6936 = vst [vmem:[#allocation170_spill] sm:$0xff] %v5418_v16  ;;  %v6941_v45 = vld [vmem:[#allocation65_spill] sm:$0xff]  ;;  %v1816_v40 = vadd.f32 %v1815_v17, %v5418_v16  ;;  %v1843_v8 = vpop.f32.mrf.mxu2 }
 0x1e1   :  { %v1844_v47 = vadd.f32 %v1843_v8, %v5423_v19 }
 0x1e2   :  { %2173 = vmatpush.bf16.msrb.mxu0 %v6934_v9  ;;  %2187 = vmatpush.bf16.msrb.mxu1 %v6935_v27  ;;  %v1857_v9 = vpop.f32.mrf.mxu3  ;;  %v6943_v27 = vld [vmem:[#allocation67_spill] sm:$0xff]  ;;  %v1830_v2 = vadd.f32 %v1829_v26, %v1816_v40  ;;  %v6950_v26 = vld [vmem:[#allocation74_spill] sm:$0xff] }
 0x1e3   :  { %v1858_v34 = vadd.f32 %v1857_v9, %v1844_v47  ;;  %v6951_v47 = vld [vmem:[#allocation75_spill] sm:$0xff] }
 0x1e4   :  { %2201 = vmatpush.bf16.msrb.mxu2 %v6937_v0  ;;  %2215 = vmatpush.bf16.msrb.mxu3 %v6938_v49  ;;  %v1817_v0 = vpop.f32.mrf.mxu0  ;;  %v6945_v49 = vld [vmem:[#allocation69_spill] sm:$0xff] }
 0x1e5   :  { %v2058_v17 = vpack.c.bf16 %v1858_v34, %v1830_v2  ;;  %v1818_v8 = vadd.f32 %v1817_v0, %v5418_v16  ;;  %v6952_v34 = vld [vmem:[#allocation76_spill] sm:$0xff]  ;;  %v6953_v2 = vld [vmem:[#allocation77_spill] sm:$0xff]  ;;  %v6956_v0 = vld [vmem:[#allocation79_spill] sm:$0xff] }
 0x1e6   :  { %2174 = vmatpush.bf16.msrb.mxu0 %v6940_v10  ;;  %2188 = vmatpush.bf16.msrb.mxu1 %v6941_v45  ;;  %v1831_v10 = vpop.f32.mrf.mxu1  ;;  %v6947_v45 = vld [vmem:[#allocation71_spill] sm:$0xff] }
 0x1e7   :  { %2068 = vst [vmem:[%s6407_s8] sm:$0xff] %v2058_v17  ;;  %v6955_v17 = vld [vmem:[#allocation78_spill] sm:$0xff] }
 0x1e8   :  { %2202 = vmatpush.bf16.msrb.mxu2 %v6942_v53  ;;  %2216 = vmatpush.bf16.msrb.mxu3 %v6943_v27  ;;  %v6949_v53 = vld [vmem:[#allocation73_spill] sm:$0xff] }
 0x1ea   :  { %2175 = vmatpush.bf16.msrb.mxu0 %v6944_v44  ;;  %2189 = vmatpush.bf16.msrb.mxu1 %v6945_v49  ;;  %v1845_v44 = vpop.f32.mrf.mxu2  ;;  %v1859_v49 = vpop.f32.mrf.mxu3 }
 0x1eb   :  { %v1846_v9 = vadd.f32 %v1845_v44, %v5423_v19  ;;  %v6958_v44 = vld [vmem:[#allocation80_spill] sm:$0xff]  ;;  %v6959_v19 = vld [vmem:[#allocation81_spill] sm:$0xff] }
 0x1ec   :  { %2203 = vmatpush.bf16.msrb.mxu2 %v6946_v28  ;;  %2217 = vmatpush.bf16.msrb.mxu3 %v6947_v45  ;;  %v1871_v40 = vpop.f32.mrf.mxu0  ;;  %v5447_v45 = vperm.slane %v5411_v59, 2 }
 0x1ee   :  { %2176 = vmatpush.bf16.msrb.mxu0 %v6948_v51  ;;  %2190 = vmatpush.bf16.msrb.mxu1 %v6949_v53  ;;  %v1832_v53 = vadd.f32 %v1831_v10, %v1818_v8  ;;  %v1860_v51 = vadd.f32 %v1859_v49, %v1846_v9  ;;  %6954 = vst [vmem:[#allocation172_spill] sm:$0xff] %v5447_v45  ;;  %v6960_v9 = vld [vmem:[#allocation82_spill] sm:$0xff] }
 0x1ef   :  { %v1872_v10 = vadd.f32 %v1871_v40, %v5447_v45 }
 0x1f0   :  { %2204 = vmatpush.bf16.msrb.mxu2 %v6950_v26  ;;  %2218 = vmatpush.bf16.msrb.mxu3 %v6951_v47  ;;  %v2063_v28 = vpack.c.bf16 %v1860_v51, %v1832_v53  ;;  %v1885_v26 = vpop.f32.mrf.mxu1  ;;  %v5452_v47 = vperm.slane %v5411_v59, 3  ;;  %v6962_v51 = vld [vmem:[#allocation84_spill] sm:$0xff] }
 0x1f2   :  { %2177 = vmatpush.bf16.msrb.mxu0 %v6952_v34  ;;  %2191 = vmatpush.bf16.msrb.mxu1 %v6953_v2  ;;  %6957 = vst [vmem:[#allocation173_spill] sm:$0xff] %v5452_v47  ;;  %v1899_v49 = vpop.f32.mrf.mxu2  ;;  %v1913_v8 = vpop.f32.mrf.mxu3  ;;  %v6964_v34 = vld [vmem:[#allocation86_spill] sm:$0xff] }
 0x1f3   :  { %2073 = vst [vmem:[%s6407_s8 + $0xb4] sm:$0xff] %v2063_v28  ;;  %v1900_v53 = vadd.f32 %v1899_v49, %v5452_v47  ;;  %v6965_v28 = vld [vmem:[#allocation87_spill] sm:$0xff] }
 0x1f4   :  { %2205 = vmatpush.bf16.msrb.mxu2 %v6955_v17  ;;  %2219 = vmatpush.bf16.msrb.mxu3 %v6956_v0  ;;  %v6961_v0 = vld [vmem:[#allocation83_spill] sm:$0xff]  ;;  %v6963_v17 = vld [vmem:[#allocation85_spill] sm:$0xff] }
 0x1f5   :  { %v1914_v2 = vadd.f32 %v1913_v8, %v1900_v53  ;;  %v5473_v8 = vperm.slane %v5411_v59, 4 }
 0x1f6   :  { %2178 = vmatpush.bf16.msrb.mxu0 %v6958_v44  ;;  %2192 = vmatpush.bf16.msrb.mxu1 %v6959_v19  ;;  %v1873_v44 = vpop.f32.mrf.mxu0  ;;  %v1886_v19 = vadd.f32 %v1885_v26, %v1872_v10 }
 0x1f8   :  { %2206 = vmatpush.bf16.msrb.mxu2 %v6960_v9  ;;  %2220 = vmatpush.bf16.msrb.mxu3 %v6961_v0  ;;  %v2059_v40 = vpack.c.bf16 %v1914_v2, %v1886_v19  ;;  %v1874_v0 = vadd.f32 %v1873_v44, %v5447_v45  ;;  %v1887_v9 = vpop.f32.mrf.mxu1  ;;  %v5479_v19 = vperm.slane %v5411_v59, 5 }
 0x1fa   :  { %2179 = vmatpush.bf16.msrb.mxu0 %v6962_v51  ;;  %2193 = vmatpush.bf16.msrb.mxu1 %v6963_v17  ;;  %2069 = vst [vmem:[%s6407_s8 + $0x8] sm:$0xff] %v2059_v40  ;;  %v1901_v49 = vpop.f32.mrf.mxu2  ;;  %v1915_v27 = vpop.f32.mrf.mxu3  ;;  %v1888_v17 = vadd.f32 %v1887_v9, %v1874_v0 }
 0x1fb   :  { %v1902_v51 = vadd.f32 %v1901_v49, %v5452_v47  ;;  %6966 = vst [vmem:[#allocation174_spill] sm:$0xff] %v5479_v19 }
 0x1fc   :  { %2207 = vmatpush.bf16.msrb.mxu2 %v6964_v34  ;;  %2221 = vmatpush.bf16.msrb.mxu3 %v6965_v28 }
 0x1fd   :  { %v1916_v16 = vadd.f32 %v1915_v27, %v1902_v51 }
 0x1fe   :  { %v1927_v26 = vpop.f32.mrf.mxu0 }
 0x1ff   :  { %v2064_v10 = vpack.c.bf16 %v1916_v16, %v1888_v17  ;;  %v1928_v2 = vadd.f32 %v1927_v26, %v5473_v8 }
 0x200   :  { %v1941_v44 = vpop.f32.mrf.mxu1 }
 0x201   :  { %2074 = vst [vmem:[%s6407_s8 + $0xbc] sm:$0xff] %v2064_v10  ;;  %v1942_v27 = vadd.f32 %v1941_v44, %v1928_v2  ;;  %v5492_v44 = vperm.slane %v5411_v59, 6 }
 0x203   :  { %v1955_v53 = vpop.f32.mrf.mxu2  ;;  %v1969_v40 = vpop.f32.mrf.mxu3 }
 0x204   :  { %v1956_v0 = vadd.f32 %v1955_v53, %v5479_v19  ;;  %v5495_v53 = vperm.slane %v5411_v59, 7 }
 0x206   :  { %v1970_v9 = vadd.f32 %v1969_v40, %v1956_v0  ;;  %v1929_v16 = vpop.f32.mrf.mxu0 }
 0x207   :  { %v1930_v51 = vadd.f32 %v1929_v16, %v5473_v8 }
 0x208   :  { %v2060_v17 = vpack.c.bf16 %v1970_v9, %v1942_v27  ;;  %v1943_v28 = vpop.f32.mrf.mxu1 }
 0x209   :  { %v1944_v34 = vadd.f32 %v1943_v28, %v1930_v51 }
 0x20a   :  { %2070 = vst [vmem:[%s6407_s8 + $0x10] sm:$0xff] %v2060_v17 }
 0x20b   :  { %v1957_v49 = vpop.f32.mrf.mxu2  ;;  %v1971_v26 = vpop.f32.mrf.mxu3 }
 0x20c   :  { %v1958_v10 = vadd.f32 %v1957_v49, %v5479_v19 }
 0x20e   :  { %v1972_v47 = vadd.f32 %v1971_v26, %v1958_v10 }
 0x210   :  { %v2065_v45 = vpack.c.bf16 %v1972_v47, %v1944_v34 }
 0x212   :  { %2075 = vst [vmem:[%s6407_s8 + $0xc4] sm:$0xff] %v2065_v45 }
 0x21a   :  { %v1983_v2 = vpop.f32.mrf.mxu0  ;;  %v1997_v0 = vpop.f32.mrf.mxu1 }
 0x21b   :  { %v1984_v40 = vadd.f32 %v1983_v2, %v5492_v44 }
 0x21d   :  { %v1998_v16 = vadd.f32 %v1997_v0, %v1984_v40  ;;  %v5510_v40 = vld [vmem:[%s6405_s6 + $0x8] ss:$0 sm:$0xff] }
 0x222   :  { %v1985_v34 = vpop.f32.mrf.mxu0  ;;  %v1999_v49 = vpop.f32.mrf.mxu1 }
 0x223   :  { %v2011_v27 = vpop.f32.mrf.mxu2  ;;  %v2025_v9 = vpop.f32.mrf.mxu3  ;;  %v1986_v45 = vadd.f32 %v1985_v34, %v5492_v44 }
 0x224   :  { %v2012_v28 = vadd.f32 %v2011_v27, %v5495_v53 }
 0x225   :  { %v2000_v26 = vadd.f32 %v1999_v49, %v1986_v45 }
 0x226   :  { %v2026_v47 = vadd.f32 %v2025_v9, %v2012_v28 }
 0x228   :  { %v2061_v17 = vpack.c.bf16 %v2026_v47, %v1998_v16 }
 0x22a   :  { %2071 = vst [vmem:[%s6407_s8 + $0x18] sm:$0xff] %v2061_v17 }
 0x22b   :  { %v2013_v51 = vpop.f32.mrf.mxu2  ;;  %v2027_v10 = vpop.f32.mrf.mxu3 }
 0x22c   :  { %v2014_v59 = vadd.f32 %v2013_v51, %v5495_v53 }
 0x22e   :  { %v2028_v2 = vadd.f32 %v2027_v10, %v2014_v59 }
 0x230   :  { %v2066_v19 = vpack.c.bf16 %v2028_v2, %v2000_v26  ;;  %v6967_v26 = vld [vmem:[#allocation88_spill] sm:$0xff] }
 0x232   :  { %2076 = vst [vmem:[%s6407_s8 + $0xcc] sm:$0xff] %v2066_v19 }
 0x23a   :  { %v2039_v0 = vpop.f32.mrf.mxu0  ;;  %v2053_v27 = vpop.f32.mrf.mxu1 }
 0x23b   :  { %v2040_v9 = vadd.f32 %v5510_v40, %v2039_v0  ;;  %v6968_v0 = vld [vmem:[#allocation89_spill] sm:$0xff] }
 0x23d   :  { %v2054_v28 = vadd.f32 %v2053_v27, %v2040_v9 }
 0x23f   :  { %v2062_v16 = vpack.c.bf16 %v2054_v28, %v2054_v28 }
 0x241   :  { %2072 = vst [vmem:[%s6407_s8 + $0x20] sm:$0xf] %v2062_v16 }
 0x242   :  { %v2095_v47 = vpop.f32.mrf.mxu2  ;;  %v2109_v34 = vpop.f32.mrf.mxu3 }
 0x243   :  { %v2041_v17 = vpop.f32.mrf.mxu0  ;;  %v2055_v45 = vpop.f32.mrf.mxu1  ;;  %v2096_v2 = vadd.f32 %v2095_v47, %v6967_v26  ;;  %v2110_v27 = vadd.f32 %v2109_v34, %v6968_v0  ;;  %v6970_v47 = vld [vmem:[#allocation91_spill] sm:$0xff]  ;;  %v6971_v34 = vld [vmem:[#allocation92_spill] sm:$0xff] }
 0x244   :  { %v2042_v19 = vadd.f32 %v5510_v40, %v2041_v17 }
 0x246   :  { %v2056_v51 = vadd.f32 %v2055_v45, %v2042_v19  ;;  %v6969_v19 = vld [vmem:[#allocation90_spill] sm:$0xff]  ;;  %v6972_v45 = vld [vmem:[#allocation93_spill] sm:$0xff] }
 0x248   :  { %v2067_v59 = vpack.c.bf16 %v2056_v51, %v2056_v51  ;;  %v6973_v51 = vld [vmem:[#allocation94_spill] sm:$0xff] }
 0x24a   :  { %2077 = vst [vmem:[%s6407_s8 + $0xd4] sm:$0xf] %v2067_v59  ;;  %v2097_v49 = vpop.f32.mrf.mxu2  ;;  %v2111_v10 = vpop.f32.mrf.mxu3  ;;  %v6974_v59 = vld [vmem:[#allocation95_spill] sm:$0xff] }
 0x24b   :  { %v2098_v9 = vadd.f32 %v2097_v49, %v6967_v26  ;;  %v2112_v28 = vadd.f32 %v2111_v10, %v6968_v0  ;;  %v6975_v49 = vld [vmem:[#allocation96_spill] sm:$0xff]  ;;  %v6976_v10 = vld [vmem:[#allocation97_spill] sm:$0xff] }
 0x24d   :  { %v5524_v16 = vpack.c.bf16 %v2098_v9, %v2096_v2  ;;  %v5526_v17 = vpack.c.bf16 %v2112_v28, %v2110_v27  ;;  %v6977_v2 = vld [vmem:[#allocation98_spill] sm:$0xff]  ;;  %v6978_v27 = vld [vmem:[#allocation99_spill] sm:$0xff]  ;;  %v6979_v9 = vld [vmem:[#allocation100_spill] sm:$0xff] }
 0x24e   :  { %v6980_v28 = vld [vmem:[#allocation101_spill] sm:$0xff] }
 0x24f   :  { %2124 = vmatmul.bf16.vlgmr.msra.gmra.mxu0 %v5524_v16  ;;  %2138 = vmatmul.bf16.vlgmr.msra.gmra.mxu1 %v5526_v17 }
 0x250   :  { %2152 = vmatmul.bf16.vlgmr.msra.gmra.mxu2 %v5524_v16  ;;  %2166 = vmatmul.bf16.vlgmr.msra.gmra.mxu3 %v5526_v17 }
 0x251   :  { %2228 = vmatpush.bf16.msra.mxu0 %v6969_v19  ;;  %2242 = vmatpush.bf16.msra.mxu1 %v6970_v47  ;;  %v6981_v47 = vld [vmem:[#allocation102_spill] sm:$0xff] }
 0x252   :  { %2256 = vmatpush.bf16.msra.mxu2 %v6971_v34  ;;  %2270 = vmatpush.bf16.msra.mxu3 %v6972_v45  ;;  %v6982_v34 = vld [vmem:[#allocation103_spill] sm:$0xff]  ;;  %v6983_v45 = vld [vmem:[#allocation104_spill] sm:$0xff] }
 0x255   :  { %2229 = vmatpush.bf16.msra.mxu0 %v6973_v51  ;;  %2243 = vmatpush.bf16.msra.mxu1 %v6974_v59  ;;  %v6984_v51 = vld [vmem:[#allocation105_spill] sm:$0xff] }
 0x256   :  { %2257 = vmatpush.bf16.msra.mxu2 %v6975_v49  ;;  %2271 = vmatpush.bf16.msra.mxu3 %v6976_v10  ;;  %v6993_v10 = vld [vmem:[#allocation114_spill] sm:$0xff]  ;;  %v6994_v49 = vld [vmem:[#allocation115_spill] sm:$0xff] }
 0x259   :  { %2230 = vmatpush.bf16.msra.mxu0 %v6977_v2  ;;  %2244 = vmatpush.bf16.msra.mxu1 %v6978_v27  ;;  %v6985_v27 = vld [vmem:[#allocation106_spill] sm:$0xff]  ;;  %v6992_v2 = vld [vmem:[#allocation113_spill] sm:$0xff] }
 0x25a   :  { %2258 = vmatpush.bf16.msra.mxu2 %v6979_v9  ;;  %2272 = vmatpush.bf16.msra.mxu3 %v6980_v28  ;;  %v6986_v9 = vld [vmem:[#allocation107_spill] sm:$0xff]  ;;  %v6987_v28 = vld [vmem:[#allocation108_spill] sm:$0xff] }
 0x25d   :  { %2231 = vmatpush.bf16.msra.mxu0 %v6981_v47  ;;  %2245 = vmatpush.bf16.msra.mxu1 %v6982_v34  ;;  %v6988_v47 = vld [vmem:[#allocation109_spill] sm:$0xff]  ;;  %v6989_v34 = vld [vmem:[#allocation110_spill] sm:$0xff] }
 0x25e   :  { %2259 = vmatpush.bf16.msra.mxu2 %v6983_v45  ;;  %2273 = vmatpush.bf16.msra.mxu3 %v6984_v51  ;;  %v6990_v45 = vld [vmem:[#allocation111_spill] sm:$0xff]  ;;  %v6991_v51 = vld [vmem:[#allocation112_spill] sm:$0xff] }
 0x25f   :  { %2180 = vmatmul.bf16.vlgmr.msrb.gmra.mxu0 %v5524_v16  ;;  %2194 = vmatmul.bf16.vlgmr.msrb.gmra.mxu1 %v5526_v17 }
 0x260   :  { %2208 = vmatmul.bf16.vlgmr.msrb.gmra.mxu2 %v5524_v16  ;;  %2222 = vmatmul.bf16.vlgmr.msrb.gmra.mxu3 %v5526_v17 }
 0x261   :  { %2232 = vmatpush.bf16.msra.mxu0 %v6985_v27  ;;  %2246 = vmatpush.bf16.msra.mxu1 %v6986_v9 }
 0x262   :  { %2260 = vmatpush.bf16.msra.mxu2 %v6987_v28  ;;  %2274 = vmatpush.bf16.msra.mxu3 %v6988_v47  ;;  %v6995_v28 = vld [vmem:[#allocation119_spill] sm:$0xff]  ;;  %v6996_v47 = vld [vmem:[#allocation120_spill] sm:$0xff] }
 0x265   :  { %2233 = vmatpush.bf16.msra.mxu0 %v6989_v34  ;;  %2247 = vmatpush.bf16.msra.mxu1 %v6990_v45  ;;  %v6997_v34 = vld [vmem:[#allocation121_spill] sm:$0xff]  ;;  %v6998_v45 = vld [vmem:[#allocation122_spill] sm:$0xff] }
 0x266   :  { %2261 = vmatpush.bf16.msra.mxu2 %v6991_v51  ;;  %2275 = vmatpush.bf16.msra.mxu3 %v6992_v2  ;;  %v6999_v51 = vld [vmem:[#allocation123_spill] sm:$0xff]  ;;  %v7000_v2 = vld [vmem:[#allocation124_spill] sm:$0xff] }
 0x269   :  { %2234 = vmatpush.bf16.msra.mxu0 %v6993_v10  ;;  %2248 = vmatpush.bf16.msra.mxu1 %v6994_v49  ;;  %v7001_v10 = vld [vmem:[#allocation125_spill] sm:$0xff]  ;;  %v7012_v49 = vld [vmem:[#allocation136_spill] sm:$0xff] }
 0x26a   :  { %2262 = vmatpush.bf16.msra.mxu2 %v5169_v11  ;;  %2276 = vmatpush.bf16.msra.mxu3 %v5171_v24  ;;  %v7010_v24 = vld [vmem:[#allocation134_spill] sm:$0xff]  ;;  %v7011_v11 = vld [vmem:[#allocation135_spill] sm:$0xff] }
 0x26d   :  { %2235 = vmatpush.bf16.msra.mxu0 %v5175_v62  ;;  %2249 = vmatpush.bf16.msra.mxu1 %v6995_v28  ;;  %v7002_v28 = vld [vmem:[#allocation126_spill] sm:$0xff]  ;;  %v7009_v62 = vld [vmem:[#allocation133_spill] sm:$0xff] }
 0x26e   :  { %2263 = vmatpush.bf16.msra.mxu2 %v6996_v47  ;;  %2277 = vmatpush.bf16.msra.mxu3 %v6997_v34  ;;  %v7003_v47 = vld [vmem:[#allocation127_spill] sm:$0xff]  ;;  %v7004_v34 = vld [vmem:[#allocation128_spill] sm:$0xff] }
 0x270   :  { %2236 = vmatmul.bf16.vlgmr.msra.gmra.mxu0 %v5524_v16  ;;  %2250 = vmatmul.bf16.vlgmr.msra.gmra.mxu1 %v5526_v17 }
 0x271   :  { %2284 = vmatpush.bf16.msrb.mxu0 %v6998_v45  ;;  %2298 = vmatpush.bf16.msrb.mxu1 %v6999_v51  ;;  %v7005_v45 = vld [vmem:[#allocation129_spill] sm:$0xff]  ;;  %v7006_v51 = vld [vmem:[#allocation130_spill] sm:$0xff] }
 0x272   :  { %2312 = vmatpush.bf16.msrb.mxu2 %v7000_v2  ;;  %2326 = vmatpush.bf16.msrb.mxu3 %v7001_v10  ;;  %v7007_v2 = vld [vmem:[#allocation131_spill] sm:$0xff]  ;;  %v7008_v10 = vld [vmem:[#allocation132_spill] sm:$0xff] }
 0x273   :  { %2264 = vmatmul.bf16.vlgmr.msra.gmra.mxu2 %v5524_v16  ;;  %2278 = vmatmul.bf16.vlgmr.msra.gmra.mxu3 %v5526_v17 }
 0x275   :  { %2285 = vmatpush.bf16.msrb.mxu0 %v7002_v28  ;;  %2299 = vmatpush.bf16.msrb.mxu1 %v7003_v47  ;;  %v7013_v28 = vld [vmem:[#allocation137_spill] sm:$0xff]  ;;  %v7014_v47 = vld [vmem:[#allocation138_spill] sm:$0xff] }
 0x276   :  { %2313 = vmatpush.bf16.msrb.mxu2 %v7004_v34  ;;  %2327 = vmatpush.bf16.msrb.mxu3 %v7005_v45  ;;  %v7015_v34 = vld [vmem:[#allocation139_spill] sm:$0xff]  ;;  %v7016_v45 = vld [vmem:[#allocation140_spill] sm:$0xff] }
 0x279   :  { %2286 = vmatpush.bf16.msrb.mxu0 %v7006_v51  ;;  %2300 = vmatpush.bf16.msrb.mxu1 %v7007_v2  ;;  %v7017_v51 = vld [vmem:[#allocation141_spill] sm:$0xff]  ;;  %v7018_v2 = vld [vmem:[#allocation142_spill] sm:$0xff] }
 0x27a   :  { %2314 = vmatpush.bf16.msrb.mxu2 %v7008_v10  ;;  %2328 = vmatpush.bf16.msrb.mxu3 %v7009_v62  ;;  %v7019_v10 = vld [vmem:[#allocation143_spill] sm:$0xff]  ;;  %v7020_v62 = vld [vmem:[#allocation144_spill] sm:$0xff] }
 0x27d   :  { %2287 = vmatpush.bf16.msrb.mxu0 %v7010_v24  ;;  %2301 = vmatpush.bf16.msrb.mxu1 %v7011_v11  ;;  %v7021_v24 = vld [vmem:[#allocation145_spill] sm:$0xff]  ;;  %v7022_v11 = vld [vmem:[#allocation146_spill] sm:$0xff] }
 0x27e   :  { %2315 = vmatpush.bf16.msrb.mxu2 %v7012_v49  ;;  %2329 = vmatpush.bf16.msrb.mxu3 %v7013_v28  ;;  %v7023_v49 = vld [vmem:[#allocation147_spill] sm:$0xff] }
 0x281   :  { %2288 = vmatpush.bf16.msrb.mxu0 %v7014_v47  ;;  %2302 = vmatpush.bf16.msrb.mxu1 %v7015_v34 }
 0x282   :  { %2316 = vmatpush.bf16.msrb.mxu2 %v7016_v45  ;;  %2330 = vmatpush.bf16.msrb.mxu3 %v7017_v51 }
 0x285   :  { %2289 = vmatpush.bf16.msrb.mxu0 %v7018_v2  ;;  %2303 = vmatpush.bf16.msrb.mxu1 %v7019_v10 }
 0x286   :  { %2317 = vmatpush.bf16.msrb.mxu2 %v7020_v62  ;;  %2331 = vmatpush.bf16.msrb.mxu3 %v7021_v24 }
 0x289   :  { %2290 = vmatpush.bf16.msrb.mxu0 %v7022_v11  ;;  %2304 = vmatpush.bf16.msrb.mxu1 %v7023_v49  ;;  %v7024_v11 = vld [vmem:[#allocation9_spill] sm:$0xff] }
 0x28a   :  { %2318 = vmatpush.bf16.msrb.mxu2 %v5269_v22  ;;  %2332 = vmatpush.bf16.msrb.mxu3 %v5271_v13 }
 0x28d   :  { %2291 = vmatpush.bf16.msrb.mxu0 %v5275_v12  ;;  %2305 = vmatpush.bf16.msrb.mxu1 %v5277_v25  ;;  %v7025_v25 = vld [vmem:[#allocation156_spill] sm:$0xff] }
 0x28e   :  { %2319 = vmatpush.bf16.msrb.mxu2 %v5281_v32  ;;  %2333 = vmatpush.bf16.msrb.mxu3 %v5283_v5 }
 0x290   :  { %2292 = vmatmul.bf16.vlgmr.msrb.gmra.mxu0 %v5524_v16  ;;  %2306 = vmatmul.bf16.vlgmr.msrb.gmra.mxu1 %v5526_v17 }
 0x291   :  { %2340 = vmatpush.bf16.msra.mxu0 %v5285_v4  ;;  %2354 = vmatpush.bf16.msra.mxu1 %v5287_v1  ;;  %v7026_v1 = vld [vmem:[#allocation158_spill] sm:$0xff]  ;;  %v7029_v4 = vld [vmem:[#allocation13_spill] sm:$0xff] }
 0x292   :  { %2396 = vmatpush.bf16.msra.mxu2 %v4715_v58  ;;  %2410 = vmatpush.bf16.msra.mxu3 %v7024_v11  ;;  %v7027_v58 = vld [vmem:[#allocation159_spill] sm:$0xff]  ;;  %v7028_v11 = vld [vmem:[#allocation12_spill] sm:$0xff] }
 0x293   :  { %2320 = vmatmul.bf16.vlgmr.msrb.gmra.mxu2 %v5524_v16  ;;  %2334 = vmatmul.bf16.vlgmr.msrb.gmra.mxu3 %v5526_v17 }
 0x295   :  { %2341 = vmatpush.bf16.msra.mxu0 %v7025_v25  ;;  %2355 = vmatpush.bf16.msra.mxu1 %v5297_v20 }
 0x296   :  { %2397 = vmatpush.bf16.msra.mxu2 %v4733_v6  ;;  %2411 = vmatpush.bf16.msra.mxu3 %v4735_v7 }
 0x299   :  { %2342 = vmatpush.bf16.msra.mxu0 %v7026_v1  ;;  %2356 = vmatpush.bf16.msra.mxu1 %v7027_v58 }
 0x29a   :  { %2398 = vmatpush.bf16.msra.mxu2 %v7028_v11  ;;  %2412 = vmatpush.bf16.msra.mxu3 %v7029_v4 }
 0x29d   :  { %2343 = vmatpush.bf16.msra.mxu0 %v5318_v29  ;;  %2357 = vmatpush.bf16.msra.mxu1 %v5320_v15 }
 0x29e   :  { %2399 = vmatpush.bf16.msra.mxu2 %v4769_v30  ;;  %2413 = vmatpush.bf16.msra.mxu3 %v4771_v31 }
 0x2a1   :  { %2344 = vmatpush.bf16.msra.mxu0 %v5329_v42  ;;  %2358 = vmatpush.bf16.msra.mxu1 %v5331_v39 }
 0x2a2   :  { %2400 = vmatpush.bf16.msra.mxu2 %v4785_v35  ;;  %2414 = vmatpush.bf16.msra.mxu3 %v4791_v37  ;;  %v4306_v37 = vld [vmem:[%s6406_s7 + $0x8] sm:$0xf] }
 0x2a5   :  { %2345 = vmatpush.bf16.msra.mxu0 %v5340_v33  ;;  %2359 = vmatpush.bf16.msra.mxu1 %v5342_v46  ;;  %v4560_v46 = vld [vmem:[%s6406_s7 + $0x18] sm:$0xf0] }
 0x2a6   :  { %2401 = vmatpush.bf16.msra.mxu2 %v4804_v41  ;;  %2415 = vmatpush.bf16.msra.mxu3 %v4809_v43 }
 0x2a9   :  { %2346 = vmatpush.bf16.msra.mxu0 %v5348_v18  ;;  %2360 = vmatpush.bf16.msra.mxu1 %v5350_v55  ;;  %v4307_v55 = vor.u32 %v4560_v46, %v4306_v37  ;;  %v7030_v37 = vld [vmem:[#allocation41_spill] sm:$0xff]  ;;  %v7031_v46 = vld [vmem:[#allocation28_spill] sm:$0xff] }
 0x2aa   :  { %2402 = vmatpush.bf16.msra.mxu2 %v4822_v48  ;;  %2416 = vmatpush.bf16.msra.mxu3 %v4830_v52  ;;  %v7071_v52 = vld [vmem:[#allocation72_spill] sm:$0xff] }
 0x2ad   :  { %2347 = vmatpush.bf16.msra.mxu0 %v5356_v3  ;;  %2361 = vmatpush.bf16.msra.mxu1 %v5358_v60  ;;  %v7069_v3 = vld [vmem:[#allocation70_spill] sm:$0xff] }
 0x2ae   :  { %2403 = vmatpush.bf16.msra.mxu2 %v4843_v56  ;;  %2417 = vmatpush.bf16.msra.mxu3 %v4845_v57  ;;  %v7066_v57 = vld [vmem:[#allocation171_spill] sm:$0xff] }
 0x2b0   :  { %2348 = vmatmul.bf16.vlgmr.msra.gmra.mxu0 %v5524_v16  ;;  %2362 = vmatmul.bf16.vlgmr.msra.gmra.mxu1 %v5526_v17  ;;  %v7032_v16 = vld [vmem:[#allocation29_spill] sm:$0xff]  ;;  %v7034_v17 = vld [vmem:[#allocation43_spill] sm:$0xff] }
 0x2b1   :  { %2426 = vmatpush.bf16.msrb.mxu0 %v4894_v21  ;;  %2440 = vmatpush.bf16.msrb.mxu1 %v4896_v23  ;;  %v7064_v21 = vld [vmem:[#allocation66_spill] sm:$0xff] }
 0x2b2   :  { %2404 = vmatmul.bf16.vlgmr.msra.gmra.mxu2 %v4307_v55  ;;  %2418 = vmatmul.bf16.vlgmr.msra.gmra.mxu3 %v4307_v55  ;;  %v7033_v55 = vld [vmem:[#allocation42_spill] sm:$0xff] }
 0x2b3   :  { %2454 = vmatpush.bf16.msrb.mxu2 %v4856_v54  ;;  %2468 = vmatpush.bf16.msrb.mxu3 %v4861_v63  ;;  %v7035_v63 = vld [vmem:[#allocation30_spill] sm:$0xff]  ;;  %v7057_v54 = vld [vmem:[#allocation60_spill] sm:$0xff] }
 0x2b5   :  { %2427 = vmatpush.bf16.msrb.mxu0 %v4904_v36  ;;  %2441 = vmatpush.bf16.msrb.mxu1 %v4907_v38  ;;  %v7036_v36 = vld [vmem:[#allocation31_spill] sm:$0xff]  ;;  %v7037_v38 = vld [vmem:[#allocation44_spill] sm:$0xff] }
 0x2b7   :  { %2455 = vmatpush.bf16.msrb.mxu2 %v4865_v61  ;;  %2469 = vmatpush.bf16.msrb.mxu3 %v4867_v14  ;;  %v7038_v61 = vld [vmem:[#allocation45_spill] sm:$0xff]  ;;  %v7039_v14 = vld [vmem:[#allocation32_spill] sm:$0xff] }
 0x2b9   :  { %2428 = vmatpush.bf16.msrb.mxu0 %v4916_v50  ;;  %2442 = vmatpush.bf16.msrb.mxu1 %v7030_v37  ;;  %v7040_v50 = vld [vmem:[#allocation35_spill] sm:$0xff]  ;;  %v7041_v37 = vld [vmem:[#allocation46_spill] sm:$0xff] }
 0x2bb   :  { %2456 = vmatpush.bf16.msrb.mxu2 %v7031_v46  ;;  %2470 = vmatpush.bf16.msrb.mxu3 %v7032_v16  ;;  %v7042_v46 = vld [vmem:[#allocation47_spill] sm:$0xff]  ;;  %v7043_v16 = vld [vmem:[#allocation36_spill] sm:$0xff] }
 0x2bd   :  { %2429 = vmatpush.bf16.msrb.mxu0 %v7033_v55  ;;  %2443 = vmatpush.bf16.msrb.mxu1 %v7034_v17  ;;  %v7044_v55 = vld [vmem:[#allocation39_spill] sm:$0xff]  ;;  %v7045_v17 = vld [vmem:[#allocation48_spill] sm:$0xff] }
 0x2bf   :  { %2457 = vmatpush.bf16.msrb.mxu2 %v7035_v63  ;;  %2471 = vmatpush.bf16.msrb.mxu3 %v7036_v36  ;;  %v7046_v63 = vld [vmem:[#allocation49_spill] sm:$0xff]  ;;  %v7047_v36 = vld [vmem:[#allocation50_spill] sm:$0xff] }
 0x2c1   :  { %2430 = vmatpush.bf16.msrb.mxu0 %v7037_v38  ;;  %2444 = vmatpush.bf16.msrb.mxu1 %v7038_v61  ;;  %v7048_v38 = vld [vmem:[#allocation51_spill] sm:$0xff]  ;;  %v7049_v61 = vld [vmem:[#allocation52_spill] sm:$0xff] }
 0x2c3   :  { %2458 = vmatpush.bf16.msrb.mxu2 %v7039_v14  ;;  %2472 = vmatpush.bf16.msrb.mxu3 %v7040_v50  ;;  %v7050_v14 = vld [vmem:[#allocation53_spill] sm:$0xff]  ;;  %v7051_v50 = vld [vmem:[#allocation56_spill] sm:$0xff] }
 0x2c5   :  { %2431 = vmatpush.bf16.msrb.mxu0 %v7041_v37  ;;  %2445 = vmatpush.bf16.msrb.mxu1 %v7042_v46  ;;  %v7052_v37 = vld [vmem:[#allocation57_spill] sm:$0xff]  ;;  %v7053_v46 = vld [vmem:[#allocation54_spill] sm:$0xff] }
 0x2c7   :  { %2459 = vmatpush.bf16.msrb.mxu2 %v7043_v16  ;;  %2473 = vmatpush.bf16.msrb.mxu3 %v7044_v55  ;;  %v7054_v16 = vld [vmem:[#allocation55_spill] sm:$0xff]  ;;  %v7055_v55 = vld [vmem:[#allocation58_spill] sm:$0xff] }
 0x2c9   :  { %2432 = vmatpush.bf16.msrb.mxu0 %v7045_v17  ;;  %2446 = vmatpush.bf16.msrb.mxu1 %v7046_v63  ;;  %v7056_v17 = vld [vmem:[#allocation59_spill] sm:$0xff] }
 0x2cb   :  { %2460 = vmatpush.bf16.msrb.mxu2 %v7047_v36  ;;  %2474 = vmatpush.bf16.msrb.mxu3 %v7048_v38  ;;  %v7058_v38 = vld [vmem:[#allocation61_spill] sm:$0xff] }
 0x2cc   :  { %v2125_v63 = vpop.f32.mrf.mxu0  ;;  %v2139_v36 = vpop.f32.mrf.mxu1 }
 0x2cd   :  { %2433 = vmatpush.bf16.msrb.mxu0 %v7049_v61  ;;  %2447 = vmatpush.bf16.msrb.mxu1 %v7050_v14  ;;  %v7059_v61 = vld [vmem:[#allocation62_spill] sm:$0xff]  ;;  %v7060_v14 = vld [vmem:[#allocation63_spill] sm:$0xff] }
 0x2cf   :  { %2461 = vmatpush.bf16.msrb.mxu2 %v7053_v46  ;;  %2475 = vmatpush.bf16.msrb.mxu3 %v7054_v16  ;;  %v7063_v46 = vld [vmem:[#allocation170_spill] sm:$0xff] }
 0x2d0   :  { %v2126_v16 = vadd.f32 %v2125_v63, %v7063_v46 }
 0x2d1   :  { %2482 = vmatpush.bf16.msra.mxu0 %v7051_v50  ;;  %2496 = vmatpush.bf16.msra.mxu1 %v7052_v37  ;;  %v7061_v50 = vld [vmem:[#allocation64_spill] sm:$0xff]  ;;  %v7062_v37 = vld [vmem:[#allocation65_spill] sm:$0xff] }
 0x2d3   :  { %2510 = vmatpush.bf16.msra.mxu2 %v7055_v55  ;;  %2524 = vmatpush.bf16.msra.mxu3 %v7056_v17  ;;  %v2153_v23 = vpop.f32.mrf.mxu2  ;;  %v2167_v55 = vpop.f32.mrf.mxu3  ;;  %v7065_v17 = vld [vmem:[#allocation67_spill] sm:$0xff] }
 0x2d4   :  { %v2127_v56 = vpop.f32.mrf.mxu0 }
 0x2d5   :  { %2483 = vmatpush.bf16.msra.mxu0 %v7057_v54  ;;  %2497 = vmatpush.bf16.msra.mxu1 %v7058_v38  ;;  %v2154_v54 = vadd.f32 %v2153_v23, %v7066_v57  ;;  %v7067_v38 = vld [vmem:[#allocation68_spill] sm:$0xff]  ;;  %v2128_v23 = vadd.f32 %v2127_v56, %v7063_v46 }
 0x2d7   :  { %2511 = vmatpush.bf16.msra.mxu2 %v7059_v61  ;;  %2525 = vmatpush.bf16.msra.mxu3 %v7060_v14  ;;  %v7068_v61 = vld [vmem:[#allocation69_spill] sm:$0xff]  ;;  %v2140_v14 = vadd.f32 %v2139_v36, %v2126_v16  ;;  %v2168_v60 = vadd.f32 %v2167_v55, %v2154_v54  ;;  %v7073_v36 = vld [vmem:[#allocation74_spill] sm:$0xff]  ;;  %v7074_v54 = vld [vmem:[#allocation75_spill] sm:$0xff] }
 0x2d9   :  { %2484 = vmatpush.bf16.msra.mxu0 %v7061_v50  ;;  %2498 = vmatpush.bf16.msra.mxu1 %v7062_v37  ;;  %v2141_v50 = vpop.f32.mrf.mxu1  ;;  %v7070_v37 = vld [vmem:[#allocation71_spill] sm:$0xff]  ;;  %v2368_v63 = vpack.c.bf16 %v2168_v60, %v2140_v14  ;;  %v7075_v14 = vld [vmem:[#allocation76_spill] sm:$0xff]  ;;  %v7076_v60 = vld [vmem:[#allocation77_spill] sm:$0xff] }
 0x2db   :  { %2512 = vmatpush.bf16.msra.mxu2 %v7064_v21  ;;  %2526 = vmatpush.bf16.msra.mxu3 %v7065_v17  ;;  %v7072_v21 = vld [vmem:[#allocation73_spill] sm:$0xff]  ;;  %2378 = vst [vmem:[%s6407_s8 + $0x24] sm:$0xff] %v2368_v63  ;;  %v7078_v63 = vld [vmem:[#allocation79_spill] sm:$0xff]  ;;  %v7079_v17 = vld [vmem:[#allocation80_spill] sm:$0xff] }
 0x2dc   :  { %v2181_v55 = vpop.f32.mrf.mxu0 }
 0x2dd   :  { %2485 = vmatpush.bf16.msra.mxu0 %v7067_v38  ;;  %2499 = vmatpush.bf16.msra.mxu1 %v7068_v61  ;;  %v2155_v38 = vpop.f32.mrf.mxu2  ;;  %v2169_v61 = vpop.f32.mrf.mxu3 }
 0x2de   :  { %v2156_v16 = vadd.f32 %v2155_v38, %v7066_v57  ;;  %v7081_v38 = vld [vmem:[#allocation172_spill] sm:$0xff] }
 0x2df   :  { %2513 = vmatpush.bf16.msra.mxu2 %v7069_v3  ;;  %2527 = vmatpush.bf16.msra.mxu3 %v7070_v37  ;;  %v7077_v37 = vld [vmem:[#allocation78_spill] sm:$0xff] }
 0x2e1   :  { %2486 = vmatpush.bf16.msra.mxu0 %v7071_v52  ;;  %2500 = vmatpush.bf16.msra.mxu1 %v7072_v21  ;;  %v2142_v21 = vadd.f32 %v2141_v50, %v2128_v23  ;;  %v2170_v52 = vadd.f32 %v2169_v61, %v2156_v16  ;;  %v2195_v3 = vpop.f32.mrf.mxu1  ;;  %v7082_v50 = vld [vmem:[#allocation82_spill] sm:$0xff]  ;;  %v7083_v61 = vld [vmem:[#allocation83_spill] sm:$0xff]  ;;  %v7084_v23 = vld [vmem:[#allocation173_spill] sm:$0xff] }
 0x2e3   :  { %2514 = vmatpush.bf16.msra.mxu2 %v7073_v36  ;;  %2528 = vmatpush.bf16.msra.mxu3 %v7074_v54  ;;  %v2373_v56 = vpack.c.bf16 %v2170_v52, %v2142_v21  ;;  %v7080_v36 = vld [vmem:[#allocation81_spill] sm:$0xff]  ;;  %v7085_v52 = vld [vmem:[#allocation84_spill] sm:$0xff] }
 0x2e4   :  { %v7086_v21 = vld [vmem:[#allocation85_spill] sm:$0xff] }
 0x2e5   :  { %2487 = vmatpush.bf16.msra.mxu0 %v7075_v14  ;;  %2501 = vmatpush.bf16.msra.mxu1 %v7076_v60  ;;  %2383 = vst [vmem:[%s6407_s8 + $0xd8] sm:$0xff] %v2373_v56  ;;  %v2182_v14 = vadd.f32 %v2181_v55, %v7081_v38  ;;  %v2209_v54 = vpop.f32.mrf.mxu2  ;;  %v2223_v60 = vpop.f32.mrf.mxu3  ;;  %v7088_v56 = vld [vmem:[#allocation87_spill] sm:$0xff] }
 0x2e6   :  { %v2210_v16 = vadd.f32 %v2209_v54, %v7084_v23 }
 0x2e7   :  { %2515 = vmatpush.bf16.msra.mxu2 %v7077_v37  ;;  %2529 = vmatpush.bf16.msra.mxu3 %v7078_v63  ;;  %v7087_v37 = vld [vmem:[#allocation86_spill] sm:$0xff] }
 0x2e8   :  { %v2224_v63 = vadd.f32 %v2223_v60, %v2210_v16 }
 0x2e9   :  { %2488 = vmatpush.bf16.msra.mxu0 %v7079_v17  ;;  %2502 = vmatpush.bf16.msra.mxu1 %v7080_v36  ;;  %v2183_v17 = vpop.f32.mrf.mxu0  ;;  %v2196_v36 = vadd.f32 %v2195_v3, %v2182_v14 }
 0x2eb   :  { %2516 = vmatpush.bf16.msra.mxu2 %v7082_v50  ;;  %2530 = vmatpush.bf16.msra.mxu3 %v7083_v61  ;;  %v2369_v55 = vpack.c.bf16 %v2224_v63, %v2196_v36  ;;  %v2184_v61 = vadd.f32 %v2183_v17, %v7081_v38  ;;  %v2197_v50 = vpop.f32.mrf.mxu1 }
 0x2ed   :  { %2489 = vmatpush.bf16.msra.mxu0 %v7085_v52  ;;  %2503 = vmatpush.bf16.msra.mxu1 %v7086_v21  ;;  %2379 = vst [vmem:[%s6407_s8 + $0x2c] sm:$0xff] %v2369_v55  ;;  %v2211_v54 = vpop.f32.mrf.mxu2  ;;  %v2225_v57 = vpop.f32.mrf.mxu3  ;;  %v2198_v21 = vadd.f32 %v2197_v50, %v2184_v61  ;;  %v7089_v55 = vld [vmem:[#allocation174_spill] sm:$0xff] }
 0x2ee   :  { %v2212_v52 = vadd.f32 %v2211_v54, %v7084_v23 }
 0x2ef   :  { %2517 = vmatpush.bf16.msra.mxu2 %v7087_v37  ;;  %2531 = vmatpush.bf16.msra.mxu3 %v7088_v56 }
 0x2f0   :  { %v2226_v46 = vadd.f32 %v2225_v57, %v2212_v52 }
 0x2f1   :  { %v2237_v3 = vpop.f32.mrf.mxu0 }
 0x2f2   :  { %v2374_v14 = vpack.c.bf16 %v2226_v46, %v2198_v21  ;;  %v2238_v36 = vadd.f32 %v2237_v3, %v5473_v8 }
 0x2f3   :  { %v2251_v60 = vpop.f32.mrf.mxu1 }
 0x2f4   :  { %2384 = vst [vmem:[%s6407_s8 + $0xe0] sm:$0xff] %v2374_v14  ;;  %v2252_v56 = vadd.f32 %v2251_v60, %v2238_v36 }
 0x2f6   :  { %v2265_v63 = vpop.f32.mrf.mxu2  ;;  %v2279_v16 = vpop.f32.mrf.mxu3 }
 0x2f7   :  { %v2266_v17 = vadd.f32 %v2265_v63, %v7089_v55 }
 0x2f9   :  { %v2280_v37 = vadd.f32 %v2279_v16, %v2266_v17  ;;  %v2239_v38 = vpop.f32.mrf.mxu0 }
 0x2fa   :  { %v2240_v57 = vadd.f32 %v2239_v38, %v5473_v8 }
 0x2fb   :  { %v2370_v48 = vpack.c.bf16 %v2280_v37, %v2252_v56  ;;  %v2253_v61 = vpop.f32.mrf.mxu1 }
 0x2fc   :  { %v2254_v21 = vadd.f32 %v2253_v61, %v2240_v57 }
 0x2fd   :  { %2380 = vst [vmem:[%s6407_s8 + $0x34] sm:$0xff] %v2370_v48 }
 0x2fe   :  { %v2267_v46 = vpop.f32.mrf.mxu2  ;;  %v2281_v52 = vpop.f32.mrf.mxu3 }
 0x2ff   :  { %v2268_v50 = vadd.f32 %v2267_v46, %v7089_v55 }
 0x301   :  { %v2282_v54 = vadd.f32 %v2281_v52, %v2268_v50 }
 0x303   :  { %v2375_v3 = vpack.c.bf16 %v2282_v54, %v2254_v21 }
 0x305   :  { %2385 = vst [vmem:[%s6407_s8 + $0xe8] sm:$0xff] %v2375_v3 }
 0x30d   :  { %v2293_v14 = vpop.f32.mrf.mxu0  ;;  %v2307_v56 = vpop.f32.mrf.mxu1 }
 0x30e   :  { %v2294_v37 = vadd.f32 %v2293_v14, %v5492_v44 }
 0x310   :  { %v2308_v60 = vadd.f32 %v2307_v56, %v2294_v37 }
 0x315   :  { %v2295_v16 = vpop.f32.mrf.mxu0  ;;  %v2309_v61 = vpop.f32.mrf.mxu1 }
 0x316   :  { %v2321_v36 = vpop.f32.mrf.mxu2  ;;  %v2335_v48 = vpop.f32.mrf.mxu3  ;;  %v2296_v57 = vadd.f32 %v2295_v16, %v5492_v44 }
 0x317   :  { %v2322_v38 = vadd.f32 %v2321_v36, %v5495_v53 }
 0x318   :  { %v2310_v21 = vadd.f32 %v2309_v61, %v2296_v57 }
 0x319   :  { %v2336_v63 = vadd.f32 %v2335_v48, %v2322_v38 }
 0x31b   :  { %v2371_v17 = vpack.c.bf16 %v2336_v63, %v2308_v60 }
 0x31d   :  { %2381 = vst [vmem:[%s6407_s8 + $0x3c] sm:$0xff] %v2371_v17 }
 0x31e   :  { %v2323_v46 = vpop.f32.mrf.mxu2  ;;  %v2337_v52 = vpop.f32.mrf.mxu3 }
 0x31f   :  { %v2324_v50 = vadd.f32 %v2323_v46, %v5495_v53 }
 0x321   :  { %v2338_v54 = vadd.f32 %v2337_v52, %v2324_v50 }
 0x323   :  { %v2376_v3 = vpack.c.bf16 %v2338_v54, %v2310_v21 }
 0x325   :  { %2386 = vst [vmem:[%s6407_s8 + $0xf0] sm:$0xff] %v2376_v3 }
 0x32d   :  { %v2349_v14 = vpop.f32.mrf.mxu0  ;;  %v2363_v37 = vpop.f32.mrf.mxu1 }
 0x32e   :  { %v2350_v56 = vadd.f32 %v5510_v40, %v2349_v14 }
 0x330   :  { %v2364_v36 = vadd.f32 %v2363_v37, %v2350_v56  ;;  %v7090_v37 = vld [vmem:[#allocation91_spill] sm:$0xff]  ;;  %v7091_v56 = vld [vmem:[#allocation92_spill] sm:$0xff] }
 0x332   :  { %v2372_v48 = vpack.c.bf16 %v2364_v36, %v2364_v36  ;;  %v7092_v36 = vld [vmem:[#allocation93_spill] sm:$0xff] }
 0x334   :  { %2382 = vst [vmem:[%s6407_s8 + $0x44] sm:$0xf] %v2372_v48  ;;  %v7093_v48 = vld [vmem:[#allocation94_spill] sm:$0xff] }
 0x335   :  { %v2405_v38 = vpop.f32.mrf.mxu2  ;;  %v2419_v60 = vpop.f32.mrf.mxu3 }
 0x336   :  { %v2351_v63 = vpop.f32.mrf.mxu0  ;;  %v2365_v17 = vpop.f32.mrf.mxu1  ;;  %v2406_v52 = vadd.f32 %v2405_v38, %v6967_v26  ;;  %v2420_v21 = vadd.f32 %v2419_v60, %v6968_v0  ;;  %v7094_v38 = vld [vmem:[#allocation96_spill] sm:$0xff]  ;;  %v7095_v60 = vld [vmem:[#allocation97_spill] sm:$0xff] }
 0x337   :  { %v2352_v16 = vadd.f32 %v5510_v40, %v2351_v63  ;;  %v7096_v63 = vld [vmem:[#allocation98_spill] sm:$0xff] }
 0x339   :  { %v2366_v57 = vadd.f32 %v2365_v17, %v2352_v16  ;;  %v7097_v16 = vld [vmem:[#allocation99_spill] sm:$0xff]  ;;  %v7098_v17 = vld [vmem:[#allocation100_spill] sm:$0xff] }
 0x33b   :  { %v2377_v46 = vpack.c.bf16 %v2366_v57, %v2366_v57  ;;  %v7099_v57 = vld [vmem:[#allocation101_spill] sm:$0xff] }
 0x33d   :  { %2387 = vst [vmem:[%s6407_s8 + $0xf8] sm:$0xf] %v2377_v46  ;;  %v2407_v50 = vpop.f32.mrf.mxu2  ;;  %v2421_v61 = vpop.f32.mrf.mxu3  ;;  %v7100_v46 = vld [vmem:[#allocation102_spill] sm:$0xff] }
 0x33e   :  { %v2408_v54 = vadd.f32 %v2407_v50, %v6967_v26  ;;  %v2422_v3 = vadd.f32 %v2421_v61, %v6968_v0  ;;  %v7101_v50 = vld [vmem:[#allocation103_spill] sm:$0xff]  ;;  %v7102_v61 = vld [vmem:[#allocation104_spill] sm:$0xff] }
 0x340   :  { %v5764_v14 = vpack.c.bf16 %v2408_v54, %v2406_v52  ;;  %v5766_v40 = vpack.c.bf16 %v2422_v3, %v2420_v21  ;;  %v7103_v52 = vld [vmem:[#allocation105_spill] sm:$0xff]  ;;  %v7104_v21 = vld [vmem:[#allocation108_spill] sm:$0xff]  ;;  %v7106_v3 = vld [vmem:[#allocation110_spill] sm:$0xff] }
 0x341   :  { %v7105_v54 = vld [vmem:[#allocation109_spill] sm:$0xff] }
 0x342   :  { %2434 = vmatmul.bf16.vlgmr.msrb.gmra.mxu0 %v5764_v14  ;;  %2448 = vmatmul.bf16.vlgmr.msrb.gmra.mxu1 %v5766_v40 }
 0x343   :  { %2462 = vmatmul.bf16.vlgmr.msrb.gmra.mxu2 %v5764_v14  ;;  %2476 = vmatmul.bf16.vlgmr.msrb.gmra.mxu3 %v5766_v40 }
 0x344   :  { %2538 = vmatpush.bf16.msrb.mxu0 %v6969_v19  ;;  %2552 = vmatpush.bf16.msrb.mxu1 %v7090_v37 }
 0x345   :  { %2566 = vmatpush.bf16.msrb.mxu2 %v7091_v56  ;;  %2580 = vmatpush.bf16.msrb.mxu3 %v7092_v36 }
 0x348   :  { %2539 = vmatpush.bf16.msrb.mxu0 %v7093_v48  ;;  %2553 = vmatpush.bf16.msrb.mxu1 %v6974_v59 }
 0x349   :  { %2567 = vmatpush.bf16.msrb.mxu2 %v7094_v38  ;;  %2581 = vmatpush.bf16.msrb.mxu3 %v7095_v60 }
 0x34c   :  { %2540 = vmatpush.bf16.msrb.mxu0 %v7096_v63  ;;  %2554 = vmatpush.bf16.msrb.mxu1 %v7097_v16 }
 0x34d   :  { %2568 = vmatpush.bf16.msrb.mxu2 %v7098_v17  ;;  %2582 = vmatpush.bf16.msrb.mxu3 %v7099_v57  ;;  %v7111_v57 = vld [vmem:[#allocation115_spill] sm:$0xff]  ;;  %v7112_v17 = vld [vmem:[#allocation116_spill] sm:$0xff] }
 0x350   :  { %2541 = vmatpush.bf16.msrb.mxu0 %v7100_v46  ;;  %2555 = vmatpush.bf16.msrb.mxu1 %v7101_v50  ;;  %v7109_v50 = vld [vmem:[#allocation113_spill] sm:$0xff]  ;;  %v7110_v46 = vld [vmem:[#allocation114_spill] sm:$0xff] }
 0x351   :  { %2569 = vmatpush.bf16.msrb.mxu2 %v7102_v61  ;;  %2583 = vmatpush.bf16.msrb.mxu3 %v7103_v52  ;;  %v7107_v61 = vld [vmem:[#allocation111_spill] sm:$0xff]  ;;  %v7108_v52 = vld [vmem:[#allocation112_spill] sm:$0xff] }
 0x352   :  { %2490 = vmatmul.bf16.vlgmr.msra.gmra.mxu0 %v5764_v14  ;;  %2504 = vmatmul.bf16.vlgmr.msra.gmra.mxu1 %v5766_v40 }
 0x353   :  { %2518 = vmatmul.bf16.vlgmr.msra.gmra.mxu2 %v5764_v14  ;;  %2532 = vmatmul.bf16.vlgmr.msra.gmra.mxu3 %v5766_v40 }
 0x354   :  { %2542 = vmatpush.bf16.msrb.mxu0 %v6985_v27  ;;  %2556 = vmatpush.bf16.msrb.mxu1 %v6986_v9  ;;  %v7113_v27 = vld [vmem:[#allocation117_spill] sm:$0xff]  ;;  %v7114_v9 = vld [vmem:[#allocation118_spill] sm:$0xff] }
 0x355   :  { %2570 = vmatpush.bf16.msrb.mxu2 %v7104_v21  ;;  %2584 = vmatpush.bf16.msrb.mxu3 %v7105_v54  ;;  %v7115_v21 = vld [vmem:[#allocation119_spill] sm:$0xff]  ;;  %v7116_v54 = vld [vmem:[#allocation120_spill] sm:$0xff] }
 0x358   :  { %2543 = vmatpush.bf16.msrb.mxu0 %v7106_v3  ;;  %2557 = vmatpush.bf16.msrb.mxu1 %v7107_v61  ;;  %v7117_v3 = vld [vmem:[#allocation121_spill] sm:$0xff]  ;;  %v7118_v61 = vld [vmem:[#allocation122_spill] sm:$0xff] }
 0x359   :  { %2571 = vmatpush.bf16.msrb.mxu2 %v7108_v52  ;;  %2585 = vmatpush.bf16.msrb.mxu3 %v7109_v50  ;;  %v7119_v52 = vld [vmem:[#allocation123_spill] sm:$0xff]  ;;  %v7120_v50 = vld [vmem:[#allocation124_spill] sm:$0xff] }
 0x35c   :  { %2544 = vmatpush.bf16.msrb.mxu0 %v7110_v46  ;;  %2558 = vmatpush.bf16.msrb.mxu1 %v7111_v57  ;;  %v7121_v46 = vld [vmem:[#allocation125_spill] sm:$0xff]  ;;  %v7132_v57 = vld [vmem:[#allocation136_spill] sm:$0xff] }
 0x35d   :  { %2572 = vmatpush.bf16.msrb.mxu2 %v7112_v17  ;;  %2586 = vmatpush.bf16.msrb.mxu3 %v7113_v27  ;;  %v7130_v27 = vld [vmem:[#allocation134_spill] sm:$0xff]  ;;  %v7131_v17 = vld [vmem:[#allocation135_spill] sm:$0xff] }
 0x360   :  { %2545 = vmatpush.bf16.msrb.mxu0 %v7114_v9  ;;  %2559 = vmatpush.bf16.msrb.mxu1 %v7115_v21  ;;  %v7122_v21 = vld [vmem:[#allocation126_spill] sm:$0xff]  ;;  %v7129_v9 = vld [vmem:[#allocation133_spill] sm:$0xff] }
 0x361   :  { %2573 = vmatpush.bf16.msrb.mxu2 %v7116_v54  ;;  %2587 = vmatpush.bf16.msrb.mxu3 %v7117_v3  ;;  %v7123_v54 = vld [vmem:[#allocation127_spill] sm:$0xff]  ;;  %v7124_v3 = vld [vmem:[#allocation128_spill] sm:$0xff] }
 0x363   :  { %2546 = vmatmul.bf16.vlgmr.msrb.gmra.mxu0 %v5764_v14  ;;  %2560 = vmatmul.bf16.vlgmr.msrb.gmra.mxu1 %v5766_v40 }
 0x364   :  { %2594 = vmatpush.bf16.msra.mxu0 %v7118_v61  ;;  %2608 = vmatpush.bf16.msra.mxu1 %v7119_v52  ;;  %v7125_v61 = vld [vmem:[#allocation129_spill] sm:$0xff]  ;;  %v7126_v52 = vld [vmem:[#allocation130_spill] sm:$0xff] }
 0x365   :  { %2622 = vmatpush.bf16.msra.mxu2 %v7120_v50  ;;  %2636 = vmatpush.bf16.msra.mxu3 %v7121_v46  ;;  %v7127_v50 = vld [vmem:[#allocation131_spill] sm:$0xff]  ;;  %v7128_v46 = vld [vmem:[#allocation132_spill] sm:$0xff] }
 0x366   :  { %2574 = vmatmul.bf16.vlgmr.msrb.gmra.mxu2 %v5764_v14  ;;  %2588 = vmatmul.bf16.vlgmr.msrb.gmra.mxu3 %v5766_v40 }
 0x368   :  { %2595 = vmatpush.bf16.msra.mxu0 %v7122_v21  ;;  %2609 = vmatpush.bf16.msra.mxu1 %v7123_v54 }
 0x369   :  { %2623 = vmatpush.bf16.msra.mxu2 %v7124_v3  ;;  %2637 = vmatpush.bf16.msra.mxu3 %v7125_v61 }
 0x36c   :  { %2596 = vmatpush.bf16.msra.mxu0 %v7126_v52  ;;  %2610 = vmatpush.bf16.msra.mxu1 %v7127_v50 }
 0x36d   :  { %2624 = vmatpush.bf16.msra.mxu2 %v7128_v46  ;;  %2638 = vmatpush.bf16.msra.mxu3 %v7129_v9 }
 0x370   :  { %2597 = vmatpush.bf16.msra.mxu0 %v7130_v27  ;;  %2611 = vmatpush.bf16.msra.mxu1 %v7131_v17  ;;  %v7133_v17 = vld [vmem:[#allocation146_spill] sm:$0xff] }
 0x371   :  { %2625 = vmatpush.bf16.msra.mxu2 %v7132_v57  ;;  %2639 = vmatpush.bf16.msra.mxu3 %v7013_v28 }
 0x374   :  { %2598 = vmatpush.bf16.msra.mxu0 %v7014_v47  ;;  %2612 = vmatpush.bf16.msra.mxu1 %v7015_v34 }
 0x375   :  { %2626 = vmatpush.bf16.msra.mxu2 %v7016_v45  ;;  %2640 = vmatpush.bf16.msra.mxu3 %v7017_v51  ;;  %v7134_v45 = vld [vmem:[#allocation151_spill] sm:$0xff] }
 0x378   :  { %2599 = vmatpush.bf16.msra.mxu0 %v7018_v2  ;;  %2613 = vmatpush.bf16.msra.mxu1 %v7019_v10  ;;  %v7135_v10 = vld [vmem:[#allocation154_spill] sm:$0xff] }
 0x379   :  { %2627 = vmatpush.bf16.msra.mxu2 %v7020_v62  ;;  %2641 = vmatpush.bf16.msra.mxu3 %v7021_v24  ;;  %v7136_v62 = vld [vmem:[#allocation155_spill] sm:$0xff]  ;;  %v7137_v24 = vld [vmem:[#allocation8_spill] sm:$0xff] }
 0x37c   :  { %2600 = vmatpush.bf16.msra.mxu0 %v7133_v17  ;;  %2614 = vmatpush.bf16.msra.mxu1 %v7023_v49  ;;  %v7138_v17 = vld [vmem:[#allocation9_spill] sm:$0xff] }
 0x37d   :  { %2628 = vmatpush.bf16.msra.mxu2 %v5269_v22  ;;  %2642 = vmatpush.bf16.msra.mxu3 %v5271_v13 }
 0x380   :  { %2601 = vmatpush.bf16.msra.mxu0 %v5275_v12  ;;  %2615 = vmatpush.bf16.msra.mxu1 %v7134_v45 }
 0x381   :  { %2629 = vmatpush.bf16.msra.mxu2 %v5281_v32  ;;  %2643 = vmatpush.bf16.msra.mxu3 %v5283_v5 }
 0x383   :  { %2602 = vmatmul.bf16.vlgmr.msra.gmra.mxu0 %v5764_v14  ;;  %2616 = vmatmul.bf16.vlgmr.msra.gmra.mxu1 %v5766_v40 }
 0x384   :  { %2650 = vmatpush.bf16.msrb.mxu0 %v7135_v10  ;;  %2664 = vmatpush.bf16.msrb.mxu1 %v7136_v62 }
 0x385   :  { %2706 = vmatpush.bf16.msrb.mxu2 %v7137_v24  ;;  %2720 = vmatpush.bf16.msrb.mxu3 %v7138_v17 }
 0x386   :  { %2630 = vmatmul.bf16.vlgmr.msra.gmra.mxu2 %v5764_v14  ;;  %2644 = vmatmul.bf16.vlgmr.msra.gmra.mxu3 %v5766_v40 }
 0x388   :  { %2651 = vmatpush.bf16.msrb.mxu0 %v7025_v25  ;;  %2665 = vmatpush.bf16.msrb.mxu1 %v5297_v20 }
 0x389   :  { %2707 = vmatpush.bf16.msrb.mxu2 %v4733_v6  ;;  %2721 = vmatpush.bf16.msrb.mxu3 %v4735_v7  ;;  %v7196_v7 = vld [vmem:[#allocation70_spill] sm:$0xff]  ;;  %v7198_v6 = vld [vmem:[#allocation72_spill] sm:$0xff] }
 0x38c   :  { %2652 = vmatpush.bf16.msrb.mxu0 %v7026_v1  ;;  %2666 = vmatpush.bf16.msrb.mxu1 %v7027_v58  ;;  %v7139_v1 = vld [vmem:[#allocation17_spill] sm:$0xff] }
 0x38d   :  { %2708 = vmatpush.bf16.msrb.mxu2 %v7028_v11  ;;  %2722 = vmatpush.bf16.msrb.mxu3 %v7029_v4  ;;  %v7140_v11 = vld [vmem:[#allocation165_spill] sm:$0xff] }
 0x390   :  { %2653 = vmatpush.bf16.msrb.mxu0 %v5318_v29  ;;  %2667 = vmatpush.bf16.msrb.mxu1 %v5320_v15  ;;  %v7191_v15 = vld [vmem:[#allocation66_spill] sm:$0xff]  ;;  %v7193_v29 = vld [vmem:[#allocation171_spill] sm:$0xff] }
 0x391   :  { %2709 = vmatpush.bf16.msrb.mxu2 %v4769_v30  ;;  %2723 = vmatpush.bf16.msrb.mxu3 %v4771_v31  ;;  %v7141_v30 = vld [vmem:[#allocation167_spill] sm:$0xff]  ;;  %v7142_v31 = vld [vmem:[#allocation20_spill] sm:$0xff] }
 0x394   :  { %2654 = vmatpush.bf16.msrb.mxu0 %v5329_v42  ;;  %2668 = vmatpush.bf16.msrb.mxu1 %v5331_v39  ;;  %v7143_v42 = vld [vmem:[#allocation21_spill] sm:$0xff] }
 0x395   :  { %2710 = vmatpush.bf16.msrb.mxu2 %v4785_v35  ;;  %2724 = vmatpush.bf16.msrb.mxu3 %v7139_v1  ;;  %v4310_v1 = vld [vmem:[%s6406_s7 + $0xc] sm:$0xf]  ;;  %v7150_v35 = vld [vmem:[#allocation24_spill] sm:$0xff] }
 0x398   :  { %2655 = vmatpush.bf16.msrb.mxu0 %v5340_v33  ;;  %2669 = vmatpush.bf16.msrb.mxu1 %v7140_v11  ;;  %v4561_v11 = vld [vmem:[%s6406_s7 + $0x1c] sm:$0xf0] }
 0x399   :  { %2711 = vmatpush.bf16.msrb.mxu2 %v4804_v41  ;;  %2725 = vmatpush.bf16.msrb.mxu3 %v4809_v43  ;;  %v7144_v33 = vld [vmem:[#allocation168_spill] sm:$0xff]  ;;  %v7145_v41 = vld [vmem:[#allocation169_spill] sm:$0xff]  ;;  %v7146_v43 = vld [vmem:[#allocation22_spill] sm:$0xff] }
 0x39c   :  { %2656 = vmatpush.bf16.msrb.mxu0 %v5348_v18  ;;  %2670 = vmatpush.bf16.msrb.mxu1 %v7141_v30  ;;  %v7147_v18 = vld [vmem:[#allocation23_spill] sm:$0xff]  ;;  %v4311_v30 = vor.u32 %v4561_v11, %v4310_v1  ;;  %v7156_v1 = vld [vmem:[#allocation40_spill] sm:$0xff] }
 0x39d   :  { %2712 = vmatpush.bf16.msrb.mxu2 %v7142_v31  ;;  %2726 = vmatpush.bf16.msrb.mxu3 %v7143_v42  ;;  %v7148_v31 = vld [vmem:[#allocation33_spill] sm:$0xff]  ;;  %v7149_v42 = vld [vmem:[#allocation34_spill] sm:$0xff]  ;;  %v7155_v11 = vld [vmem:[#allocation27_spill] sm:$0xff] }
 0x3a0   :  { %2657 = vmatpush.bf16.msrb.mxu0 %v7144_v33  ;;  %2671 = vmatpush.bf16.msrb.mxu1 %v7145_v41  ;;  %v7151_v33 = vld [vmem:[#allocation25_spill] sm:$0xff] }
 0x3a1   :  { %2713 = vmatpush.bf16.msrb.mxu2 %v7146_v43  ;;  %2727 = vmatpush.bf16.msrb.mxu3 %v7147_v18  ;;  %v7152_v41 = vld [vmem:[#allocation37_spill] sm:$0xff]  ;;  %v7153_v43 = vld [vmem:[#allocation38_spill] sm:$0xff] }
 0x3a2   :  { %v7154_v18 = vld [vmem:[#allocation26_spill] sm:$0xff] }
 0x3a3   :  { %2658 = vmatmul.bf16.vlgmr.msrb.gmra.mxu0 %v5764_v14  ;;  %2672 = vmatmul.bf16.vlgmr.msrb.gmra.mxu1 %v5766_v40  ;;  %v7158_v14 = vld [vmem:[#allocation28_spill] sm:$0xff]  ;;  %v7159_v40 = vld [vmem:[#allocation29_spill] sm:$0xff] }
 0x3a4   :  { %2736 = vmatpush.bf16.msra.mxu0 %v7148_v31  ;;  %2750 = vmatpush.bf16.msra.mxu1 %v7149_v42  ;;  %v7157_v42 = vld [vmem:[#allocation41_spill] sm:$0xff]  ;;  %v7184_v31 = vld [vmem:[#allocation60_spill] sm:$0xff] }
 0x3a5   :  { %2714 = vmatmul.bf16.vlgmr.msrb.gmra.mxu2 %v4311_v30  ;;  %2728 = vmatmul.bf16.vlgmr.msrb.gmra.mxu3 %v4311_v30  ;;  %v7160_v30 = vld [vmem:[#allocation42_spill] sm:$0xff] }
 0x3a6   :  { %2764 = vmatpush.bf16.msra.mxu2 %v7150_v35  ;;  %2778 = vmatpush.bf16.msra.mxu3 %v7151_v33  ;;  %v7161_v35 = vld [vmem:[#allocation43_spill] sm:$0xff]  ;;  %v7162_v33 = vld [vmem:[#allocation30_spill] sm:$0xff] }
 0x3a8   :  { %2737 = vmatpush.bf16.msra.mxu0 %v7152_v41  ;;  %2751 = vmatpush.bf16.msra.mxu1 %v7153_v43  ;;  %v7163_v41 = vld [vmem:[#allocation31_spill] sm:$0xff]  ;;  %v7164_v43 = vld [vmem:[#allocation44_spill] sm:$0xff] }
 0x3aa   :  { %2765 = vmatpush.bf16.msra.mxu2 %v7154_v18  ;;  %2779 = vmatpush.bf16.msra.mxu3 %v7155_v11  ;;  %v7165_v18 = vld [vmem:[#allocation45_spill] sm:$0xff]  ;;  %v7166_v11 = vld [vmem:[#allocation32_spill] sm:$0xff] }
 0x3ac   :  { %2738 = vmatpush.bf16.msra.mxu0 %v7156_v1  ;;  %2752 = vmatpush.bf16.msra.mxu1 %v7157_v42  ;;  %v7167_v1 = vld [vmem:[#allocation35_spill] sm:$0xff]  ;;  %v7168_v42 = vld [vmem:[#allocation46_spill] sm:$0xff] }
 0x3ae   :  { %2766 = vmatpush.bf16.msra.mxu2 %v7158_v14  ;;  %2780 = vmatpush.bf16.msra.mxu3 %v7159_v40  ;;  %v7169_v14 = vld [vmem:[#allocation47_spill] sm:$0xff]  ;;  %v7170_v40 = vld [vmem:[#allocation36_spill] sm:$0xff] }
 0x3b0   :  { %2739 = vmatpush.bf16.msra.mxu0 %v7160_v30  ;;  %2753 = vmatpush.bf16.msra.mxu1 %v7161_v35  ;;  %v7171_v30 = vld [vmem:[#allocation39_spill] sm:$0xff]  ;;  %v7172_v35 = vld [vmem:[#allocation48_spill] sm:$0xff] }
 0x3b2   :  { %2767 = vmatpush.bf16.msra.mxu2 %v7162_v33  ;;  %2781 = vmatpush.bf16.msra.mxu3 %v7163_v41  ;;  %v7173_v33 = vld [vmem:[#allocation49_spill] sm:$0xff]  ;;  %v7174_v41 = vld [vmem:[#allocation50_spill] sm:$0xff] }
 0x3b4   :  { %2740 = vmatpush.bf16.msra.mxu0 %v7164_v43  ;;  %2754 = vmatpush.bf16.msra.mxu1 %v7165_v18  ;;  %v7175_v43 = vld [vmem:[#allocation51_spill] sm:$0xff]  ;;  %v7176_v18 = vld [vmem:[#allocation52_spill] sm:$0xff] }
 0x3b6   :  { %2768 = vmatpush.bf16.msra.mxu2 %v7166_v11  ;;  %2782 = vmatpush.bf16.msra.mxu3 %v7167_v1  ;;  %v7177_v11 = vld [vmem:[#allocation53_spill] sm:$0xff]  ;;  %v7178_v1 = vld [vmem:[#allocation56_spill] sm:$0xff] }
 0x3b8   :  { %2741 = vmatpush.bf16.msra.mxu0 %v7168_v42  ;;  %2755 = vmatpush.bf16.msra.mxu1 %v7169_v14  ;;  %v7179_v42 = vld [vmem:[#allocation57_spill] sm:$0xff]  ;;  %v7180_v14 = vld [vmem:[#allocation54_spill] sm:$0xff] }
 0x3ba   :  { %2769 = vmatpush.bf16.msra.mxu2 %v7170_v40  ;;  %2783 = vmatpush.bf16.msra.mxu3 %v7171_v30  ;;  %v7181_v40 = vld [vmem:[#allocation55_spill] sm:$0xff]  ;;  %v7182_v30 = vld [vmem:[#allocation58_spill] sm:$0xff] }
 0x3bc   :  { %2742 = vmatpush.bf16.msra.mxu0 %v7172_v35  ;;  %2756 = vmatpush.bf16.msra.mxu1 %v7173_v33  ;;  %v7183_v35 = vld [vmem:[#allocation59_spill] sm:$0xff] }
 0x3be   :  { %2770 = vmatpush.bf16.msra.mxu2 %v7174_v41  ;;  %2784 = vmatpush.bf16.msra.mxu3 %v7175_v43  ;;  %v7185_v43 = vld [vmem:[#allocation61_spill] sm:$0xff] }
 0x3bf   :  { %v2435_v33 = vpop.f32.mrf.mxu0  ;;  %v2449_v41 = vpop.f32.mrf.mxu1 }
 0x3c0   :  { %2743 = vmatpush.bf16.msra.mxu0 %v7176_v18  ;;  %2757 = vmatpush.bf16.msra.mxu1 %v7177_v11  ;;  %v7186_v18 = vld [vmem:[#allocation62_spill] sm:$0xff]  ;;  %v7187_v11 = vld [vmem:[#allocation63_spill] sm:$0xff] }
 0x3c2   :  { %2771 = vmatpush.bf16.msra.mxu2 %v7180_v14  ;;  %2785 = vmatpush.bf16.msra.mxu3 %v7181_v40  ;;  %v7190_v14 = vld [vmem:[#allocation170_spill] sm:$0xff] }
 0x3c3   :  { %v2436_v40 = vadd.f32 %v2435_v33, %v7190_v14 }
 0x3c4   :  { %2792 = vmatpush.bf16.msrb.mxu0 %v7178_v1  ;;  %2806 = vmatpush.bf16.msrb.mxu1 %v7179_v42  ;;  %v7188_v1 = vld [vmem:[#allocation64_spill] sm:$0xff]  ;;  %v7189_v42 = vld [vmem:[#allocation65_spill] sm:$0xff] }
 0x3c6   :  { %2820 = vmatpush.bf16.msrb.mxu2 %v7182_v30  ;;  %2834 = vmatpush.bf16.msrb.mxu3 %v7183_v35  ;;  %v2463_v39 = vpop.f32.mrf.mxu2  ;;  %v2477_v30 = vpop.f32.mrf.mxu3  ;;  %v7192_v35 = vld [vmem:[#allocation67_spill] sm:$0xff] }
 0x3c7   :  { %v2437_v4 = vpop.f32.mrf.mxu0 }
 0x3c8   :  { %2793 = vmatpush.bf16.msrb.mxu0 %v7184_v31  ;;  %2807 = vmatpush.bf16.msrb.mxu1 %v7185_v43  ;;  %v2464_v31 = vadd.f32 %v2463_v39, %v7193_v29  ;;  %v7194_v43 = vld [vmem:[#allocation68_spill] sm:$0xff]  ;;  %v2438_v39 = vadd.f32 %v2437_v4, %v7190_v14 }
 0x3ca   :  { %2821 = vmatpush.bf16.msrb.mxu2 %v7186_v18  ;;  %2835 = vmatpush.bf16.msrb.mxu3 %v7187_v11  ;;  %v7195_v18 = vld [vmem:[#allocation69_spill] sm:$0xff]  ;;  %v2450_v11 = vadd.f32 %v2449_v41, %v2436_v40  ;;  %v2478_v58 = vadd.f32 %v2477_v30, %v2464_v31  ;;  %v7200_v41 = vld [vmem:[#allocation74_spill] sm:$0xff]  ;;  %v7201_v31 = vld [vmem:[#allocation75_spill] sm:$0xff] }
 0x3cc   :  { %2794 = vmatpush.bf16.msrb.mxu0 %v7188_v1  ;;  %2808 = vmatpush.bf16.msrb.mxu1 %v7189_v42  ;;  %v2451_v1 = vpop.f32.mrf.mxu1  ;;  %v7197_v42 = vld [vmem:[#allocation71_spill] sm:$0xff]  ;;  %v2678_v33 = vpack.c.bf16 %v2478_v58, %v2450_v11  ;;  %v7202_v58 = vld [vmem:[#allocation76_spill] sm:$0xff]  ;;  %v7203_v11 = vld [vmem:[#allocation77_spill] sm:$0xff] }
 0x3ce   :  { %2822 = vmatpush.bf16.msrb.mxu2 %v7191_v15  ;;  %2836 = vmatpush.bf16.msrb.mxu3 %v7192_v35  ;;  %v7199_v15 = vld [vmem:[#allocation73_spill] sm:$0xff]  ;;  %2688 = vst [vmem:[%s6407_s8 + $0x48] sm:$0xff] %v2678_v33  ;;  %v7205_v33 = vld [vmem:[#allocation79_spill] sm:$0xff]  ;;  %v7206_v35 = vld [vmem:[#allocation80_spill] sm:$0xff] }
 0x3cf   :  { %v2491_v30 = vpop.f32.mrf.mxu0 }
 0x3d0   :  { %2795 = vmatpush.bf16.msrb.mxu0 %v7194_v43  ;;  %2809 = vmatpush.bf16.msrb.mxu1 %v7195_v18  ;;  %v2465_v43 = vpop.f32.mrf.mxu2  ;;  %v2479_v18 = vpop.f32.mrf.mxu3 }
 0x3d1   :  { %v2466_v40 = vadd.f32 %v2465_v43, %v7193_v29  ;;  %v7208_v43 = vld [vmem:[#allocation172_spill] sm:$0xff] }
 0x3d2   :  { %2823 = vmatpush.bf16.msrb.mxu2 %v7196_v7  ;;  %2837 = vmatpush.bf16.msrb.mxu3 %v7197_v42  ;;  %v7204_v42 = vld [vmem:[#allocation78_spill] sm:$0xff] }
 0x3d4   :  { %2796 = vmatpush.bf16.msrb.mxu0 %v7198_v6  ;;  %2810 = vmatpush.bf16.msrb.mxu1 %v7199_v15  ;;  %v2452_v15 = vadd.f32 %v2451_v1, %v2438_v39  ;;  %v2480_v6 = vadd.f32 %v2479_v18, %v2466_v40  ;;  %v2505_v7 = vpop.f32.mrf.mxu1  ;;  %v7209_v1 = vld [vmem:[#allocation82_spill] sm:$0xff]  ;;  %v7210_v18 = vld [vmem:[#allocation83_spill] sm:$0xff] }
 0x3d6   :  { %2824 = vmatpush.bf16.msrb.mxu2 %v7200_v41  ;;  %2838 = vmatpush.bf16.msrb.mxu3 %v7201_v31  ;;  %v2683_v4 = vpack.c.bf16 %v2480_v6, %v2452_v15  ;;  %v7207_v41 = vld [vmem:[#allocation81_spill] sm:$0xff]  ;;  %v7211_v6 = vld [vmem:[#allocation84_spill] sm:$0xff] }
 0x3d7   :  { %v7212_v15 = vld [vmem:[#allocation85_spill] sm:$0xff]  ;;  %v2493_v40 = vpop.f32.mrf.mxu0 }
 0x3d8   :  { %2797 = vmatpush.bf16.msrb.mxu0 %v7202_v58  ;;  %2811 = vmatpush.bf16.msrb.mxu1 %v7203_v11  ;;  %2693 = vst [vmem:[%s6407_s8 + $0xfc] sm:$0xff] %v2683_v4  ;;  %v2492_v58 = vadd.f32 %v2491_v30, %v7208_v43  ;;  %v2519_v31 = vpop.f32.mrf.mxu2  ;;  %v2533_v11 = vpop.f32.mrf.mxu3  ;;  %v7214_v4 = vld [vmem:[#allocation87_spill] sm:$0xff] }
 0x3d9   :  { %v2520_v39 = vadd.f32 %v2519_v31, %v7084_v23 }
 0x3da   :  { %2825 = vmatpush.bf16.msrb.mxu2 %v7204_v42  ;;  %2839 = vmatpush.bf16.msrb.mxu3 %v7205_v33  ;;  %v7213_v33 = vld [vmem:[#allocation86_spill] sm:$0xff] }
 0x3dc   :  { %2798 = vmatpush.bf16.msrb.mxu0 %v7206_v35  ;;  %2812 = vmatpush.bf16.msrb.mxu1 %v7207_v41  ;;  %v2506_v41 = vadd.f32 %v2505_v7, %v2492_v58  ;;  %v2534_v35 = vadd.f32 %v2533_v11, %v2520_v39 }
 0x3de   :  { %2826 = vmatpush.bf16.msrb.mxu2 %v7209_v1  ;;  %2840 = vmatpush.bf16.msrb.mxu3 %v7210_v18  ;;  %v2679_v30 = vpack.c.bf16 %v2534_v35, %v2506_v41  ;;  %v2494_v18 = vadd.f32 %v2493_v40, %v7208_v43  ;;  %v2507_v1 = vpop.f32.mrf.mxu1 }
 0x3e0   :  { %2799 = vmatpush.bf16.msrb.mxu0 %v7211_v6  ;;  %2813 = vmatpush.bf16.msrb.mxu1 %v7212_v15  ;;  %2689 = vst [vmem:[%s6407_s8 + $0x50] sm:$0xff] %v2679_v30  ;;  %v2521_v31 = vpop.f32.mrf.mxu2  ;;  %v2535_v42 = vpop.f32.mrf.mxu3  ;;  %v2508_v15 = vadd.f32 %v2507_v1, %v2494_v18 }
 0x3e1   :  { %v2522_v6 = vadd.f32 %v2521_v31, %v7084_v23  ;;  %v2547_v7 = vpop.f32.mrf.mxu0 }
 0x3e2   :  { %2827 = vmatpush.bf16.msrb.mxu2 %v7213_v33  ;;  %2841 = vmatpush.bf16.msrb.mxu3 %v7214_v4  ;;  %v2548_v35 = vadd.f32 %v2547_v7, %v5473_v8 }
 0x3e3   :  { %v2536_v29 = vadd.f32 %v2535_v42, %v2522_v6 }
 0x3e5   :  { %v2684_v58 = vpack.c.bf16 %v2536_v29, %v2508_v15 }
 0x3e6   :  { %v2561_v41 = vpop.f32.mrf.mxu1 }
 0x3e7   :  { %2694 = vst [vmem:[%s6407_s8 + $0x104] sm:$0xff] %v2684_v58  ;;  %v2562_v30 = vadd.f32 %v2561_v41, %v2548_v35 }
 0x3e9   :  { %v2575_v11 = vpop.f32.mrf.mxu2  ;;  %v2589_v39 = vpop.f32.mrf.mxu3 }
 0x3ea   :  { %v2576_v40 = vadd.f32 %v2575_v11, %v7089_v55  ;;  %v2549_v33 = vpop.f32.mrf.mxu0 }
 0x3eb   :  { %v2550_v29 = vadd.f32 %v2549_v33, %v5473_v8 }
 0x3ec   :  { %v2590_v4 = vadd.f32 %v2589_v39, %v2576_v40 }
 0x3ee   :  { %v2680_v43 = vpack.c.bf16 %v2590_v4, %v2562_v30  ;;  %v2563_v18 = vpop.f32.mrf.mxu1 }
 0x3ef   :  { %v2564_v15 = vadd.f32 %v2563_v18, %v2550_v29 }
 0x3f0   :  { %2690 = vst [vmem:[%s6407_s8 + $0x58] sm:$0xff] %v2680_v43 }
 0x3f1   :  { %v2577_v42 = vpop.f32.mrf.mxu2  ;;  %v2591_v6 = vpop.f32.mrf.mxu3 }
 0x3f2   :  { %v2578_v1 = vadd.f32 %v2577_v42, %v7089_v55 }
 0x3f4   :  { %v2592_v31 = vadd.f32 %v2591_v6, %v2578_v1 }
 0x3f6   :  { %v2685_v7 = vpack.c.bf16 %v2592_v31, %v2564_v15 }
 0x3f8   :  { %2695 = vst [vmem:[%s6407_s8 + $0x10c] sm:$0xff] %v2685_v7 }
 0x400   :  { %v2603_v58 = vpop.f32.mrf.mxu0  ;;  %v2617_v35 = vpop.f32.mrf.mxu1 }
 0x401   :  { %v2604_v4 = vadd.f32 %v2603_v58, %v5492_v44 }
 0x403   :  { %v2618_v11 = vadd.f32 %v2617_v35, %v2604_v4  ;;  %v5995_v35 = vld [vmem:[%s6405_s6 + $0x8] ss:$0 sm:$0xff] }
 0x408   :  { %v2605_v40 = vpop.f32.mrf.mxu0  ;;  %v2619_v18 = vpop.f32.mrf.mxu1 }
 0x409   :  { %v2631_v41 = vpop.f32.mrf.mxu2  ;;  %v2645_v43 = vpop.f32.mrf.mxu3  ;;  %v2606_v29 = vadd.f32 %v2605_v40, %v5492_v44 }
 0x40a   :  { %v2632_v33 = vadd.f32 %v2631_v41, %v5495_v53 }
 0x40b   :  { %v2620_v15 = vadd.f32 %v2619_v18, %v2606_v29 }
 0x40c   :  { %v2646_v39 = vadd.f32 %v2645_v43, %v2632_v33 }
 0x40e   :  { %v2681_v30 = vpack.c.bf16 %v2646_v39, %v2618_v11 }
 0x410   :  { %2691 = vst [vmem:[%s6407_s8 + $0x60] sm:$0xff] %v2681_v30 }
 0x411   :  { %v2633_v42 = vpop.f32.mrf.mxu2  ;;  %v2647_v6 = vpop.f32.mrf.mxu3 }
 0x412   :  { %v2634_v1 = vadd.f32 %v2633_v42, %v5495_v53 }
 0x414   :  { %v2648_v31 = vadd.f32 %v2647_v6, %v2634_v1 }
 0x416   :  { %v2686_v7 = vpack.c.bf16 %v2648_v31, %v2620_v15 }
 0x418   :  { %2696 = vst [vmem:[%s6407_s8 + $0x114] sm:$0xff] %v2686_v7 }
 0x420   :  { %v2659_v58 = vpop.f32.mrf.mxu0  ;;  %v2673_v4 = vpop.f32.mrf.mxu1 }
 0x421   :  { %v2660_v41 = vadd.f32 %v5995_v35, %v2659_v58 }
 0x423   :  { %v2674_v43 = vadd.f32 %v2673_v4, %v2660_v41 }
 0x425   :  { %v2682_v33 = vpack.c.bf16 %v2674_v43, %v2674_v43  ;;  %v7215_v43 = vld [vmem:[#allocation100_spill] sm:$0xff] }
 0x427   :  { %2692 = vst [vmem:[%s6407_s8 + $0x68] sm:$0xf] %v2682_v33  ;;  %v7216_v33 = vld [vmem:[#allocation101_spill] sm:$0xff] }
 0x428   :  { %v2715_v11 = vpop.f32.mrf.mxu2  ;;  %v2729_v39 = vpop.f32.mrf.mxu3 }
 0x429   :  { %v2661_v40 = vpop.f32.mrf.mxu0  ;;  %v2675_v29 = vpop.f32.mrf.mxu1  ;;  %v2716_v15 = vadd.f32 %v2715_v11, %v6967_v26  ;;  %v2730_v31 = vadd.f32 %v2729_v39, %v6968_v0  ;;  %v7217_v11 = vld [vmem:[#allocation102_spill] sm:$0xff]  ;;  %v7218_v39 = vld [vmem:[#allocation103_spill] sm:$0xff] }
 0x42a   :  { %v2662_v30 = vadd.f32 %v5995_v35, %v2661_v40  ;;  %v7219_v40 = vld [vmem:[#allocation104_spill] sm:$0xff] }
 0x42c   :  { %v2676_v42 = vadd.f32 %v2675_v29, %v2662_v30  ;;  %v7220_v30 = vld [vmem:[#allocation105_spill] sm:$0xff]  ;;  %v7221_v29 = vld [vmem:[#allocation106_spill] sm:$0xff] }
 0x42e   :  { %v2687_v1 = vpack.c.bf16 %v2676_v42, %v2676_v42  ;;  %v7222_v42 = vld [vmem:[#allocation107_spill] sm:$0xff] }
 0x430   :  { %2697 = vst [vmem:[%s6407_s8 + $0x11c] sm:$0xf] %v2687_v1  ;;  %v2717_v18 = vpop.f32.mrf.mxu2  ;;  %v2731_v6 = vpop.f32.mrf.mxu3  ;;  %v7223_v1 = vld [vmem:[#allocation108_spill] sm:$0xff] }
 0x431   :  { %v2718_v7 = vadd.f32 %v2717_v18, %v6967_v26  ;;  %v2732_v58 = vadd.f32 %v2731_v6, %v6968_v0  ;;  %v7224_v18 = vld [vmem:[#allocation109_spill] sm:$0xff]  ;;  %v7225_v6 = vld [vmem:[#allocation110_spill] sm:$0xff] }
 0x433   :  { %v6009_v4 = vpack.c.bf16 %v2718_v7, %v2716_v15  ;;  %v6011_v41 = vpack.c.bf16 %v2732_v58, %v2730_v31  ;;  %v7226_v15 = vld [vmem:[#allocation111_spill] sm:$0xff]  ;;  %v7227_v31 = vld [vmem:[#allocation112_spill] sm:$0xff]  ;;  %v7228_v7 = vld [vmem:[#allocation113_spill] sm:$0xff] }
 0x434   :  { %v7229_v58 = vld [vmem:[#allocation114_spill] sm:$0xff] }
 0x435   :  { %2744 = vmatmul.bf16.vlgmr.msra.gmra.mxu0 %v6009_v4  ;;  %2758 = vmatmul.bf16.vlgmr.msra.gmra.mxu1 %v6011_v41 }
 0x436   :  { %2772 = vmatmul.bf16.vlgmr.msra.gmra.mxu2 %v6009_v4  ;;  %2786 = vmatmul.bf16.vlgmr.msra.gmra.mxu3 %v6011_v41 }
 0x437   :  { %2848 = vmatpush.bf16.msra.mxu0 %v6969_v19  ;;  %2862 = vmatpush.bf16.msra.mxu1 %v7090_v37 }
 0x438   :  { %2876 = vmatpush.bf16.msra.mxu2 %v7091_v56  ;;  %2890 = vmatpush.bf16.msra.mxu3 %v7092_v36 }
 0x43b   :  { %2849 = vmatpush.bf16.msra.mxu0 %v7093_v48  ;;  %2863 = vmatpush.bf16.msra.mxu1 %v6974_v59 }
 0x43c   :  { %2877 = vmatpush.bf16.msra.mxu2 %v7094_v38  ;;  %2891 = vmatpush.bf16.msra.mxu3 %v7095_v60 }
 0x43f   :  { %2850 = vmatpush.bf16.msra.mxu0 %v7096_v63  ;;  %2864 = vmatpush.bf16.msra.mxu1 %v7097_v16 }
 0x440   :  { %2878 = vmatpush.bf16.msra.mxu2 %v7215_v43  ;;  %2892 = vmatpush.bf16.msra.mxu3 %v7216_v33 }
 0x443   :  { %2851 = vmatpush.bf16.msra.mxu0 %v7217_v11  ;;  %2865 = vmatpush.bf16.msra.mxu1 %v7218_v39 }
 0x444   :  { %2879 = vmatpush.bf16.msra.mxu2 %v7219_v40  ;;  %2893 = vmatpush.bf16.msra.mxu3 %v7220_v30  ;;  %v7230_v30 = vld [vmem:[#allocation115_spill] sm:$0xff]  ;;  %v7231_v40 = vld [vmem:[#allocation116_spill] sm:$0xff] }
 0x445   :  { %2800 = vmatmul.bf16.vlgmr.msrb.gmra.mxu0 %v6009_v4  ;;  %2814 = vmatmul.bf16.vlgmr.msrb.gmra.mxu1 %v6011_v41 }
 0x446   :  { %2828 = vmatmul.bf16.vlgmr.msrb.gmra.mxu2 %v6009_v4  ;;  %2842 = vmatmul.bf16.vlgmr.msrb.gmra.mxu3 %v6011_v41 }
 0x447   :  { %2852 = vmatpush.bf16.msra.mxu0 %v7221_v29  ;;  %2866 = vmatpush.bf16.msra.mxu1 %v7222_v42  ;;  %v7232_v29 = vld [vmem:[#allocation117_spill] sm:$0xff]  ;;  %v7233_v42 = vld [vmem:[#allocation118_spill] sm:$0xff] }
 0x448   :  { %2880 = vmatpush.bf16.msra.mxu2 %v7223_v1  ;;  %2894 = vmatpush.bf16.msra.mxu3 %v7224_v18  ;;  %v7234_v1 = vld [vmem:[#allocation119_spill] sm:$0xff]  ;;  %v7235_v18 = vld [vmem:[#allocation120_spill] sm:$0xff] }
 0x44b   :  { %2853 = vmatpush.bf16.msra.mxu0 %v7225_v6  ;;  %2867 = vmatpush.bf16.msra.mxu1 %v7226_v15  ;;  %v7236_v6 = vld [vmem:[#allocation121_spill] sm:$0xff]  ;;  %v7237_v15 = vld [vmem:[#allocation122_spill] sm:$0xff] }
 0x44c   :  { %2881 = vmatpush.bf16.msra.mxu2 %v7227_v31  ;;  %2895 = vmatpush.bf16.msra.mxu3 %v7228_v7  ;;  %v7238_v31 = vld [vmem:[#allocation123_spill] sm:$0xff]  ;;  %v7239_v7 = vld [vmem:[#allocation124_spill] sm:$0xff] }
 0x44f   :  { %2854 = vmatpush.bf16.msra.mxu0 %v7229_v58  ;;  %2868 = vmatpush.bf16.msra.mxu1 %v7230_v30  ;;  %v7240_v58 = vld [vmem:[#allocation125_spill] sm:$0xff] }
 0x450   :  { %2882 = vmatpush.bf16.msra.mxu2 %v7231_v40  ;;  %2896 = vmatpush.bf16.msra.mxu3 %v7232_v29 }
 0x453   :  { %2855 = vmatpush.bf16.msra.mxu0 %v7233_v42  ;;  %2869 = vmatpush.bf16.msra.mxu1 %v7234_v1 }
 0x454   :  { %2883 = vmatpush.bf16.msra.mxu2 %v7235_v18  ;;  %2897 = vmatpush.bf16.msra.mxu3 %v7236_v6 }
 0x456   :  { %2856 = vmatmul.bf16.vlgmr.msra.gmra.mxu0 %v6009_v4  ;;  %2870 = vmatmul.bf16.vlgmr.msra.gmra.mxu1 %v6011_v41 }
 0x457   :  { %2904 = vmatpush.bf16.msrb.mxu0 %v7237_v15  ;;  %2918 = vmatpush.bf16.msrb.mxu1 %v7238_v31 }
 0x458   :  { %2932 = vmatpush.bf16.msrb.mxu2 %v7239_v7  ;;  %2946 = vmatpush.bf16.msrb.mxu3 %v7240_v58  ;;  %v7241_v58 = vld [vmem:[#allocation135_spill] sm:$0xff] }
 0x459   :  { %2884 = vmatmul.bf16.vlgmr.msra.gmra.mxu2 %v6009_v4  ;;  %2898 = vmatmul.bf16.vlgmr.msra.gmra.mxu3 %v6011_v41 }
 0x45b   :  { %2905 = vmatpush.bf16.msrb.mxu0 %v7122_v21  ;;  %2919 = vmatpush.bf16.msrb.mxu1 %v7123_v54 }
 0x45c   :  { %2933 = vmatpush.bf16.msrb.mxu2 %v7124_v3  ;;  %2947 = vmatpush.bf16.msrb.mxu3 %v7125_v61  ;;  %v7242_v61 = vld [vmem:[#allocation140_spill] sm:$0xff] }
 0x45f   :  { %2906 = vmatpush.bf16.msrb.mxu0 %v7126_v52  ;;  %2920 = vmatpush.bf16.msrb.mxu1 %v7127_v50 }
 0x460   :  { %2934 = vmatpush.bf16.msrb.mxu2 %v7128_v46  ;;  %2948 = vmatpush.bf16.msrb.mxu3 %v7129_v9  ;;  %v7243_v46 = vld [vmem:[#allocation143_spill] sm:$0xff]  ;;  %v7244_v9 = vld [vmem:[#allocation144_spill] sm:$0xff] }
 0x463   :  { %2907 = vmatpush.bf16.msrb.mxu0 %v7130_v27  ;;  %2921 = vmatpush.bf16.msrb.mxu1 %v7241_v58  ;;  %v7245_v27 = vld [vmem:[#allocation145_spill] sm:$0xff]  ;;  %v7246_v58 = vld [vmem:[#allocation146_spill] sm:$0xff] }
 0x464   :  { %2935 = vmatpush.bf16.msrb.mxu2 %v7132_v57  ;;  %2949 = vmatpush.bf16.msrb.mxu3 %v7013_v28 }
 0x467   :  { %2908 = vmatpush.bf16.msrb.mxu0 %v7014_v47  ;;  %2922 = vmatpush.bf16.msrb.mxu1 %v7015_v34 }
 0x468   :  { %2936 = vmatpush.bf16.msrb.mxu2 %v7242_v61  ;;  %2950 = vmatpush.bf16.msrb.mxu3 %v7017_v51 }
 0x46b   :  { %2909 = vmatpush.bf16.msrb.mxu0 %v7018_v2  ;;  %2923 = vmatpush.bf16.msrb.mxu1 %v7243_v46 }
 0x46c   :  { %2937 = vmatpush.bf16.msrb.mxu2 %v7244_v9  ;;  %2951 = vmatpush.bf16.msrb.mxu3 %v7245_v27  ;;  %v7320_v27 = vld [vmem:[#allocation70_spill] sm:$0xff]  ;;  %v7322_v9 = vld [vmem:[#allocation72_spill] sm:$0xff] }
 0x46f   :  { %2910 = vmatpush.bf16.msrb.mxu0 %v7246_v58  ;;  %2924 = vmatpush.bf16.msrb.mxu1 %v7023_v49 }
 0x470   :  { %2938 = vmatpush.bf16.msrb.mxu2 %v5269_v22  ;;  %2952 = vmatpush.bf16.msrb.mxu3 %v5271_v13  ;;  %v7255_v13 = vld [vmem:[#allocation14_spill] sm:$0xff]  ;;  %v7317_v22 = vld [vmem:[#allocation171_spill] sm:$0xff] }
 0x473   :  { %2911 = vmatpush.bf16.msrb.mxu0 %v5275_v12  ;;  %2925 = vmatpush.bf16.msrb.mxu1 %v7134_v45  ;;  %v7253_v45 = vld [vmem:[#allocation160_spill] sm:$0xff]  ;;  %v7254_v12 = vld [vmem:[#allocation161_spill] sm:$0xff] }
 0x474   :  { %2939 = vmatpush.bf16.msrb.mxu2 %v5281_v32  ;;  %2953 = vmatpush.bf16.msrb.mxu3 %v5283_v5  ;;  %v7247_v5 = vld [vmem:[#allocation10_spill] sm:$0xff]  ;;  %v7252_v32 = vld [vmem:[#allocation13_spill] sm:$0xff] }
 0x476   :  { %2912 = vmatmul.bf16.vlgmr.msrb.gmra.mxu0 %v6009_v4  ;;  %2926 = vmatmul.bf16.vlgmr.msrb.gmra.mxu1 %v6011_v41 }
 0x477   :  { %2960 = vmatpush.bf16.msra.mxu0 %v7135_v10  ;;  %2974 = vmatpush.bf16.msra.mxu1 %v7136_v62  ;;  %v7248_v10 = vld [vmem:[#allocation11_spill] sm:$0xff]  ;;  %v7249_v62 = vld [vmem:[#allocation158_spill] sm:$0xff] }
 0x478   :  { %3016 = vmatpush.bf16.msra.mxu2 %v7137_v24  ;;  %3030 = vmatpush.bf16.msra.mxu3 %v7138_v17  ;;  %v7250_v24 = vld [vmem:[#allocation159_spill] sm:$0xff]  ;;  %v7251_v17 = vld [vmem:[#allocation12_spill] sm:$0xff] }
 0x479   :  { %2940 = vmatmul.bf16.vlgmr.msrb.gmra.mxu2 %v6009_v4  ;;  %2954 = vmatmul.bf16.vlgmr.msrb.gmra.mxu3 %v6011_v41 }
 0x47b   :  { %2961 = vmatpush.bf16.msra.mxu0 %v7025_v25  ;;  %2975 = vmatpush.bf16.msra.mxu1 %v5297_v20  ;;  %v7256_v25 = vld [vmem:[#allocation15_spill] sm:$0xff]  ;;  %v7257_v20 = vld [vmem:[#allocation162_spill] sm:$0xff] }
 0x47c   :  { %3017 = vmatpush.bf16.msra.mxu2 %v7247_v5  ;;  %3031 = vmatpush.bf16.msra.mxu3 %v7248_v10  ;;  %v7258_v5 = vld [vmem:[#allocation163_spill] sm:$0xff]  ;;  %v7259_v10 = vld [vmem:[#allocation16_spill] sm:$0xff] }
 0x47f   :  { %2962 = vmatpush.bf16.msra.mxu0 %v7249_v62  ;;  %2976 = vmatpush.bf16.msra.mxu1 %v7250_v24  ;;  %v7260_v62 = vld [vmem:[#allocation17_spill] sm:$0xff]  ;;  %v7261_v24 = vld [vmem:[#allocation164_spill] sm:$0xff] }
 0x480   :  { %3018 = vmatpush.bf16.msra.mxu2 %v7251_v17  ;;  %3032 = vmatpush.bf16.msra.mxu3 %v7252_v32  ;;  %v7262_v17 = vld [vmem:[#allocation165_spill] sm:$0xff]  ;;  %v7263_v32 = vld [vmem:[#allocation18_spill] sm:$0xff] }
 0x483   :  { %2963 = vmatpush.bf16.msra.mxu0 %v7253_v45  ;;  %2977 = vmatpush.bf16.msra.mxu1 %v7254_v12  ;;  %v7264_v45 = vld [vmem:[#allocation19_spill] sm:$0xff]  ;;  %v7265_v12 = vld [vmem:[#allocation166_spill] sm:$0xff] }
 0x484   :  { %3019 = vmatpush.bf16.msra.mxu2 %v7255_v13  ;;  %3033 = vmatpush.bf16.msra.mxu3 %v7256_v25  ;;  %v7266_v13 = vld [vmem:[#allocation167_spill] sm:$0xff]  ;;  %v7267_v25 = vld [vmem:[#allocation20_spill] sm:$0xff] }
 0x487   :  { %2964 = vmatpush.bf16.msra.mxu0 %v7257_v20  ;;  %2978 = vmatpush.bf16.msra.mxu1 %v7258_v5  ;;  %v7268_v20 = vld [vmem:[#allocation21_spill] sm:$0xff]  ;;  %v7315_v5 = vld [vmem:[#allocation66_spill] sm:$0xff] }
 0x488   :  { %3020 = vmatpush.bf16.msra.mxu2 %v7259_v10  ;;  %3034 = vmatpush.bf16.msra.mxu3 %v7260_v62  ;;  %v4314_v62 = vld [vmem:[%s6406_s7 + $0x10] sm:$0xf]  ;;  %v4562_v10 = vld [vmem:[%s6406_s7 + $0x20] sm:$0xf0] }
 0x48b   :  { %2965 = vmatpush.bf16.msra.mxu0 %v7261_v24  ;;  %2979 = vmatpush.bf16.msra.mxu1 %v7262_v17  ;;  %v7269_v17 = vld [vmem:[#allocation168_spill] sm:$0xff] }
 0x48c   :  { %3021 = vmatpush.bf16.msra.mxu2 %v7263_v32  ;;  %3035 = vmatpush.bf16.msra.mxu3 %v7264_v45  ;;  %v7270_v32 = vld [vmem:[#allocation169_spill] sm:$0xff]  ;;  %v7271_v45 = vld [vmem:[#allocation22_spill] sm:$0xff]  ;;  %v7275_v24 = vld [vmem:[#allocation24_spill] sm:$0xff] }
 0x48f   :  { %2966 = vmatpush.bf16.msra.mxu0 %v7265_v12  ;;  %2980 = vmatpush.bf16.msra.mxu1 %v7266_v13  ;;  %v7272_v12 = vld [vmem:[#allocation23_spill] sm:$0xff]  ;;  %v4315_v13 = vor.u32 %v4562_v10, %v4314_v62  ;;  %v7281_v10 = vld [vmem:[#allocation40_spill] sm:$0xff] }
 0x490   :  { %3022 = vmatpush.bf16.msra.mxu2 %v7267_v25  ;;  %3036 = vmatpush.bf16.msra.mxu3 %v7268_v20  ;;  %v7273_v25 = vld [vmem:[#allocation33_spill] sm:$0xff]  ;;  %v7274_v20 = vld [vmem:[#allocation34_spill] sm:$0xff]  ;;  %v7280_v62 = vld [vmem:[#allocation27_spill] sm:$0xff] }
 0x493   :  { %2967 = vmatpush.bf16.msra.mxu0 %v7269_v17  ;;  %2981 = vmatpush.bf16.msra.mxu1 %v7270_v32  ;;  %v7276_v17 = vld [vmem:[#allocation25_spill] sm:$0xff] }
 0x494   :  { %3023 = vmatpush.bf16.msra.mxu2 %v7271_v45  ;;  %3037 = vmatpush.bf16.msra.mxu3 %v7272_v12  ;;  %v7277_v32 = vld [vmem:[#allocation37_spill] sm:$0xff]  ;;  %v7278_v45 = vld [vmem:[#allocation38_spill] sm:$0xff] }
 0x495   :  { %v7279_v12 = vld [vmem:[#allocation26_spill] sm:$0xff] }
 0x496   :  { %2968 = vmatmul.bf16.vlgmr.msra.gmra.mxu0 %v6009_v4  ;;  %2982 = vmatmul.bf16.vlgmr.msra.gmra.mxu1 %v6011_v41  ;;  %v7283_v4 = vld [vmem:[#allocation28_spill] sm:$0xff]  ;;  %v7284_v41 = vld [vmem:[#allocation29_spill] sm:$0xff] }
 0x497   :  { %3046 = vmatpush.bf16.msrb.mxu0 %v7273_v25  ;;  %3060 = vmatpush.bf16.msrb.mxu1 %v7274_v20  ;;  %v7282_v25 = vld [vmem:[#allocation41_spill] sm:$0xff]  ;;  %v7289_v20 = vld [vmem:[#allocation44_spill] sm:$0xff] }
 0x498   :  { %3024 = vmatmul.bf16.vlgmr.msra.gmra.mxu2 %v4315_v13  ;;  %3038 = vmatmul.bf16.vlgmr.msra.gmra.mxu3 %v4315_v13  ;;  %v7285_v13 = vld [vmem:[#allocation42_spill] sm:$0xff] }
 0x499   :  { %3074 = vmatpush.bf16.msrb.mxu2 %v7275_v24  ;;  %3088 = vmatpush.bf16.msrb.mxu3 %v7276_v17  ;;  %v7286_v24 = vld [vmem:[#allocation43_spill] sm:$0xff]  ;;  %v7287_v17 = vld [vmem:[#allocation30_spill] sm:$0xff] }
 0x49b   :  { %3047 = vmatpush.bf16.msrb.mxu0 %v7277_v32  ;;  %3061 = vmatpush.bf16.msrb.mxu1 %v7278_v45  ;;  %v7288_v32 = vld [vmem:[#allocation31_spill] sm:$0xff]  ;;  %v7290_v45 = vld [vmem:[#allocation45_spill] sm:$0xff] }
 0x49d   :  { %3075 = vmatpush.bf16.msrb.mxu2 %v7279_v12  ;;  %3089 = vmatpush.bf16.msrb.mxu3 %v7280_v62  ;;  %v7291_v12 = vld [vmem:[#allocation32_spill] sm:$0xff]  ;;  %v7292_v62 = vld [vmem:[#allocation35_spill] sm:$0xff] }
 0x49f   :  { %3048 = vmatpush.bf16.msrb.mxu0 %v7281_v10  ;;  %3062 = vmatpush.bf16.msrb.mxu1 %v7282_v25  ;;  %v7293_v10 = vld [vmem:[#allocation46_spill] sm:$0xff]  ;;  %v7294_v25 = vld [vmem:[#allocation47_spill] sm:$0xff] }
 0x4a1   :  { %3076 = vmatpush.bf16.msrb.mxu2 %v7283_v4  ;;  %3090 = vmatpush.bf16.msrb.mxu3 %v7284_v41  ;;  %v7295_v4 = vld [vmem:[#allocation36_spill] sm:$0xff]  ;;  %v7296_v41 = vld [vmem:[#allocation39_spill] sm:$0xff] }
 0x4a3   :  { %3049 = vmatpush.bf16.msrb.mxu0 %v7285_v13  ;;  %3063 = vmatpush.bf16.msrb.mxu1 %v7286_v24  ;;  %v7297_v13 = vld [vmem:[#allocation48_spill] sm:$0xff]  ;;  %v7298_v24 = vld [vmem:[#allocation49_spill] sm:$0xff] }
 0x4a5   :  { %3077 = vmatpush.bf16.msrb.mxu2 %v7287_v17  ;;  %3091 = vmatpush.bf16.msrb.mxu3 %v7288_v32  ;;  %v7299_v17 = vld [vmem:[#allocation50_spill] sm:$0xff]  ;;  %v7300_v32 = vld [vmem:[#allocation51_spill] sm:$0xff] }
 0x4a7   :  { %3050 = vmatpush.bf16.msrb.mxu0 %v7289_v20  ;;  %3064 = vmatpush.bf16.msrb.mxu1 %v7290_v45  ;;  %v7301_v20 = vld [vmem:[#allocation52_spill] sm:$0xff]  ;;  %v7302_v45 = vld [vmem:[#allocation53_spill] sm:$0xff] }
 0x4a9   :  { %3078 = vmatpush.bf16.msrb.mxu2 %v7291_v12  ;;  %3092 = vmatpush.bf16.msrb.mxu3 %v7292_v62  ;;  %v7303_v12 = vld [vmem:[#allocation56_spill] sm:$0xff]  ;;  %v7304_v62 = vld [vmem:[#allocation57_spill] sm:$0xff] }
 0x4ab   :  { %3051 = vmatpush.bf16.msrb.mxu0 %v7293_v10  ;;  %3065 = vmatpush.bf16.msrb.mxu1 %v7294_v25  ;;  %v7305_v10 = vld [vmem:[#allocation54_spill] sm:$0xff]  ;;  %v7306_v25 = vld [vmem:[#allocation55_spill] sm:$0xff] }
 0x4ad   :  { %3079 = vmatpush.bf16.msrb.mxu2 %v7295_v4  ;;  %3093 = vmatpush.bf16.msrb.mxu3 %v7296_v41  ;;  %v7307_v4 = vld [vmem:[#allocation58_spill] sm:$0xff]  ;;  %v7308_v41 = vld [vmem:[#allocation59_spill] sm:$0xff] }
 0x4af   :  { %3052 = vmatpush.bf16.msrb.mxu0 %v7297_v13  ;;  %3066 = vmatpush.bf16.msrb.mxu1 %v7298_v24 }
 0x4b1   :  { %3080 = vmatpush.bf16.msrb.mxu2 %v7299_v17  ;;  %3094 = vmatpush.bf16.msrb.mxu3 %v7300_v32  ;;  %v7309_v17 = vld [vmem:[#allocation60_spill] sm:$0xff]  ;;  %v7310_v32 = vld [vmem:[#allocation61_spill] sm:$0xff] }
 0x4b2   :  { %v2745_v13 = vpop.f32.mrf.mxu0  ;;  %v2759_v24 = vpop.f32.mrf.mxu1 }
 0x4b3   :  { %3053 = vmatpush.bf16.msrb.mxu0 %v7301_v20  ;;  %3067 = vmatpush.bf16.msrb.mxu1 %v7302_v45  ;;  %v7311_v20 = vld [vmem:[#allocation62_spill] sm:$0xff]  ;;  %v7312_v45 = vld [vmem:[#allocation63_spill] sm:$0xff] }
 0x4b5   :  { %3081 = vmatpush.bf16.msrb.mxu2 %v7305_v10  ;;  %3095 = vmatpush.bf16.msrb.mxu3 %v7306_v25  ;;  %v2746_v10 = vadd.f32 %v2745_v13, %v7190_v14 }
 0x4b7   :  { %3102 = vmatpush.bf16.msra.mxu0 %v7303_v12  ;;  %3116 = vmatpush.bf16.msra.mxu1 %v7304_v62  ;;  %v7313_v12 = vld [vmem:[#allocation64_spill] sm:$0xff]  ;;  %v7314_v62 = vld [vmem:[#allocation65_spill] sm:$0xff] }
 0x4b9   :  { %3130 = vmatpush.bf16.msra.mxu2 %v7307_v4  ;;  %3144 = vmatpush.bf16.msra.mxu3 %v7308_v41  ;;  %v2773_v25 = vpop.f32.mrf.mxu2  ;;  %v2787_v4 = vpop.f32.mrf.mxu3  ;;  %v7316_v41 = vld [vmem:[#allocation67_spill] sm:$0xff] }
 0x4ba   :  { %v2747_v49 = vpop.f32.mrf.mxu0 }
 0x4bb   :  { %3103 = vmatpush.bf16.msra.mxu0 %v7309_v17  ;;  %3117 = vmatpush.bf16.msra.mxu1 %v7310_v32  ;;  %v2774_v17 = vadd.f32 %v2773_v25, %v7317_v22  ;;  %v7318_v32 = vld [vmem:[#allocation68_spill] sm:$0xff]  ;;  %v2748_v25 = vadd.f32 %v2747_v49, %v7190_v14 }
 0x4bd   :  { %3131 = vmatpush.bf16.msra.mxu2 %v7311_v20  ;;  %3145 = vmatpush.bf16.msra.mxu3 %v7312_v45  ;;  %v7319_v20 = vld [vmem:[#allocation69_spill] sm:$0xff]  ;;  %v2760_v45 = vadd.f32 %v2759_v24, %v2746_v10  ;;  %v2788_v58 = vadd.f32 %v2787_v4, %v2774_v17  ;;  %v7324_v24 = vld [vmem:[#allocation74_spill] sm:$0xff]  ;;  %v7325_v10 = vld [vmem:[#allocation75_spill] sm:$0xff] }
 0x4bf   :  { %3104 = vmatpush.bf16.msra.mxu0 %v7313_v12  ;;  %3118 = vmatpush.bf16.msra.mxu1 %v7314_v62  ;;  %v2761_v12 = vpop.f32.mrf.mxu1  ;;  %v7321_v62 = vld [vmem:[#allocation71_spill] sm:$0xff]  ;;  %v2988_v13 = vpack.c.bf16 %v2788_v58, %v2760_v45  ;;  %v7326_v58 = vld [vmem:[#allocation76_spill] sm:$0xff]  ;;  %v7328_v45 = vld [vmem:[#allocation78_spill] sm:$0xff] }
 0x4c0   :  { %v2762_v17 = vadd.f32 %v2761_v12, %v2748_v25  ;;  %v7333_v12 = vld [vmem:[#allocation82_spill] sm:$0xff]  ;;  %v7334_v25 = vld [vmem:[#allocation83_spill] sm:$0xff] }
 0x4c1   :  { %3132 = vmatpush.bf16.msra.mxu2 %v7315_v5  ;;  %3146 = vmatpush.bf16.msra.mxu3 %v7316_v41  ;;  %v7323_v5 = vld [vmem:[#allocation73_spill] sm:$0xff]  ;;  %2998 = vst [vmem:[%s6407_s8 + $0x6c] sm:$0xff] %v2988_v13  ;;  %v2775_v41 = vpop.f32.mrf.mxu2 }
 0x4c2   :  { %v2801_v4 = vpop.f32.mrf.mxu0 }
 0x4c3   :  { %3105 = vmatpush.bf16.msra.mxu0 %v7318_v32  ;;  %3119 = vmatpush.bf16.msra.mxu1 %v7319_v20  ;;  %v2789_v32 = vpop.f32.mrf.mxu3 }
 0x4c5   :  { %3133 = vmatpush.bf16.msra.mxu2 %v7320_v27  ;;  %3147 = vmatpush.bf16.msra.mxu3 %v7321_v62  ;;  %v2776_v27 = vadd.f32 %v2775_v41, %v7317_v22  ;;  %v7329_v62 = vld [vmem:[#allocation79_spill] sm:$0xff]  ;;  %v7332_v41 = vld [vmem:[#allocation172_spill] sm:$0xff] }
 0x4c7   :  { %3106 = vmatpush.bf16.msra.mxu0 %v7322_v9  ;;  %3120 = vmatpush.bf16.msra.mxu1 %v7323_v5  ;;  %v7327_v9 = vld [vmem:[#allocation77_spill] sm:$0xff]  ;;  %v2790_v20 = vadd.f32 %v2789_v32, %v2776_v27  ;;  %v2815_v13 = vpop.f32.mrf.mxu1  ;;  %v7330_v5 = vld [vmem:[#allocation80_spill] sm:$0xff] }
 0x4c8   :  { %v7335_v27 = vld [vmem:[#allocation84_spill] sm:$0xff] }
 0x4c9   :  { %3134 = vmatpush.bf16.msra.mxu2 %v7324_v24  ;;  %3148 = vmatpush.bf16.msra.mxu3 %v7325_v10  ;;  %v2993_v49 = vpack.c.bf16 %v2790_v20, %v2762_v17  ;;  %v7331_v24 = vld [vmem:[#allocation81_spill] sm:$0xff]  ;;  %v2802_v10 = vadd.f32 %v2801_v4, %v7332_v41 }
 0x4ca   :  { %v7336_v17 = vld [vmem:[#allocation85_spill] sm:$0xff]  ;;  %v2803_v20 = vpop.f32.mrf.mxu0 }
 0x4cb   :  { %3107 = vmatpush.bf16.msra.mxu0 %v7326_v58  ;;  %3121 = vmatpush.bf16.msra.mxu1 %v7327_v9  ;;  %3003 = vst [vmem:[%s6407_s8 + $0x120] sm:$0xff] %v2993_v49  ;;  %v2829_v58 = vpop.f32.mrf.mxu2  ;;  %v2843_v9 = vpop.f32.mrf.mxu3  ;;  %v7338_v49 = vld [vmem:[#allocation87_spill] sm:$0xff] }
 0x4cc   :  { %v2830_v32 = vadd.f32 %v2829_v58, %v7084_v23 }
 0x4cd   :  { %3135 = vmatpush.bf16.msra.mxu2 %v7328_v45  ;;  %3149 = vmatpush.bf16.msra.mxu3 %v7329_v62  ;;  %v2816_v45 = vadd.f32 %v2815_v13, %v2802_v10 }
 0x4ce   :  { %v2844_v62 = vadd.f32 %v2843_v9, %v2830_v32 }
 0x4cf   :  { %3108 = vmatpush.bf16.msra.mxu0 %v7330_v5  ;;  %3122 = vmatpush.bf16.msra.mxu1 %v7331_v24  ;;  %v7337_v5 = vld [vmem:[#allocation86_spill] sm:$0xff]  ;;  %v2804_v24 = vadd.f32 %v2803_v20, %v7332_v41 }
 0x4d0   :  { %v2989_v4 = vpack.c.bf16 %v2844_v62, %v2816_v45 }
 0x4d1   :  { %3136 = vmatpush.bf16.msra.mxu2 %v7333_v12  ;;  %3150 = vmatpush.bf16.msra.mxu3 %v7334_v25  ;;  %v2817_v12 = vpop.f32.mrf.mxu1 }
 0x4d2   :  { %2999 = vst [vmem:[%s6407_s8 + $0x74] sm:$0xff] %v2989_v4 }
 0x4d3   :  { %3109 = vmatpush.bf16.msra.mxu0 %v7335_v27  ;;  %3123 = vmatpush.bf16.msra.mxu1 %v7336_v17  ;;  %v2831_v58 = vpop.f32.mrf.mxu2  ;;  %v2845_v25 = vpop.f32.mrf.mxu3  ;;  %v2818_v17 = vadd.f32 %v2817_v12, %v2804_v24 }
 0x4d4   :  { %v2832_v27 = vadd.f32 %v2831_v58, %v7084_v23  ;;  %v2857_v13 = vpop.f32.mrf.mxu0 }
 0x4d5   :  { %3137 = vmatpush.bf16.msra.mxu2 %v7337_v5  ;;  %3151 = vmatpush.bf16.msra.mxu3 %v7338_v49  ;;  %v2858_v9 = vadd.f32 %v2857_v13, %v5473_v8 }
 0x4d6   :  { %v2846_v22 = vadd.f32 %v2845_v25, %v2832_v27 }
 0x4d8   :  { %v2994_v10 = vpack.c.bf16 %v2846_v22, %v2818_v17 }
 0x4d9   :  { %v2871_v32 = vpop.f32.mrf.mxu1 }
 0x4da   :  { %3004 = vst [vmem:[%s6407_s8 + $0x128] sm:$0xff] %v2994_v10  ;;  %v2872_v5 = vadd.f32 %v2871_v32, %v2858_v9 }
 0x4dc   :  { %v2885_v45 = vpop.f32.mrf.mxu2  ;;  %v2899_v62 = vpop.f32.mrf.mxu3 }
 0x4dd   :  { %v2886_v20 = vadd.f32 %v2885_v45, %v7089_v55  ;;  %v2859_v4 = vpop.f32.mrf.mxu0 }
 0x4de   :  { %v2860_v22 = vadd.f32 %v2859_v4, %v5473_v8 }
 0x4df   :  { %v2900_v49 = vadd.f32 %v2899_v62, %v2886_v20 }
 0x4e1   :  { %v2990_v41 = vpack.c.bf16 %v2900_v49, %v2872_v5  ;;  %v2873_v58 = vpop.f32.mrf.mxu1 }
 0x4e2   :  { %v2874_v27 = vadd.f32 %v2873_v58, %v2860_v22 }
 0x4e3   :  { %3000 = vst [vmem:[%s6407_s8 + $0x7c] sm:$0xff] %v2990_v41 }
 0x4e4   :  { %v2887_v24 = vpop.f32.mrf.mxu2  ;;  %v2901_v25 = vpop.f32.mrf.mxu3 }
 0x4e5   :  { %v2888_v12 = vadd.f32 %v2887_v24, %v7089_v55 }
 0x4e7   :  { %v2902_v17 = vadd.f32 %v2901_v25, %v2888_v12 }
 0x4e9   :  { %v2995_v13 = vpack.c.bf16 %v2902_v17, %v2874_v27 }
 0x4eb   :  { %3005 = vst [vmem:[%s6407_s8 + $0x130] sm:$0xff] %v2995_v13 }
 0x4f3   :  { %v2913_v10 = vpop.f32.mrf.mxu0  ;;  %v2927_v32 = vpop.f32.mrf.mxu1 }
 0x4f4   :  { %v2914_v9 = vadd.f32 %v2913_v10, %v5492_v44 }
 0x4f6   :  { %v2928_v20 = vadd.f32 %v2927_v32, %v2914_v9 }
 0x4fb   :  { %v2915_v49 = vpop.f32.mrf.mxu0  ;;  %v2929_v58 = vpop.f32.mrf.mxu1 }
 0x4fc   :  { %v2941_v45 = vpop.f32.mrf.mxu2  ;;  %v2955_v41 = vpop.f32.mrf.mxu3  ;;  %v2916_v22 = vadd.f32 %v2915_v49, %v5492_v44 }
 0x4fd   :  { %v2942_v62 = vadd.f32 %v2941_v45, %v5495_v53 }
 0x4fe   :  { %v2930_v27 = vadd.f32 %v2929_v58, %v2916_v22 }
 0x4ff   :  { %v2956_v5 = vadd.f32 %v2955_v41, %v2942_v62 }
 0x501   :  { %v2991_v4 = vpack.c.bf16 %v2956_v5, %v2928_v20 }
 0x503   :  { %3001 = vst [vmem:[%s6407_s8 + $0x84] sm:$0xff] %v2991_v4 }
 0x504   :  { %v2943_v24 = vpop.f32.mrf.mxu2  ;;  %v2957_v25 = vpop.f32.mrf.mxu3 }
 0x505   :  { %v2944_v12 = vadd.f32 %v2943_v24, %v5495_v53 }
 0x507   :  { %v2958_v17 = vadd.f32 %v2957_v25, %v2944_v12 }
 0x509   :  { %v2996_v13 = vpack.c.bf16 %v2958_v17, %v2930_v27 }
 0x50b   :  { %3006 = vst [vmem:[%s6407_s8 + $0x138] sm:$0xff] %v2996_v13 }
 0x513   :  { %v2969_v10 = vpop.f32.mrf.mxu0  ;;  %v2983_v9 = vpop.f32.mrf.mxu1 }
 0x514   :  { %v2970_v32 = vadd.f32 %v5995_v35, %v2969_v10 }
 0x516   :  { %v2984_v45 = vadd.f32 %v2983_v9, %v2970_v32  ;;  %v7378_v32 = vld [vmem:[#allocation166_spill] sm:$0xff] }
 0x518   :  { %v2992_v41 = vpack.c.bf16 %v2984_v45, %v2984_v45  ;;  %v7379_v45 = vld [vmem:[#allocation167_spill] sm:$0xff] }
 0x51a   :  { %3002 = vst [vmem:[%s6407_s8 + $0x8c] sm:$0xf] %v2992_v41  ;;  %v7380_v41 = vld [vmem:[#allocation168_spill] sm:$0xff] }
 0x51b   :  { %v3025_v62 = vpop.f32.mrf.mxu2  ;;  %v3039_v20 = vpop.f32.mrf.mxu3 }
 0x51c   :  { %v2971_v5 = vpop.f32.mrf.mxu0  ;;  %v2985_v4 = vpop.f32.mrf.mxu1  ;;  %v3026_v25 = vadd.f32 %v3025_v62, %v6967_v26  ;;  %v3040_v27 = vadd.f32 %v3039_v20, %v6968_v0  ;;  %v7381_v62 = vld [vmem:[#allocation169_spill] sm:$0xff] }
 0x51d   :  { %v2972_v49 = vadd.f32 %v5995_v35, %v2971_v5 }
 0x51f   :  { %v2986_v22 = vadd.f32 %v2985_v4, %v2972_v49 }
 0x521   :  { %v2997_v24 = vpack.c.bf16 %v2986_v22, %v2986_v22 }
 0x523   :  { %3007 = vst [vmem:[%s6407_s8 + $0x140] sm:$0xf] %v2997_v24  ;;  %v3027_v12 = vpop.f32.mrf.mxu2  ;;  %v3041_v58 = vpop.f32.mrf.mxu3  ;;  %v7382_v24 = vld [vmem:[#allocation171_spill] sm:$0xff] }
 0x524   :  { %v3028_v17 = vadd.f32 %v3027_v12, %v6967_v26  ;;  %v3042_v13 = vadd.f32 %v3041_v58, %v6968_v0  ;;  %v7339_v26 = vld [vmem:[#allocation104_spill] sm:$0xff]  ;;  %v7340_v0 = vld [vmem:[#allocation105_spill] sm:$0xff] }
 0x526   :  { %v6249_v10 = vpack.c.bf16 %v3028_v17, %v3026_v25  ;;  %v6251_v9 = vpack.c.bf16 %v3042_v13, %v3040_v27 }
 0x528   :  { %3054 = vmatmul.bf16.vlgmr.msrb.gmra.mxu0 %v6249_v10  ;;  %3068 = vmatmul.bf16.vlgmr.msrb.gmra.mxu1 %v6251_v9 }
 0x529   :  { %3082 = vmatmul.bf16.vlgmr.msrb.gmra.mxu2 %v6249_v10  ;;  %3096 = vmatmul.bf16.vlgmr.msrb.gmra.mxu3 %v6251_v9 }
 0x52a   :  { %3158 = vmatpush.bf16.msrb.mxu0 %v6969_v19  ;;  %3172 = vmatpush.bf16.msrb.mxu1 %v7090_v37  ;;  %v7341_v19 = vld [vmem:[#allocation106_spill] sm:$0xff]  ;;  %v7343_v37 = vld [vmem:[#allocation108_spill] sm:$0xff] }
 0x52b   :  { %3186 = vmatpush.bf16.msrb.mxu2 %v7091_v56  ;;  %3200 = vmatpush.bf16.msrb.mxu3 %v7092_v36  ;;  %v7344_v56 = vld [vmem:[#allocation109_spill] sm:$0xff]  ;;  %v7345_v36 = vld [vmem:[#allocation110_spill] sm:$0xff] }
 0x52e   :  { %3159 = vmatpush.bf16.msrb.mxu0 %v7093_v48  ;;  %3173 = vmatpush.bf16.msrb.mxu1 %v6974_v59  ;;  %v7342_v59 = vld [vmem:[#allocation107_spill] sm:$0xff] }
 0x52f   :  { %3187 = vmatpush.bf16.msrb.mxu2 %v7094_v38  ;;  %3201 = vmatpush.bf16.msrb.mxu3 %v7095_v60  ;;  %v7346_v48 = vld [vmem:[#allocation111_spill] sm:$0xff]  ;;  %v7347_v38 = vld [vmem:[#allocation112_spill] sm:$0xff]  ;;  %v7348_v60 = vld [vmem:[#allocation113_spill] sm:$0xff] }
 0x532   :  { %3160 = vmatpush.bf16.msrb.mxu0 %v7096_v63  ;;  %3174 = vmatpush.bf16.msrb.mxu1 %v7097_v16  ;;  %v7349_v63 = vld [vmem:[#allocation114_spill] sm:$0xff]  ;;  %v7350_v16 = vld [vmem:[#allocation125_spill] sm:$0xff] }
 0x533   :  { %3188 = vmatpush.bf16.msrb.mxu2 %v7215_v43  ;;  %3202 = vmatpush.bf16.msrb.mxu3 %v7216_v33  ;;  %v7351_v43 = vld [vmem:[#allocation129_spill] sm:$0xff]  ;;  %v7352_v33 = vld [vmem:[#allocation132_spill] sm:$0xff] }
 0x536   :  { %3161 = vmatpush.bf16.msrb.mxu0 %v7217_v11  ;;  %3175 = vmatpush.bf16.msrb.mxu1 %v7218_v39  ;;  %v7353_v11 = vld [vmem:[#allocation133_spill] sm:$0xff]  ;;  %v7354_v39 = vld [vmem:[#allocation134_spill] sm:$0xff] }
 0x537   :  { %3189 = vmatpush.bf16.msrb.mxu2 %v7339_v26  ;;  %3203 = vmatpush.bf16.msrb.mxu3 %v7340_v0 }
 0x538   :  { %3110 = vmatmul.bf16.vlgmr.msra.gmra.mxu0 %v6249_v10  ;;  %3124 = vmatmul.bf16.vlgmr.msra.gmra.mxu1 %v6251_v9 }
 0x539   :  { %3138 = vmatmul.bf16.vlgmr.msra.gmra.mxu2 %v6249_v10  ;;  %3152 = vmatmul.bf16.vlgmr.msra.gmra.mxu3 %v6251_v9 }
 0x53a   :  { %3162 = vmatpush.bf16.msrb.mxu0 %v7341_v19  ;;  %3176 = vmatpush.bf16.msrb.mxu1 %v7342_v59 }
 0x53b   :  { %3190 = vmatpush.bf16.msrb.mxu2 %v7343_v37  ;;  %3204 = vmatpush.bf16.msrb.mxu3 %v7344_v56 }
 0x53e   :  { %3163 = vmatpush.bf16.msrb.mxu0 %v7345_v36  ;;  %3177 = vmatpush.bf16.msrb.mxu1 %v7346_v48  ;;  %v7383_v48 = vld [vmem:[#allocation172_spill] sm:$0xff] }
 0x53f   :  { %3191 = vmatpush.bf16.msrb.mxu2 %v7347_v38  ;;  %3205 = vmatpush.bf16.msrb.mxu3 %v7348_v60 }
 0x542   :  { %3164 = vmatpush.bf16.msrb.mxu0 %v7349_v63  ;;  %3178 = vmatpush.bf16.msrb.mxu1 %v7230_v30  ;;  %v7369_v30 = vld [vmem:[#allocation157_spill] sm:$0xff] }
 0x543   :  { %3192 = vmatpush.bf16.msrb.mxu2 %v7231_v40  ;;  %3206 = vmatpush.bf16.msrb.mxu3 %v7232_v29  ;;  %v7355_v40 = vld [vmem:[#allocation135_spill] sm:$0xff]  ;;  %v7370_v29 = vld [vmem:[#allocation158_spill] sm:$0xff] }
 0x546   :  { %3165 = vmatpush.bf16.msrb.mxu0 %v7233_v42  ;;  %3179 = vmatpush.bf16.msrb.mxu1 %v7234_v1  ;;  %v7371_v42 = vld [vmem:[#allocation159_spill] sm:$0xff]  ;;  %v7372_v1 = vld [vmem:[#allocation160_spill] sm:$0xff] }
 0x547   :  { %3193 = vmatpush.bf16.msrb.mxu2 %v7235_v18  ;;  %3207 = vmatpush.bf16.msrb.mxu3 %v7236_v6  ;;  %v7373_v18 = vld [vmem:[#allocation161_spill] sm:$0xff]  ;;  %v7374_v6 = vld [vmem:[#allocation162_spill] sm:$0xff] }
 0x549   :  { %3166 = vmatmul.bf16.vlgmr.msrb.gmra.mxu0 %v6249_v10  ;;  %3180 = vmatmul.bf16.vlgmr.msrb.gmra.mxu1 %v6251_v9 }
 0x54a   :  { %3214 = vmatpush.bf16.msra.mxu0 %v7237_v15  ;;  %3228 = vmatpush.bf16.msra.mxu1 %v7238_v31  ;;  %v7375_v15 = vld [vmem:[#allocation163_spill] sm:$0xff]  ;;  %v7376_v31 = vld [vmem:[#allocation164_spill] sm:$0xff] }
 0x54b   :  { %3242 = vmatpush.bf16.msra.mxu2 %v7239_v7  ;;  %3256 = vmatpush.bf16.msra.mxu3 %v7350_v16  ;;  %v7377_v7 = vld [vmem:[#allocation165_spill] sm:$0xff] }
 0x54c   :  { %3194 = vmatmul.bf16.vlgmr.msrb.gmra.mxu2 %v6249_v10  ;;  %3208 = vmatmul.bf16.vlgmr.msrb.gmra.mxu3 %v6251_v9 }
 0x54e   :  { %3215 = vmatpush.bf16.msra.mxu0 %v7122_v21  ;;  %3229 = vmatpush.bf16.msra.mxu1 %v7123_v54  ;;  %v7358_v21 = vld [vmem:[#allocation146_spill] sm:$0xff]  ;;  %v7367_v54 = vld [vmem:[#allocation155_spill] sm:$0xff] }
 0x54f   :  { %3243 = vmatpush.bf16.msra.mxu2 %v7124_v3  ;;  %3257 = vmatpush.bf16.msra.mxu3 %v7351_v43  ;;  %v7368_v3 = vld [vmem:[#allocation156_spill] sm:$0xff] }
 0x552   :  { %3216 = vmatpush.bf16.msra.mxu0 %v7126_v52  ;;  %3230 = vmatpush.bf16.msra.mxu1 %v7127_v50  ;;  %v7356_v50 = vld [vmem:[#allocation144_spill] sm:$0xff]  ;;  %v7357_v52 = vld [vmem:[#allocation145_spill] sm:$0xff] }
 0x553   :  { %3244 = vmatpush.bf16.msra.mxu2 %v7352_v33  ;;  %3258 = vmatpush.bf16.msra.mxu3 %v7353_v11 }
 0x556   :  { %3217 = vmatpush.bf16.msra.mxu0 %v7354_v39  ;;  %3231 = vmatpush.bf16.msra.mxu1 %v7355_v40 }
 0x557   :  { %3245 = vmatpush.bf16.msra.mxu2 %v7132_v57  ;;  %3259 = vmatpush.bf16.msra.mxu3 %v7013_v28  ;;  %v7359_v57 = vld [vmem:[#allocation147_spill] sm:$0xff]  ;;  %v7360_v28 = vld [vmem:[#allocation148_spill] sm:$0xff] }
 0x55a   :  { %3218 = vmatpush.bf16.msra.mxu0 %v7014_v47  ;;  %3232 = vmatpush.bf16.msra.mxu1 %v7015_v34  ;;  %v7361_v47 = vld [vmem:[#allocation149_spill] sm:$0xff]  ;;  %v7362_v34 = vld [vmem:[#allocation150_spill] sm:$0xff] }
 0x55b   :  { %3246 = vmatpush.bf16.msra.mxu2 %v7242_v61  ;;  %3260 = vmatpush.bf16.msra.mxu3 %v7017_v51  ;;  %v7363_v61 = vld [vmem:[#allocation151_spill] sm:$0xff]  ;;  %v7364_v51 = vld [vmem:[#allocation152_spill] sm:$0xff] }
 0x55e   :  { %3219 = vmatpush.bf16.msra.mxu0 %v7018_v2  ;;  %3233 = vmatpush.bf16.msra.mxu1 %v7243_v46  ;;  %v7365_v2 = vld [vmem:[#allocation153_spill] sm:$0xff]  ;;  %v7366_v46 = vld [vmem:[#allocation154_spill] sm:$0xff] }
 0x55f   :  { %3247 = vmatpush.bf16.msra.mxu2 %v7356_v50  ;;  %3261 = vmatpush.bf16.msra.mxu3 %v7357_v52 }
 0x562   :  { %3220 = vmatpush.bf16.msra.mxu0 %v7358_v21  ;;  %3234 = vmatpush.bf16.msra.mxu1 %v7359_v57 }
 0x563   :  { %3248 = vmatpush.bf16.msra.mxu2 %v7360_v28  ;;  %3262 = vmatpush.bf16.msra.mxu3 %v7361_v47 }
 0x566   :  { %3221 = vmatpush.bf16.msra.mxu0 %v7362_v34  ;;  %3235 = vmatpush.bf16.msra.mxu1 %v7363_v61 }
 0x567   :  { %3249 = vmatpush.bf16.msra.mxu2 %v7364_v51  ;;  %3263 = vmatpush.bf16.msra.mxu3 %v7365_v2 }
 0x569   :  { %3222 = vmatmul.bf16.vlgmr.msra.gmra.mxu0 %v6249_v10  ;;  %3236 = vmatmul.bf16.vlgmr.msra.gmra.mxu1 %v6251_v9 }
 0x56a   :  { %3270 = vmatpush.bf16.msrb.mxu0 %v7366_v46  ;;  %3284 = vmatpush.bf16.msrb.mxu1 %v7367_v54 }
 0x56b   :  { %3250 = vmatmul.bf16.vlgmr.msra.gmra.mxu2 %v6249_v10  ;;  %3264 = vmatmul.bf16.vlgmr.msra.gmra.mxu3 %v6251_v9 }
 0x56e   :  { %3271 = vmatpush.bf16.msrb.mxu0 %v7368_v3  ;;  %3285 = vmatpush.bf16.msrb.mxu1 %v7369_v30 }
 0x572   :  { %3272 = vmatpush.bf16.msrb.mxu0 %v7370_v29  ;;  %3286 = vmatpush.bf16.msrb.mxu1 %v7371_v42 }
 0x576   :  { %3273 = vmatpush.bf16.msrb.mxu0 %v7372_v1  ;;  %3287 = vmatpush.bf16.msrb.mxu1 %v7373_v18 }
 0x57a   :  { %3274 = vmatpush.bf16.msrb.mxu0 %v7374_v6  ;;  %3288 = vmatpush.bf16.msrb.mxu1 %v7375_v15 }
 0x57e   :  { %3275 = vmatpush.bf16.msrb.mxu0 %v7376_v31  ;;  %3289 = vmatpush.bf16.msrb.mxu1 %v7377_v7 }
 0x582   :  { %3276 = vmatpush.bf16.msrb.mxu0 %v7378_v32  ;;  %3290 = vmatpush.bf16.msrb.mxu1 %v7379_v45 }
 0x586   :  { %3277 = vmatpush.bf16.msrb.mxu0 %v7380_v41  ;;  %3291 = vmatpush.bf16.msrb.mxu1 %v7381_v62 }
 0x589   :  { %3278 = vmatmul.bf16.vlgmr.msrb.gmra.mxu0 %v6249_v10  ;;  %3292 = vmatmul.bf16.vlgmr.msrb.gmra.mxu1 %v6251_v9 }
 0x5a5   :  { %v3055_v20 = vpop.f32.mrf.mxu0  ;;  %v3069_v5 = vpop.f32.mrf.mxu1 }
 0x5a6   :  { %v3056_v49 = vadd.f32 %v3055_v20, %v7190_v14 }
 0x5a8   :  { %v3070_v25 = vadd.f32 %v3069_v5, %v3056_v49 }
 0x5ac   :  { %v3083_v4 = vpop.f32.mrf.mxu2  ;;  %v3097_v22 = vpop.f32.mrf.mxu3 }
 0x5ad   :  { %v3084_v12 = vadd.f32 %v3083_v4, %v7382_v24  ;;  %v3057_v58 = vpop.f32.mrf.mxu0  ;;  %v3071_v17 = vpop.f32.mrf.mxu1 }
 0x5ae   :  { %v3058_v10 = vadd.f32 %v3057_v58, %v7190_v14 }
 0x5af   :  { %v3098_v27 = vadd.f32 %v3097_v22, %v3084_v12 }
 0x5b0   :  { %v3072_v59 = vadd.f32 %v3071_v17, %v3058_v10 }
 0x5b1   :  { %v3298_v13 = vpack.c.bf16 %v3098_v27, %v3070_v25 }
 0x5b3   :  { %3308 = vst [vmem:[%s6407_s8 + $0x90] sm:$0xff] %v3298_v13 }
 0x5b4   :  { %v3085_v9 = vpop.f32.mrf.mxu2  ;;  %v3099_v26 = vpop.f32.mrf.mxu3 }
 0x5b5   :  { %v3086_v0 = vadd.f32 %v3085_v9, %v7382_v24  ;;  %v3111_v19 = vpop.f32.mrf.mxu0  ;;  %v3125_v36 = vpop.f32.mrf.mxu1 }
 0x5b6   :  { %v3112_v38 = vadd.f32 %v3111_v19, %v7383_v48 }
 0x5b7   :  { %v3100_v37 = vadd.f32 %v3099_v26, %v3086_v0 }
 0x5b8   :  { %v3126_v43 = vadd.f32 %v3125_v36, %v3112_v38 }
 0x5b9   :  { %v3303_v56 = vpack.c.bf16 %v3100_v37, %v3072_v59 }
 0x5bb   :  { %3313 = vst [vmem:[%s6407_s8 + $0x144] sm:$0xff] %v3303_v56 }
 0x5bc   :  { %v3139_v60 = vpop.f32.mrf.mxu2  ;;  %v3153_v63 = vpop.f32.mrf.mxu3 }
 0x5bd   :  { %v3140_v16 = vadd.f32 %v3139_v60, %v7084_v23  ;;  %v3113_v14 = vpop.f32.mrf.mxu0  ;;  %v3127_v40 = vpop.f32.mrf.mxu1 }
 0x5be   :  { %v3114_v39 = vadd.f32 %v3113_v14, %v7383_v48 }
 0x5bf   :  { %v3154_v33 = vadd.f32 %v3153_v63, %v3140_v16 }
 0x5c0   :  { %v3128_v57 = vadd.f32 %v3127_v40, %v3114_v39 }
 0x5c1   :  { %v3299_v11 = vpack.c.bf16 %v3154_v33, %v3126_v43 }
 0x5c3   :  { %3309 = vst [vmem:[%s6407_s8 + $0x98] sm:$0xff] %v3299_v11 }
 0x5c4   :  { %v3141_v50 = vpop.f32.mrf.mxu2  ;;  %v3155_v52 = vpop.f32.mrf.mxu3 }
 0x5c5   :  { %v3142_v21 = vadd.f32 %v3141_v50, %v7084_v23 }
 0x5c6   :  { %v3167_v47 = vpop.f32.mrf.mxu0  ;;  %v3181_v51 = vpop.f32.mrf.mxu1 }
 0x5c7   :  { %v3156_v28 = vadd.f32 %v3155_v52, %v3142_v21  ;;  %v3168_v61 = vadd.f32 %v3167_v47, %v5473_v8 }
 0x5c9   :  { %v3304_v34 = vpack.c.bf16 %v3156_v28, %v3128_v57  ;;  %v3182_v3 = vadd.f32 %v3181_v51, %v3168_v61 }
 0x5cb   :  { %3314 = vst [vmem:[%s6407_s8 + $0x14c] sm:$0xff] %v3304_v34 }
 0x5ce   :  { %v3169_v29 = vpop.f32.mrf.mxu0  ;;  %v3183_v6 = vpop.f32.mrf.mxu1 }
 0x5cf   :  { %v3195_v2 = vpop.f32.mrf.mxu2  ;;  %v3209_v46 = vpop.f32.mrf.mxu3  ;;  %v3170_v23 = vadd.f32 %v3169_v29, %v5473_v8 }
 0x5d0   :  { %v3196_v54 = vadd.f32 %v3195_v2, %v7089_v55 }
 0x5d1   :  { %v3184_v31 = vadd.f32 %v3183_v6, %v3170_v23 }
 0x5d2   :  { %v3210_v30 = vadd.f32 %v3209_v46, %v3196_v54 }
 0x5d4   :  { %v3300_v42 = vpack.c.bf16 %v3210_v30, %v3182_v3 }
 0x5d6   :  { %3310 = vst [vmem:[%s6407_s8 + $0xa0] sm:$0xff] %v3300_v42 }
 0x5d7   :  { %v3197_v1 = vpop.f32.mrf.mxu2  ;;  %v3211_v15 = vpop.f32.mrf.mxu3 }
 0x5d8   :  { %v3198_v18 = vadd.f32 %v3197_v1, %v7089_v55 }
 0x5da   :  { %v3212_v7 = vadd.f32 %v3211_v15, %v3198_v18 }
 0x5dc   :  { %v3305_v32 = vpack.c.bf16 %v3212_v7, %v3184_v31 }
 0x5de   :  { %3315 = vst [vmem:[%s6407_s8 + $0x154] sm:$0xff] %v3305_v32 }
 0x5e6   :  { %v3223_v45 = vpop.f32.mrf.mxu0  ;;  %v3237_v62 = vpop.f32.mrf.mxu1 }
 0x5e7   :  { %v3224_v41 = vadd.f32 %v3223_v45, %v5492_v44 }
 0x5e9   :  { %v3238_v49 = vadd.f32 %v3237_v62, %v3224_v41 }
 0x5ee   :  { %v3251_v20 = vpop.f32.mrf.mxu2  ;;  %v3265_v5 = vpop.f32.mrf.mxu3 }
 0x5ef   :  { %v3252_v8 = vadd.f32 %v3251_v20, %v5495_v53  ;;  %v3225_v55 = vpop.f32.mrf.mxu0  ;;  %v3239_v25 = vpop.f32.mrf.mxu1 }
 0x5f0   :  { %v3226_v24 = vadd.f32 %v3225_v55, %v5492_v44 }
 0x5f1   :  { %v3266_v4 = vadd.f32 %v3265_v5, %v3252_v8 }
 0x5f2   :  { %v3240_v17 = vadd.f32 %v3239_v25, %v3226_v24 }
 0x5f3   :  { %v3301_v22 = vpack.c.bf16 %v3266_v4, %v3238_v49 }
 0x5f5   :  { %3311 = vst [vmem:[%s6407_s8 + $0xa8] sm:$0xff] %v3301_v22 }
 0x5f6   :  { %v3253_v12 = vpop.f32.mrf.mxu2  ;;  %v3267_v27 = vpop.f32.mrf.mxu3 }
 0x5f7   :  { %v3254_v58 = vadd.f32 %v3253_v12, %v5495_v53 }
 0x5f9   :  { %v3268_v13 = vadd.f32 %v3267_v27, %v3254_v58 }
 0x5fb   :  { %v3306_v10 = vpack.c.bf16 %v3268_v13, %v3240_v17 }
 0x5fd   :  { %3316 = vst [vmem:[%s6407_s8 + $0x15c] sm:$0xff] %v3306_v10 }
 0x606   :  { %v3279_v9 = vpop.f32.mrf.mxu0  ;;  %v3293_v26 = vpop.f32.mrf.mxu1 }
 0x607   :  { %v3280_v0 = vadd.f32 %v5995_v35, %v3279_v9 }
 0x609   :  { %v3294_v19 = vadd.f32 %v3293_v26, %v3280_v0 }
 0x60b   :  { %v3302_v59 = vpack.c.bf16 %v3294_v19, %v3294_v19 }
 0x60d   :  { %3312 = vst [vmem:[%s6407_s8 + $0xb0] sm:$0xf] %v3302_v59 }
 0x60e   :  { %v3281_v44 = vpop.f32.mrf.mxu0  ;;  %v3295_v37 = vpop.f32.mrf.mxu1 }
 0x60f   :  { %v3282_v53 = vadd.f32 %v5995_v35, %v3281_v44 }
 0x611   :  { %v3296_v56 = vadd.f32 %v3295_v37, %v3282_v53 }
 0x613   :  { %v3307_v36 = vpack.c.bf16 %v3296_v56, %v3296_v56 }
 0x615   :  { %3317 = vst [vmem:[%s6407_s8 + $0x164] sm:$0xf] %v3307_v36 }
 0x616   :  { %3326 = vsyncpa [#allocation3], 1 }
 0x617   :  { %3327 = vsyncpa [#allocation5], 1 }

</bundles_post_ra>
